<compile_context>
chip_gen: v7x
topology: tpu7x:2x2x1
jax: 0.10.0
libtpu: 0.0.40
codegen_flags: <defaults>
</compile_context>

<pallas_src>
import functools
import math

import numpy as np
import jax
import jax.numpy as jnp
from jax.experimental import pallas as pl
from jax.experimental.pallas import tpu as pltpu

KSIZE = 5
POOL = 2


# ----------------------- constant (prep-time) builders ----------------------

def _build_conv_consts(conv_w, conv_b, h_in, w_in, batch):
    """Left selector L[kh], right banded-weight B[kh] and tiled bias row.

    Activation layout: 2-D, rows = (h, n) (h-major), lanes = (w, c) (w-major).
    Output of a stage: rows = (i_pool, n), lanes = (j_pool, c_out).
    """
    cw = np.asarray(conv_w, np.float32)            # (Co, Ci, 5, 5)
    cb = np.asarray(conv_b, np.float32)            # (Co,)
    c_out, c_in = cw.shape[0], cw.shape[1]
    h_pool = (h_in - KSIZE + 1) // POOL
    w_pool = (w_in - KSIZE + 1) // POOL

    # L[kh]: (2*h_pool*batch, h_in*batch); rows = (di, i, n), cols = (h, n).
    left = np.zeros((KSIZE, POOL * h_pool * batch, h_in * batch), np.float32)
    for kh in range(KSIZE):
        for di in range(POOL):
            for i in range(h_pool):
                h = POOL * i + di + kh
                for b in range(batch):
                    left[kh, (di * h_pool + i) * batch + b, h * batch + b] = 1.0

    # B[kh]: (w_in*c_in, 2*w_pool*c_out); rows = (w, ci), cols = (dj, j, co).
    right = np.zeros((KSIZE, w_in * c_in, POOL * w_pool * c_out), np.float32)
    for kh in range(KSIZE):
        for dj in range(POOL):
            for j in range(w_pool):
                col0 = dj * (w_pool * c_out) + j * c_out
                for kw in range(KSIZE):
                    w = POOL * j + dj + kw
                    right[kh, w * c_in:(w + 1) * c_in, col0:col0 + c_out] = \
                        cw[:, :, kh, kw].T

    bias_row = np.tile(cb.reshape(1, c_out), (1, w_pool))   # (1, w_pool*c_out)
    return left, right, bias_row.astype(np.float32)


def _build_fc1_consts(fc_w, fc_b, h_pool, w_pool, c_out):
    """Fold the torch NCHW `.view(-1, 320)` flatten into the fc1 weights.

    Returns w_stack (h_pool, w_pool*c_out, F): one (80, 50) block per pooled
    row, with lane order (j, c) matching the conv-stage output layout.
    """
    fw = np.asarray(fc_w, np.float32)              # (F, c_out*h_pool*w_pool)
    fb = np.asarray(fc_b, np.float32)
    n_feat = fw.shape[0]
    w_stack = (fw.reshape(n_feat, c_out, h_pool, w_pool)
                 .transpose(2, 3, 1, 0)            # (h, w, c, F)
                 .reshape(h_pool, w_pool * c_out, n_feat))
    return np.ascontiguousarray(w_stack), fb.reshape(1, n_feat)


def prepare_params(params, batch, height, width):
    """One-time parameter preparation (all weight transposes / permutations)."""
    hp1 = (height - KSIZE + 1) // POOL
    wp1 = (width - KSIZE + 1) // POOL
    hp2 = (hp1 - KSIZE + 1) // POOL
    wp2 = (wp1 - KSIZE + 1) // POOL

    prepped = {}
    for mod, tag in (("m1", "a"), ("m2", "b")):
        l1, b1, bt1 = _build_conv_consts(params[f"{mod}_c1_w"],
                                         params[f"{mod}_c1_b"],
                                         height, width, batch)
        l2, b2, bt2 = _build_conv_consts(params[f"{mod}_c2_w"],
                                         params[f"{mod}_c2_b"],
                                         hp1, wp1, batch)
        c_out2 = int(np.asarray(params[f"{mod}_c2_w"]).shape[0])
        w1s, fb1 = _build_fc1_consts(params[f"fc1_{mod}_w"],
                                     params[f"fc1_{mod}_b"],
                                     hp2, wp2, c_out2)
        prepped.update({f"l1_{tag}": l1, f"b1_{tag}": b1, f"bt1_{tag}": bt1,
                        f"l2_{tag}": l2, f"b2_{tag}": b2, f"bt2_{tag}": bt2,
                        f"w1_{tag}": w1s, f"fb1_{tag}": fb1})

    prepped["fc2_w"] = np.asarray(params["fc2_w"], np.float32).T     # (50, 10)
    prepped["fc2_b"] = np.asarray(params["fc2_b"], np.float32).reshape(1, -1)
    return {k: jnp.asarray(v) for k, v in prepped.items()}


# ------------------------------ Pallas kernel -------------------------------

def _mmnet_kernel(a1_ref, a2_ref,
                  l1a, b1a, t1a, l2a, b2a, t2a, w1a, fb1a,
                  l1b, b1b, t1b, l2b, b2b, t2b, w1b, fb1b,
                  w2_ref, fb2_ref, o_ref, *, n):
    """Entire MMNet forward: two conv branches + fc head, all in VMEM."""

    def conv_stage(act, l_ref, b_ref, bias_ref):
        lanes_half = b_ref.shape[-1] // 2          # w_pool * c_out
        rows_half = l_ref.shape[1] // 2            # h_pool * n
        acc = None
        for kh in range(KSIZE):                    # 5 pairs of MXU matmuls
            term = jnp.dot(l_ref[kh],
                           jnp.dot(act, b_ref[kh],
                                   preferred_element_type=jnp.float32),
                           preferred_element_type=jnp.float32)
            acc = term if acc is None else acc + term
        # 2x2 max-pool: dj taps live in lane halves, di taps in row halves.
        u = jnp.maximum(acc[:, :lanes_half], acc[:, lanes_half:])
        v = jnp.maximum(u[:rows_half, :], u[rows_half:, :])
        # Bias + ReLU hoisted after the pool (both commute with max).
        return jnp.maximum(v + bias_ref[...], 0.0)

    def branch(act, l1, b1, t1, l2, b2, t2, w1, fb1):
        y1 = conv_stage(act, l1, b1, t1)           # (hp1*n, wp1*c1)
        y2 = conv_stage(y1, l2, b2, t2)            # (hp2*n, wp2*c2)
        acc = None
        for i in range(w1.shape[0]):               # fc1, NCHW flatten folded in
            term = jnp.dot(y2[i * n:(i + 1) * n, :], w1[i],
                           preferred_element_type=jnp.float32)
            acc = term if acc is None else acc + term
        return acc + fb1[...]                      # (n, 50)

    h1 = branch(a1_ref[...], l1a, b1a, t1a, l2a, b2a, t2a, w1a, fb1a)
    h2 = branch(a2_ref[...], l1b, b1b, t1b, l2b, b2b, t2b, w1b, fb1b)
    hm = (h1 + h2) * 0.5                           # torch.mean(stack([x1,x2]),0)
    # TODO(synk): F.dropout / Dropout2d training-mode RNG masks not implemented;
    # eval-mode identity (matches module.eval()).
    z = jnp.dot(hm, w2_ref[...], preferred_element_type=jnp.float32) + fb2_ref[...]
    z = z - jnp.max(z, axis=1, keepdims=True)
    o_ref[...] = z - jnp.log(jnp.sum(jnp.exp(z), axis=1, keepdims=True))


@jax.jit
def mmnet_forward(prepped, x1, x2):
    n, c, h, w = x1.shape
    # Only per-forward glue: lay inputs out as (rows=(h, n), lanes=(w, c)).
    a1 = jnp.transpose(x1, (2, 0, 3, 1)).reshape(h * n, w * c)
    a2 = jnp.transpose(x2, (2, 0, 3, 1)).reshape(h * n, w * c)

    operands = [a1, a2]
    for tag in ("a", "b"):
        operands += [prepped[f"l1_{tag}"], prepped[f"b1_{tag}"],
                     prepped[f"bt1_{tag}"], prepped[f"l2_{tag}"],
                     prepped[f"b2_{tag}"], prepped[f"bt2_{tag}"],
                     prepped[f"w1_{tag}"], prepped[f"fb1_{tag}"]]
    operands += [prepped["fc2_w"], prepped["fc2_b"]]

    return pl.pallas_call(
        functools.partial(_mmnet_kernel, n=n),
        out_shape=jax.ShapeDtypeStruct((n, prepped["fc2_w"].shape[1]),
                                       jnp.float32),
        in_specs=[pl.BlockSpec(memory_space=pltpu.MemorySpace.VMEM)]
                 * len(operands),
        out_specs=pl.BlockSpec(memory_space=pltpu.MemorySpace.VMEM),
    )(*operands)


# --------------------------- params / reference -----------------------------

def _uniform(key, shape, fan_in):
    bound = 1.0 / math.sqrt(fan_in)
    return jax.random.uniform(key, shape, jnp.float32, -bound, bound)


def init_params(key, in_channel):
    ks = jax.random.split(key, 14)
    p = {}
    p["m1_c1_w"] = _uniform(ks[0], (10, in_channel, 5, 5), in_channel * 25)
    p["m1_c1_b"] = _uniform(ks[1], (10,), in_channel * 25)
    p["m1_c2_w"] = _uniform(ks[2], (20, 10, 5, 5), 250)
    p["m1_c2_b"] = _uniform(ks[3], (20,), 250)
    p["m2_c1_w"] = _uniform(ks[4], (10, in_channel, 5, 5), in_channel * 25)
    p["m2_c1_b"] = _uniform(ks[5], (10,), in_channel * 25)
    p["m2_c2_w"] = _uniform(ks[6], (20, 10, 5, 5), 250)
    p["m2_c2_b"] = _uniform(ks[7], (20,), 250)
    p["fc1_m1_w"] = _uniform(ks[8], (50, 320), 320)
    p["fc1_m1_b"] = _uniform(ks[9], (50,), 320)
    p["fc1_m2_w"] = _uniform(ks[10], (50, 320), 320)
    p["fc1_m2_b"] = _uniform(ks[11], (50,), 320)
    p["fc2_w"] = _uniform(ks[12], (10, 50), 50)
    p["fc2_b"] = _uniform(ks[13], (10,), 50)
    return p


def reference_forward(params, x1, x2):
    """Pure-JAX (XLA) reference matching the PyTorch forward (eval mode)."""
    dn = ("NCHW", "OIHW", "NCHW")

    def branch(x, cw1, cb1, cw2, cb2):
        y = jax.lax.conv_general_dilated(x, cw1, (1, 1), "VALID",
                                         dimension_numbers=dn)
        y = y + cb1.reshape(1, -1, 1, 1)
        y = jax.lax.reduce_window(y, -jnp.inf, jax.lax.max,
                                  (1, 1, 2, 2), (1, 1, 2, 2), "VALID")
        y = jnp.maximum(y, 0.0)
        y = jax.lax.conv_general_dilated(y, cw2, (1, 1), "VALID",
                                         dimension_numbers=dn)
        y = y + cb2.reshape(1, -1, 1, 1)
        y = jax.lax.reduce_window(y, -jnp.inf, jax.lax.max,
                                  (1, 1, 2, 2), (1, 1, 2, 2), "VALID")
        y = jnp.maximum(y, 0.0)
        return y.reshape(y.shape[0], -1)

    p = params
    f1 = branch(x1, p["m1_c1_w"], p["m1_c1_b"], p["m1_c2_w"], p["m1_c2_b"])
    f2 = branch(x2, p["m2_c1_w"], p["m2_c1_b"], p["m2_c2_w"], p["m2_c2_b"])
    h1 = f1 @ p["fc1_m1_w"].T + p["fc1_m1_b"]
    h2 = f2 @ p["fc1_m2_w"].T + p["fc1_m2_b"]
    h = (h1 + h2) * 0.5
    z = h @ p["fc2_w"].T + p["fc2_b"]
    return jax.nn.log_softmax(z, axis=1)


# ---------------------------------- main -------------------------------------

if __name__ == "__main__":
    key = jax.random.PRNGKey(0)
    k_p, k_x1, k_x2 = jax.random.split(key, 3)

    in_channel = 1
    batch = 2
    # spatial must be 28x28 so the flattened feature size is 320 (20*4*4)
    x1 = jax.random.normal(k_x1, (batch, in_channel, 28, 28), jnp.float32)
    x2 = jax.random.normal(k_x2, (batch, in_channel, 28, 28), jnp.float32)

    params = init_params(k_p, in_channel)
    prepped = prepare_params(params, batch, 28, 28)   # one-time weight prep

    out = jax.block_until_ready(mmnet_forward(prepped, x1, x2))
    ref = jax.block_until_ready(reference_forward(params, x1, x2))

    assert out.shape == (batch, 10) and out.dtype == jnp.float32
    np.testing.assert_allclose(np.asarray(out), np.asarray(ref),
                               rtol=1e-4, atol=1e-4)
    print("KERNEL_OK")
</pallas_src>

<mosaic_0001>
module attributes {stable_mosaic.version = 11 : i64} {
  func.func @_mmnet_kernel(%arg0: memref<56x28xf32, #tpu.memory_space<vmem>>, %arg1: memref<56x28xf32, #tpu.memory_space<vmem>>, %arg2: memref<5x48x56xf32, #tpu.memory_space<vmem>>, %arg3: memref<5x28x240xf32, #tpu.memory_space<vmem>>, %arg4: memref<1x120xf32, #tpu.memory_space<vmem>>, %arg5: memref<5x16x24xf32, #tpu.memory_space<vmem>>, %arg6: memref<5x120x160xf32, #tpu.memory_space<vmem>>, %arg7: memref<1x80xf32, #tpu.memory_space<vmem>>, %arg8: memref<4x80x50xf32, #tpu.memory_space<vmem>>, %arg9: memref<1x50xf32, #tpu.memory_space<vmem>>, %arg10: memref<5x48x56xf32, #tpu.memory_space<vmem>>, %arg11: memref<5x28x240xf32, #tpu.memory_space<vmem>>, %arg12: memref<1x120xf32, #tpu.memory_space<vmem>>, %arg13: memref<5x16x24xf32, #tpu.memory_space<vmem>>, %arg14: memref<5x120x160xf32, #tpu.memory_space<vmem>>, %arg15: memref<1x80xf32, #tpu.memory_space<vmem>>, %arg16: memref<4x80x50xf32, #tpu.memory_space<vmem>>, %arg17: memref<1x50xf32, #tpu.memory_space<vmem>>, %arg18: memref<50x10xf32, #tpu.memory_space<vmem>>, %arg19: memref<1x10xf32, #tpu.memory_space<vmem>>, %arg20: memref<2x10xf32, #tpu.memory_space<vmem>>) attributes {dimension_semantics = [], scalar_prefetch = 0 : i64, scratch_operands = 0 : i64, tpu.core_type = #tpu.core_type<tc>} {
    %c0 = arith.constant 0 : index
    %c0_0 = arith.constant 0 : index
    %0 = vector.load %arg0[%c0, %c0_0] : memref<56x28xf32, #tpu.memory_space<vmem>>, vector<56x28xf32>
    %c0_1 = arith.constant 0 : index
    %c0_2 = arith.constant 0 : index
    %c0_3 = arith.constant 0 : index
    %1 = vector.load %arg2[%c0_1, %c0_2, %c0_3] : memref<5x48x56xf32, #tpu.memory_space<vmem>>, vector<1x48x56xf32>
    %2 = vector.shape_cast %1 : vector<1x48x56xf32> to vector<48x56xf32>
    %c0_4 = arith.constant 0 : index
    %c0_5 = arith.constant 0 : index
    %c0_6 = arith.constant 0 : index
    %3 = vector.load %arg3[%c0_4, %c0_5, %c0_6] : memref<5x28x240xf32, #tpu.memory_space<vmem>>, vector<1x28x240xf32>
    %4 = vector.shape_cast %3 : vector<1x28x240xf32> to vector<28x240xf32>
    %cst = arith.constant dense<0.000000e+00> : vector<56x240xf32>
    %5 = tpu.matmul %0, %4, %cst {dimension_numbers = #tpu.dot_dimension_numbers<[1], [0], [0], [1], [0, 0, 1, 1], [], []>} : vector<56x28xf32>, vector<28x240xf32>, vector<56x240xf32> -> vector<56x240xf32>
    %cst_7 = arith.constant dense<0.000000e+00> : vector<48x240xf32>
    %6 = tpu.matmul %2, %5, %cst_7 {dimension_numbers = #tpu.dot_dimension_numbers<[1], [0], [0], [1], [0, 0, 1, 1], [], []>} : vector<48x56xf32>, vector<56x240xf32>, vector<48x240xf32> -> vector<48x240xf32>
    %c1 = arith.constant 1 : index
    %c0_8 = arith.constant 0 : index
    %c0_9 = arith.constant 0 : index
    %7 = vector.load %arg2[%c1, %c0_8, %c0_9] : memref<5x48x56xf32, #tpu.memory_space<vmem>>, vector<1x48x56xf32>
    %8 = vector.shape_cast %7 : vector<1x48x56xf32> to vector<48x56xf32>
    %c1_10 = arith.constant 1 : index
    %c0_11 = arith.constant 0 : index
    %c0_12 = arith.constant 0 : index
    %9 = vector.load %arg3[%c1_10, %c0_11, %c0_12] : memref<5x28x240xf32, #tpu.memory_space<vmem>>, vector<1x28x240xf32>
    %10 = vector.shape_cast %9 : vector<1x28x240xf32> to vector<28x240xf32>
    %cst_13 = arith.constant dense<0.000000e+00> : vector<56x240xf32>
    %11 = tpu.matmul %0, %10, %cst_13 {dimension_numbers = #tpu.dot_dimension_numbers<[1], [0], [0], [1], [0, 0, 1, 1], [], []>} : vector<56x28xf32>, vector<28x240xf32>, vector<56x240xf32> -> vector<56x240xf32>
    %cst_14 = arith.constant dense<0.000000e+00> : vector<48x240xf32>
    %12 = tpu.matmul %8, %11, %cst_14 {dimension_numbers = #tpu.dot_dimension_numbers<[1], [0], [0], [1], [0, 0, 1, 1], [], []>} : vector<48x56xf32>, vector<56x240xf32>, vector<48x240xf32> -> vector<48x240xf32>
    %13 = arith.addf %6, %12 : vector<48x240xf32>
    %c2 = arith.constant 2 : index
    %c0_15 = arith.constant 0 : index
    %c0_16 = arith.constant 0 : index
    %14 = vector.load %arg2[%c2, %c0_15, %c0_16] : memref<5x48x56xf32, #tpu.memory_space<vmem>>, vector<1x48x56xf32>
    %15 = vector.shape_cast %14 : vector<1x48x56xf32> to vector<48x56xf32>
    %c2_17 = arith.constant 2 : index
    %c0_18 = arith.constant 0 : index
    %c0_19 = arith.constant 0 : index
    %16 = vector.load %arg3[%c2_17, %c0_18, %c0_19] : memref<5x28x240xf32, #tpu.memory_space<vmem>>, vector<1x28x240xf32>
    %17 = vector.shape_cast %16 : vector<1x28x240xf32> to vector<28x240xf32>
    %cst_20 = arith.constant dense<0.000000e+00> : vector<56x240xf32>
    %18 = tpu.matmul %0, %17, %cst_20 {dimension_numbers = #tpu.dot_dimension_numbers<[1], [0], [0], [1], [0, 0, 1, 1], [], []>} : vector<56x28xf32>, vector<28x240xf32>, vector<56x240xf32> -> vector<56x240xf32>
    %cst_21 = arith.constant dense<0.000000e+00> : vector<48x240xf32>
    %19 = tpu.matmul %15, %18, %cst_21 {dimension_numbers = #tpu.dot_dimension_numbers<[1], [0], [0], [1], [0, 0, 1, 1], [], []>} : vector<48x56xf32>, vector<56x240xf32>, vector<48x240xf32> -> vector<48x240xf32>
    %20 = arith.addf %13, %19 : vector<48x240xf32>
    %c3 = arith.constant 3 : index
    %c0_22 = arith.constant 0 : index
    %c0_23 = arith.constant 0 : index
    %21 = vector.load %arg2[%c3, %c0_22, %c0_23] : memref<5x48x56xf32, #tpu.memory_space<vmem>>, vector<1x48x56xf32>
    %22 = vector.shape_cast %21 : vector<1x48x56xf32> to vector<48x56xf32>
    %c3_24 = arith.constant 3 : index
    %c0_25 = arith.constant 0 : index
    %c0_26 = arith.constant 0 : index
    %23 = vector.load %arg3[%c3_24, %c0_25, %c0_26] : memref<5x28x240xf32, #tpu.memory_space<vmem>>, vector<1x28x240xf32>
    %24 = vector.shape_cast %23 : vector<1x28x240xf32> to vector<28x240xf32>
    %cst_27 = arith.constant dense<0.000000e+00> : vector<56x240xf32>
    %25 = tpu.matmul %0, %24, %cst_27 {dimension_numbers = #tpu.dot_dimension_numbers<[1], [0], [0], [1], [0, 0, 1, 1], [], []>} : vector<56x28xf32>, vector<28x240xf32>, vector<56x240xf32> -> vector<56x240xf32>
    %cst_28 = arith.constant dense<0.000000e+00> : vector<48x240xf32>
    %26 = tpu.matmul %22, %25, %cst_28 {dimension_numbers = #tpu.dot_dimension_numbers<[1], [0], [0], [1], [0, 0, 1, 1], [], []>} : vector<48x56xf32>, vector<56x240xf32>, vector<48x240xf32> -> vector<48x240xf32>
    %27 = arith.addf %20, %26 : vector<48x240xf32>
    %c4 = arith.constant 4 : index
    %c0_29 = arith.constant 0 : index
    %c0_30 = arith.constant 0 : index
    %28 = vector.load %arg2[%c4, %c0_29, %c0_30] : memref<5x48x56xf32, #tpu.memory_space<vmem>>, vector<1x48x56xf32>
    %29 = vector.shape_cast %28 : vector<1x48x56xf32> to vector<48x56xf32>
    %c4_31 = arith.constant 4 : index
    %c0_32 = arith.constant 0 : index
    %c0_33 = arith.constant 0 : index
    %30 = vector.load %arg3[%c4_31, %c0_32, %c0_33] : memref<5x28x240xf32, #tpu.memory_space<vmem>>, vector<1x28x240xf32>
    %31 = vector.shape_cast %30 : vector<1x28x240xf32> to vector<28x240xf32>
    %cst_34 = arith.constant dense<0.000000e+00> : vector<56x240xf32>
    %32 = tpu.matmul %0, %31, %cst_34 {dimension_numbers = #tpu.dot_dimension_numbers<[1], [0], [0], [1], [0, 0, 1, 1], [], []>} : vector<56x28xf32>, vector<28x240xf32>, vector<56x240xf32> -> vector<56x240xf32>
    %cst_35 = arith.constant dense<0.000000e+00> : vector<48x240xf32>
    %33 = tpu.matmul %29, %32, %cst_35 {dimension_numbers = #tpu.dot_dimension_numbers<[1], [0], [0], [1], [0, 0, 1, 1], [], []>} : vector<48x56xf32>, vector<56x240xf32>, vector<48x240xf32> -> vector<48x240xf32>
    %34 = arith.addf %27, %33 : vector<48x240xf32>
    %35 = vector.extract_strided_slice %34 {offsets = [0, 0], sizes = [48, 120], strides = [1, 1]} : vector<48x240xf32> to vector<48x120xf32>
    %36 = vector.extract_strided_slice %34 {offsets = [0, 120], sizes = [48, 120], strides = [1, 1]} : vector<48x240xf32> to vector<48x120xf32>
    %37 = arith.maximumf %35, %36 : vector<48x120xf32>
    %38 = vector.extract_strided_slice %37 {offsets = [0, 0], sizes = [24, 120], strides = [1, 1]} : vector<48x120xf32> to vector<24x120xf32>
    %39 = vector.extract_strided_slice %37 {offsets = [24, 0], sizes = [24, 120], strides = [1, 1]} : vector<48x120xf32> to vector<24x120xf32>
    %40 = arith.maximumf %38, %39 : vector<24x120xf32>
    %c0_36 = arith.constant 0 : index
    %c0_37 = arith.constant 0 : index
    %41 = vector.load %arg4[%c0_36, %c0_37] : memref<1x120xf32, #tpu.memory_space<vmem>>, vector<1x120xf32>
    %42 = vector.broadcast %41 : vector<1x120xf32> to vector<24x120xf32>
    %43 = arith.addf %40, %42 : vector<24x120xf32>
    %cst_38 = arith.constant 0.000000e+00 : f32
    %44 = vector.broadcast %cst_38 : f32 to vector<24x120xf32>
    %45 = arith.maximumf %43, %44 : vector<24x120xf32>
    %c0_39 = arith.constant 0 : index
    %c0_40 = arith.constant 0 : index
    %c0_41 = arith.constant 0 : index
    %46 = vector.load %arg5[%c0_39, %c0_40, %c0_41] : memref<5x16x24xf32, #tpu.memory_space<vmem>>, vector<1x16x24xf32>
    %47 = vector.shape_cast %46 : vector<1x16x24xf32> to vector<16x24xf32>
    %c0_42 = arith.constant 0 : index
    %c0_43 = arith.constant 0 : index
    %c0_44 = arith.constant 0 : index
    %48 = vector.load %arg6[%c0_42, %c0_43, %c0_44] : memref<5x120x160xf32, #tpu.memory_space<vmem>>, vector<1x120x160xf32>
    %49 = vector.shape_cast %48 : vector<1x120x160xf32> to vector<120x160xf32>
    %cst_45 = arith.constant dense<0.000000e+00> : vector<24x160xf32>
    %50 = tpu.matmul %45, %49, %cst_45 {dimension_numbers = #tpu.dot_dimension_numbers<[1], [0], [0], [1], [0, 0, 1, 1], [], []>} : vector<24x120xf32>, vector<120x160xf32>, vector<24x160xf32> -> vector<24x160xf32>
    %cst_46 = arith.constant dense<0.000000e+00> : vector<16x160xf32>
    %51 = tpu.matmul %47, %50, %cst_46 {dimension_numbers = #tpu.dot_dimension_numbers<[1], [0], [0], [1], [0, 0, 1, 1], [], []>} : vector<16x24xf32>, vector<24x160xf32>, vector<16x160xf32> -> vector<16x160xf32>
    %c1_47 = arith.constant 1 : index
    %c0_48 = arith.constant 0 : index
    %c0_49 = arith.constant 0 : index
    %52 = vector.load %arg5[%c1_47, %c0_48, %c0_49] : memref<5x16x24xf32, #tpu.memory_space<vmem>>, vector<1x16x24xf32>
    %53 = vector.shape_cast %52 : vector<1x16x24xf32> to vector<16x24xf32>
    %c1_50 = arith.constant 1 : index
    %c0_51 = arith.constant 0 : index
    %c0_52 = arith.constant 0 : index
    %54 = vector.load %arg6[%c1_50, %c0_51, %c0_52] : memref<5x120x160xf32, #tpu.memory_space<vmem>>, vector<1x120x160xf32>
    %55 = vector.shape_cast %54 : vector<1x120x160xf32> to vector<120x160xf32>
    %cst_53 = arith.constant dense<0.000000e+00> : vector<24x160xf32>
    %56 = tpu.matmul %45, %55, %cst_53 {dimension_numbers = #tpu.dot_dimension_numbers<[1], [0], [0], [1], [0, 0, 1, 1], [], []>} : vector<24x120xf32>, vector<120x160xf32>, vector<24x160xf32> -> vector<24x160xf32>
    %cst_54 = arith.constant dense<0.000000e+00> : vector<16x160xf32>
    %57 = tpu.matmul %53, %56, %cst_54 {dimension_numbers = #tpu.dot_dimension_numbers<[1], [0], [0], [1], [0, 0, 1, 1], [], []>} : vector<16x24xf32>, vector<24x160xf32>, vector<16x160xf32> -> vector<16x160xf32>
    %58 = arith.addf %51, %57 : vector<16x160xf32>
    %c2_55 = arith.constant 2 : index
    %c0_56 = arith.constant 0 : index
    %c0_57 = arith.constant 0 : index
    %59 = vector.load %arg5[%c2_55, %c0_56, %c0_57] : memref<5x16x24xf32, #tpu.memory_space<vmem>>, vector<1x16x24xf32>
    %60 = vector.shape_cast %59 : vector<1x16x24xf32> to vector<16x24xf32>
    %c2_58 = arith.constant 2 : index
    %c0_59 = arith.constant 0 : index
    %c0_60 = arith.constant 0 : index
    %61 = vector.load %arg6[%c2_58, %c0_59, %c0_60] : memref<5x120x160xf32, #tpu.memory_space<vmem>>, vector<1x120x160xf32>
    %62 = vector.shape_cast %61 : vector<1x120x160xf32> to vector<120x160xf32>
    %cst_61 = arith.constant dense<0.000000e+00> : vector<24x160xf32>
    %63 = tpu.matmul %45, %62, %cst_61 {dimension_numbers = #tpu.dot_dimension_numbers<[1], [0], [0], [1], [0, 0, 1, 1], [], []>} : vector<24x120xf32>, vector<120x160xf32>, vector<24x160xf32> -> vector<24x160xf32>
    %cst_62 = arith.constant dense<0.000000e+00> : vector<16x160xf32>
    %64 = tpu.matmul %60, %63, %cst_62 {dimension_numbers = #tpu.dot_dimension_numbers<[1], [0], [0], [1], [0, 0, 1, 1], [], []>} : vector<16x24xf32>, vector<24x160xf32>, vector<16x160xf32> -> vector<16x160xf32>
    %65 = arith.addf %58, %64 : vector<16x160xf32>
    %c3_63 = arith.constant 3 : index
    %c0_64 = arith.constant 0 : index
    %c0_65 = arith.constant 0 : index
    %66 = vector.load %arg5[%c3_63, %c0_64, %c0_65] : memref<5x16x24xf32, #tpu.memory_space<vmem>>, vector<1x16x24xf32>
    %67 = vector.shape_cast %66 : vector<1x16x24xf32> to vector<16x24xf32>
    %c3_66 = arith.constant 3 : index
    %c0_67 = arith.constant 0 : index
    %c0_68 = arith.constant 0 : index
    %68 = vector.load %arg6[%c3_66, %c0_67, %c0_68] : memref<5x120x160xf32, #tpu.memory_space<vmem>>, vector<1x120x160xf32>
    %69 = vector.shape_cast %68 : vector<1x120x160xf32> to vector<120x160xf32>
    %cst_69 = arith.constant dense<0.000000e+00> : vector<24x160xf32>
    %70 = tpu.matmul %45, %69, %cst_69 {dimension_numbers = #tpu.dot_dimension_numbers<[1], [0], [0], [1], [0, 0, 1, 1], [], []>} : vector<24x120xf32>, vector<120x160xf32>, vector<24x160xf32> -> vector<24x160xf32>
    %cst_70 = arith.constant dense<0.000000e+00> : vector<16x160xf32>
    %71 = tpu.matmul %67, %70, %cst_70 {dimension_numbers = #tpu.dot_dimension_numbers<[1], [0], [0], [1], [0, 0, 1, 1], [], []>} : vector<16x24xf32>, vector<24x160xf32>, vector<16x160xf32> -> vector<16x160xf32>
    %72 = arith.addf %65, %71 : vector<16x160xf32>
    %c4_71 = arith.constant 4 : index
    %c0_72 = arith.constant 0 : index
    %c0_73 = arith.constant 0 : index
    %73 = vector.load %arg5[%c4_71, %c0_72, %c0_73] : memref<5x16x24xf32, #tpu.memory_space<vmem>>, vector<1x16x24xf32>
    %74 = vector.shape_cast %73 : vector<1x16x24xf32> to vector<16x24xf32>
    %c4_74 = arith.constant 4 : index
    %c0_75 = arith.constant 0 : index
    %c0_76 = arith.constant 0 : index
    %75 = vector.load %arg6[%c4_74, %c0_75, %c0_76] : memref<5x120x160xf32, #tpu.memory_space<vmem>>, vector<1x120x160xf32>
    %76 = vector.shape_cast %75 : vector<1x120x160xf32> to vector<120x160xf32>
    %cst_77 = arith.constant dense<0.000000e+00> : vector<24x160xf32>
    %77 = tpu.matmul %45, %76, %cst_77 {dimension_numbers = #tpu.dot_dimension_numbers<[1], [0], [0], [1], [0, 0, 1, 1], [], []>} : vector<24x120xf32>, vector<120x160xf32>, vector<24x160xf32> -> vector<24x160xf32>
    %cst_78 = arith.constant dense<0.000000e+00> : vector<16x160xf32>
    %78 = tpu.matmul %74, %77, %cst_78 {dimension_numbers = #tpu.dot_dimension_numbers<[1], [0], [0], [1], [0, 0, 1, 1], [], []>} : vector<16x24xf32>, vector<24x160xf32>, vector<16x160xf32> -> vector<16x160xf32>
    %79 = arith.addf %72, %78 : vector<16x160xf32>
    %80 = vector.extract_strided_slice %79 {offsets = [0, 0], sizes = [16, 80], strides = [1, 1]} : vector<16x160xf32> to vector<16x80xf32>
    %81 = vector.extract_strided_slice %79 {offsets = [0, 80], sizes = [16, 80], strides = [1, 1]} : vector<16x160xf32> to vector<16x80xf32>
    %82 = arith.maximumf %80, %81 : vector<16x80xf32>
    %83 = vector.extract_strided_slice %82 {offsets = [0, 0], sizes = [8, 80], strides = [1, 1]} : vector<16x80xf32> to vector<8x80xf32>
    %84 = vector.extract_strided_slice %82 {offsets = [8, 0], sizes = [8, 80], strides = [1, 1]} : vector<16x80xf32> to vector<8x80xf32>
    %85 = arith.maximumf %83, %84 : vector<8x80xf32>
    %c0_79 = arith.constant 0 : index
    %c0_80 = arith.constant 0 : index
    %86 = vector.load %arg7[%c0_79, %c0_80] : memref<1x80xf32, #tpu.memory_space<vmem>>, vector<1x80xf32>
    %87 = vector.broadcast %86 : vector<1x80xf32> to vector<8x80xf32>
    %88 = arith.addf %85, %87 : vector<8x80xf32>
    %cst_81 = arith.constant 0.000000e+00 : f32
    %89 = vector.broadcast %cst_81 : f32 to vector<8x80xf32>
    %90 = arith.maximumf %88, %89 : vector<8x80xf32>
    %91 = vector.extract_strided_slice %90 {offsets = [0, 0], sizes = [2, 80], strides = [1, 1]} : vector<8x80xf32> to vector<2x80xf32>
    %c0_82 = arith.constant 0 : index
    %c0_83 = arith.constant 0 : index
    %c0_84 = arith.constant 0 : index
    %92 = vector.load %arg8[%c0_82, %c0_83, %c0_84] : memref<4x80x50xf32, #tpu.memory_space<vmem>>, vector<1x80x50xf32>
    %93 = vector.shape_cast %92 : vector<1x80x50xf32> to vector<80x50xf32>
    %cst_85 = arith.constant dense<0.000000e+00> : vector<2x50xf32>
    %94 = tpu.matmul %91, %93, %cst_85 {dimension_numbers = #tpu.dot_dimension_numbers<[1], [0], [0], [1], [0, 0, 1, 1], [], []>} : vector<2x80xf32>, vector<80x50xf32>, vector<2x50xf32> -> vector<2x50xf32>
    %95 = vector.extract_strided_slice %90 {offsets = [2, 0], sizes = [2, 80], strides = [1, 1]} : vector<8x80xf32> to vector<2x80xf32>
    %c1_86 = arith.constant 1 : index
    %c0_87 = arith.constant 0 : index
    %c0_88 = arith.constant 0 : index
    %96 = vector.load %arg8[%c1_86, %c0_87, %c0_88] : memref<4x80x50xf32, #tpu.memory_space<vmem>>, vector<1x80x50xf32>
    %97 = vector.shape_cast %96 : vector<1x80x50xf32> to vector<80x50xf32>
    %cst_89 = arith.constant dense<0.000000e+00> : vector<2x50xf32>
    %98 = tpu.matmul %95, %97, %cst_89 {dimension_numbers = #tpu.dot_dimension_numbers<[1], [0], [0], [1], [0, 0, 1, 1], [], []>} : vector<2x80xf32>, vector<80x50xf32>, vector<2x50xf32> -> vector<2x50xf32>
    %99 = arith.addf %94, %98 : vector<2x50xf32>
    %100 = vector.extract_strided_slice %90 {offsets = [4, 0], sizes = [2, 80], strides = [1, 1]} : vector<8x80xf32> to vector<2x80xf32>
    %c2_90 = arith.constant 2 : index
    %c0_91 = arith.constant 0 : index
    %c0_92 = arith.constant 0 : index
    %101 = vector.load %arg8[%c2_90, %c0_91, %c0_92] : memref<4x80x50xf32, #tpu.memory_space<vmem>>, vector<1x80x50xf32>
    %102 = vector.shape_cast %101 : vector<1x80x50xf32> to vector<80x50xf32>
    %cst_93 = arith.constant dense<0.000000e+00> : vector<2x50xf32>
    %103 = tpu.matmul %100, %102, %cst_93 {dimension_numbers = #tpu.dot_dimension_numbers<[1], [0], [0], [1], [0, 0, 1, 1], [], []>} : vector<2x80xf32>, vector<80x50xf32>, vector<2x50xf32> -> vector<2x50xf32>
    %104 = arith.addf %99, %103 : vector<2x50xf32>
    %105 = vector.extract_strided_slice %90 {offsets = [6, 0], sizes = [2, 80], strides = [1, 1]} : vector<8x80xf32> to vector<2x80xf32>
    %c3_94 = arith.constant 3 : index
    %c0_95 = arith.constant 0 : index
    %c0_96 = arith.constant 0 : index
    %106 = vector.load %arg8[%c3_94, %c0_95, %c0_96] : memref<4x80x50xf32, #tpu.memory_space<vmem>>, vector<1x80x50xf32>
    %107 = vector.shape_cast %106 : vector<1x80x50xf32> to vector<80x50xf32>
    %cst_97 = arith.constant dense<0.000000e+00> : vector<2x50xf32>
    %108 = tpu.matmul %105, %107, %cst_97 {dimension_numbers = #tpu.dot_dimension_numbers<[1], [0], [0], [1], [0, 0, 1, 1], [], []>} : vector<2x80xf32>, vector<80x50xf32>, vector<2x50xf32> -> vector<2x50xf32>
    %109 = arith.addf %104, %108 : vector<2x50xf32>
    %c0_98 = arith.constant 0 : index
    %c0_99 = arith.constant 0 : index
    %110 = vector.load %arg9[%c0_98, %c0_99] : memref<1x50xf32, #tpu.memory_space<vmem>>, vector<1x50xf32>
    %111 = vector.broadcast %110 : vector<1x50xf32> to vector<2x50xf32>
    %112 = arith.addf %109, %111 : vector<2x50xf32>
    %c0_100 = arith.constant 0 : index
    %c0_101 = arith.constant 0 : index
    %113 = vector.load %arg1[%c0_100, %c0_101] : memref<56x28xf32, #tpu.memory_space<vmem>>, vector<56x28xf32>
    %c0_102 = arith.constant 0 : index
    %c0_103 = arith.constant 0 : index
    %c0_104 = arith.constant 0 : index
    %114 = vector.load %arg10[%c0_102, %c0_103, %c0_104] : memref<5x48x56xf32, #tpu.memory_space<vmem>>, vector<1x48x56xf32>
    %115 = vector.shape_cast %114 : vector<1x48x56xf32> to vector<48x56xf32>
    %c0_105 = arith.constant 0 : index
    %c0_106 = arith.constant 0 : index
    %c0_107 = arith.constant 0 : index
    %116 = vector.load %arg11[%c0_105, %c0_106, %c0_107] : memref<5x28x240xf32, #tpu.memory_space<vmem>>, vector<1x28x240xf32>
    %117 = vector.shape_cast %116 : vector<1x28x240xf32> to vector<28x240xf32>
    %cst_108 = arith.constant dense<0.000000e+00> : vector<56x240xf32>
    %118 = tpu.matmul %113, %117, %cst_108 {dimension_numbers = #tpu.dot_dimension_numbers<[1], [0], [0], [1], [0, 0, 1, 1], [], []>} : vector<56x28xf32>, vector<28x240xf32>, vector<56x240xf32> -> vector<56x240xf32>
    %cst_109 = arith.constant dense<0.000000e+00> : vector<48x240xf32>
    %119 = tpu.matmul %115, %118, %cst_109 {dimension_numbers = #tpu.dot_dimension_numbers<[1], [0], [0], [1], [0, 0, 1, 1], [], []>} : vector<48x56xf32>, vector<56x240xf32>, vector<48x240xf32> -> vector<48x240xf32>
    %c1_110 = arith.constant 1 : index
    %c0_111 = arith.constant 0 : index
    %c0_112 = arith.constant 0 : index
    %120 = vector.load %arg10[%c1_110, %c0_111, %c0_112] : memref<5x48x56xf32, #tpu.memory_space<vmem>>, vector<1x48x56xf32>
    %121 = vector.shape_cast %120 : vector<1x48x56xf32> to vector<48x56xf32>
    %c1_113 = arith.constant 1 : index
    %c0_114 = arith.constant 0 : index
    %c0_115 = arith.constant 0 : index
    %122 = vector.load %arg11[%c1_113, %c0_114, %c0_115] : memref<5x28x240xf32, #tpu.memory_space<vmem>>, vector<1x28x240xf32>
    %123 = vector.shape_cast %122 : vector<1x28x240xf32> to vector<28x240xf32>
    %cst_116 = arith.constant dense<0.000000e+00> : vector<56x240xf32>
    %124 = tpu.matmul %113, %123, %cst_116 {dimension_numbers = #tpu.dot_dimension_numbers<[1], [0], [0], [1], [0, 0, 1, 1], [], []>} : vector<56x28xf32>, vector<28x240xf32>, vector<56x240xf32> -> vector<56x240xf32>
    %cst_117 = arith.constant dense<0.000000e+00> : vector<48x240xf32>
    %125 = tpu.matmul %121, %124, %cst_117 {dimension_numbers = #tpu.dot_dimension_numbers<[1], [0], [0], [1], [0, 0, 1, 1], [], []>} : vector<48x56xf32>, vector<56x240xf32>, vector<48x240xf32> -> vector<48x240xf32>
    %126 = arith.addf %119, %125 : vector<48x240xf32>
    %c2_118 = arith.constant 2 : index
    %c0_119 = arith.constant 0 : index
    %c0_120 = arith.constant 0 : index
    %127 = vector.load %arg10[%c2_118, %c0_119, %c0_120] : memref<5x48x56xf32, #tpu.memory_space<vmem>>, vector<1x48x56xf32>
    %128 = vector.shape_cast %127 : vector<1x48x56xf32> to vector<48x56xf32>
    %c2_121 = arith.constant 2 : index
    %c0_122 = arith.constant 0 : index
    %c0_123 = arith.constant 0 : index
    %129 = vector.load %arg11[%c2_121, %c0_122, %c0_123] : memref<5x28x240xf32, #tpu.memory_space<vmem>>, vector<1x28x240xf32>
    %130 = vector.shape_cast %129 : vector<1x28x240xf32> to vector<28x240xf32>
    %cst_124 = arith.constant dense<0.000000e+00> : vector<56x240xf32>
    %131 = tpu.matmul %113, %130, %cst_124 {dimension_numbers = #tpu.dot_dimension_numbers<[1], [0], [0], [1], [0, 0, 1, 1], [], []>} : vector<56x28xf32>, vector<28x240xf32>, vector<56x240xf32> -> vector<56x240xf32>
    %cst_125 = arith.constant dense<0.000000e+00> : vector<48x240xf32>
    %132 = tpu.matmul %128, %131, %cst_125 {dimension_numbers = #tpu.dot_dimension_numbers<[1], [0], [0], [1], [0, 0, 1, 1], [], []>} : vector<48x56xf32>, vector<56x240xf32>, vector<48x240xf32> -> vector<48x240xf32>
    %133 = arith.addf %126, %132 : vector<48x240xf32>
    %c3_126 = arith.constant 3 : index
    %c0_127 = arith.constant 0 : index
    %c0_128 = arith.constant 0 : index
    %134 = vector.load %arg10[%c3_126, %c0_127, %c0_128] : memref<5x48x56xf32, #tpu.memory_space<vmem>>, vector<1x48x56xf32>
    %135 = vector.shape_cast %134 : vector<1x48x56xf32> to vector<48x56xf32>
    %c3_129 = arith.constant 3 : index
    %c0_130 = arith.constant 0 : index
    %c0_131 = arith.constant 0 : index
    %136 = vector.load %arg11[%c3_129, %c0_130, %c0_131] : memref<5x28x240xf32, #tpu.memory_space<vmem>>, vector<1x28x240xf32>
    %137 = vector.shape_cast %136 : vector<1x28x240xf32> to vector<28x240xf32>
    %cst_132 = arith.constant dense<0.000000e+00> : vector<56x240xf32>
    %138 = tpu.matmul %113, %137, %cst_132 {dimension_numbers = #tpu.dot_dimension_numbers<[1], [0], [0], [1], [0, 0, 1, 1], [], []>} : vector<56x28xf32>, vector<28x240xf32>, vector<56x240xf32> -> vector<56x240xf32>
    %cst_133 = arith.constant dense<0.000000e+00> : vector<48x240xf32>
    %139 = tpu.matmul %135, %138, %cst_133 {dimension_numbers = #tpu.dot_dimension_numbers<[1], [0], [0], [1], [0, 0, 1, 1], [], []>} : vector<48x56xf32>, vector<56x240xf32>, vector<48x240xf32> -> vector<48x240xf32>
    %140 = arith.addf %133, %139 : vector<48x240xf32>
    %c4_134 = arith.constant 4 : index
    %c0_135 = arith.constant 0 : index
    %c0_136 = arith.constant 0 : index
    %141 = vector.load %arg10[%c4_134, %c0_135, %c0_136] : memref<5x48x56xf32, #tpu.memory_space<vmem>>, vector<1x48x56xf32>
    %142 = vector.shape_cast %141 : vector<1x48x56xf32> to vector<48x56xf32>
    %c4_137 = arith.constant 4 : index
    %c0_138 = arith.constant 0 : index
    %c0_139 = arith.constant 0 : index
    %143 = vector.load %arg11[%c4_137, %c0_138, %c0_139] : memref<5x28x240xf32, #tpu.memory_space<vmem>>, vector<1x28x240xf32>
    %144 = vector.shape_cast %143 : vector<1x28x240xf32> to vector<28x240xf32>
    %cst_140 = arith.constant dense<0.000000e+00> : vector<56x240xf32>
    %145 = tpu.matmul %113, %144, %cst_140 {dimension_numbers = #tpu.dot_dimension_numbers<[1], [0], [0], [1], [0, 0, 1, 1], [], []>} : vector<56x28xf32>, vector<28x240xf32>, vector<56x240xf32> -> vector<56x240xf32>
    %cst_141 = arith.constant dense<0.000000e+00> : vector<48x240xf32>
    %146 = tpu.matmul %142, %145, %cst_141 {dimension_numbers = #tpu.dot_dimension_numbers<[1], [0], [0], [1], [0, 0, 1, 1], [], []>} : vector<48x56xf32>, vector<56x240xf32>, vector<48x240xf32> -> vector<48x240xf32>
    %147 = arith.addf %140, %146 : vector<48x240xf32>
    %148 = vector.extract_strided_slice %147 {offsets = [0, 0], sizes = [48, 120], strides = [1, 1]} : vector<48x240xf32> to vector<48x120xf32>
    %149 = vector.extract_strided_slice %147 {offsets = [0, 120], sizes = [48, 120], strides = [1, 1]} : vector<48x240xf32> to vector<48x120xf32>
    %150 = arith.maximumf %148, %149 : vector<48x120xf32>
    %151 = vector.extract_strided_slice %150 {offsets = [0, 0], sizes = [24, 120], strides = [1, 1]} : vector<48x120xf32> to vector<24x120xf32>
    %152 = vector.extract_strided_slice %150 {offsets = [24, 0], sizes = [24, 120], strides = [1, 1]} : vector<48x120xf32> to vector<24x120xf32>
    %153 = arith.maximumf %151, %152 : vector<24x120xf32>
    %c0_142 = arith.constant 0 : index
    %c0_143 = arith.constant 0 : index
    %154 = vector.load %arg12[%c0_142, %c0_143] : memref<1x120xf32, #tpu.memory_space<vmem>>, vector<1x120xf32>
    %155 = vector.broadcast %154 : vector<1x120xf32> to vector<24x120xf32>
    %156 = arith.addf %153, %155 : vector<24x120xf32>
    %cst_144 = arith.constant 0.000000e+00 : f32
    %157 = vector.broadcast %cst_144 : f32 to vector<24x120xf32>
    %158 = arith.maximumf %156, %157 : vector<24x120xf32>
    %c0_145 = arith.constant 0 : index
    %c0_146 = arith.constant 0 : index
    %c0_147 = arith.constant 0 : index
    %159 = vector.load %arg13[%c0_145, %c0_146, %c0_147] : memref<5x16x24xf32, #tpu.memory_space<vmem>>, vector<1x16x24xf32>
    %160 = vector.shape_cast %159 : vector<1x16x24xf32> to vector<16x24xf32>
    %c0_148 = arith.constant 0 : index
    %c0_149 = arith.constant 0 : index
    %c0_150 = arith.constant 0 : index
    %161 = vector.load %arg14[%c0_148, %c0_149, %c0_150] : memref<5x120x160xf32, #tpu.memory_space<vmem>>, vector<1x120x160xf32>
    %162 = vector.shape_cast %161 : vector<1x120x160xf32> to vector<120x160xf32>
    %cst_151 = arith.constant dense<0.000000e+00> : vector<24x160xf32>
    %163 = tpu.matmul %158, %162, %cst_151 {dimension_numbers = #tpu.dot_dimension_numbers<[1], [0], [0], [1], [0, 0, 1, 1], [], []>} : vector<24x120xf32>, vector<120x160xf32>, vector<24x160xf32> -> vector<24x160xf32>
    %cst_152 = arith.constant dense<0.000000e+00> : vector<16x160xf32>
    %164 = tpu.matmul %160, %163, %cst_152 {dimension_numbers = #tpu.dot_dimension_numbers<[1], [0], [0], [1], [0, 0, 1, 1], [], []>} : vector<16x24xf32>, vector<24x160xf32>, vector<16x160xf32> -> vector<16x160xf32>
    %c1_153 = arith.constant 1 : index
    %c0_154 = arith.constant 0 : index
    %c0_155 = arith.constant 0 : index
    %165 = vector.load %arg13[%c1_153, %c0_154, %c0_155] : memref<5x16x24xf32, #tpu.memory_space<vmem>>, vector<1x16x24xf32>
    %166 = vector.shape_cast %165 : vector<1x16x24xf32> to vector<16x24xf32>
    %c1_156 = arith.constant 1 : index
    %c0_157 = arith.constant 0 : index
    %c0_158 = arith.constant 0 : index
    %167 = vector.load %arg14[%c1_156, %c0_157, %c0_158] : memref<5x120x160xf32, #tpu.memory_space<vmem>>, vector<1x120x160xf32>
    %168 = vector.shape_cast %167 : vector<1x120x160xf32> to vector<120x160xf32>
    %cst_159 = arith.constant dense<0.000000e+00> : vector<24x160xf32>
    %169 = tpu.matmul %158, %168, %cst_159 {dimension_numbers = #tpu.dot_dimension_numbers<[1], [0], [0], [1], [0, 0, 1, 1], [], []>} : vector<24x120xf32>, vector<120x160xf32>, vector<24x160xf32> -> vector<24x160xf32>
    %cst_160 = arith.constant dense<0.000000e+00> : vector<16x160xf32>
    %170 = tpu.matmul %166, %169, %cst_160 {dimension_numbers = #tpu.dot_dimension_numbers<[1], [0], [0], [1], [0, 0, 1, 1], [], []>} : vector<16x24xf32>, vector<24x160xf32>, vector<16x160xf32> -> vector<16x160xf32>
    %171 = arith.addf %164, %170 : vector<16x160xf32>
    %c2_161 = arith.constant 2 : index
    %c0_162 = arith.constant 0 : index
    %c0_163 = arith.constant 0 : index
    %172 = vector.load %arg13[%c2_161, %c0_162, %c0_163] : memref<5x16x24xf32, #tpu.memory_space<vmem>>, vector<1x16x24xf32>
    %173 = vector.shape_cast %172 : vector<1x16x24xf32> to vector<16x24xf32>
    %c2_164 = arith.constant 2 : index
    %c0_165 = arith.constant 0 : index
    %c0_166 = arith.constant 0 : index
    %174 = vector.load %arg14[%c2_164, %c0_165, %c0_166] : memref<5x120x160xf32, #tpu.memory_space<vmem>>, vector<1x120x160xf32>
    %175 = vector.shape_cast %174 : vector<1x120x160xf32> to vector<120x160xf32>
    %cst_167 = arith.constant dense<0.000000e+00> : vector<24x160xf32>
    %176 = tpu.matmul %158, %175, %cst_167 {dimension_numbers = #tpu.dot_dimension_numbers<[1], [0], [0], [1], [0, 0, 1, 1], [], []>} : vector<24x120xf32>, vector<120x160xf32>, vector<24x160xf32> -> vector<24x160xf32>
    %cst_168 = arith.constant dense<0.000000e+00> : vector<16x160xf32>
    %177 = tpu.matmul %173, %176, %cst_168 {dimension_numbers = #tpu.dot_dimension_numbers<[1], [0], [0], [1], [0, 0, 1, 1], [], []>} : vector<16x24xf32>, vector<24x160xf32>, vector<16x160xf32> -> vector<16x160xf32>
    %178 = arith.addf %171, %177 : vector<16x160xf32>
    %c3_169 = arith.constant 3 : index
    %c0_170 = arith.constant 0 : index
    %c0_171 = arith.constant 0 : index
    %179 = vector.load %arg13[%c3_169, %c0_170, %c0_171] : memref<5x16x24xf32, #tpu.memory_space<vmem>>, vector<1x16x24xf32>
    %180 = vector.shape_cast %179 : vector<1x16x24xf32> to vector<16x24xf32>
    %c3_172 = arith.constant 3 : index
    %c0_173 = arith.constant 0 : index
    %c0_174 = arith.constant 0 : index
    %181 = vector.load %arg14[%c3_172, %c0_173, %c0_174] : memref<5x120x160xf32, #tpu.memory_space<vmem>>, vector<1x120x160xf32>
    %182 = vector.shape_cast %181 : vector<1x120x160xf32> to vector<120x160xf32>
    %cst_175 = arith.constant dense<0.000000e+00> : vector<24x160xf32>
    %183 = tpu.matmul %158, %182, %cst_175 {dimension_numbers = #tpu.dot_dimension_numbers<[1], [0], [0], [1], [0, 0, 1, 1], [], []>} : vector<24x120xf32>, vector<120x160xf32>, vector<24x160xf32> -> vector<24x160xf32>
    %cst_176 = arith.constant dense<0.000000e+00> : vector<16x160xf32>
    %184 = tpu.matmul %180, %183, %cst_176 {dimension_numbers = #tpu.dot_dimension_numbers<[1], [0], [0], [1], [0, 0, 1, 1], [], []>} : vector<16x24xf32>, vector<24x160xf32>, vector<16x160xf32> -> vector<16x160xf32>
    %185 = arith.addf %178, %184 : vector<16x160xf32>
    %c4_177 = arith.constant 4 : index
    %c0_178 = arith.constant 0 : index
    %c0_179 = arith.constant 0 : index
    %186 = vector.load %arg13[%c4_177, %c0_178, %c0_179] : memref<5x16x24xf32, #tpu.memory_space<vmem>>, vector<1x16x24xf32>
    %187 = vector.shape_cast %186 : vector<1x16x24xf32> to vector<16x24xf32>
    %c4_180 = arith.constant 4 : index
    %c0_181 = arith.constant 0 : index
    %c0_182 = arith.constant 0 : index
    %188 = vector.load %arg14[%c4_180, %c0_181, %c0_182] : memref<5x120x160xf32, #tpu.memory_space<vmem>>, vector<1x120x160xf32>
    %189 = vector.shape_cast %188 : vector<1x120x160xf32> to vector<120x160xf32>
    %cst_183 = arith.constant dense<0.000000e+00> : vector<24x160xf32>
    %190 = tpu.matmul %158, %189, %cst_183 {dimension_numbers = #tpu.dot_dimension_numbers<[1], [0], [0], [1], [0, 0, 1, 1], [], []>} : vector<24x120xf32>, vector<120x160xf32>, vector<24x160xf32> -> vector<24x160xf32>
    %cst_184 = arith.constant dense<0.000000e+00> : vector<16x160xf32>
    %191 = tpu.matmul %187, %190, %cst_184 {dimension_numbers = #tpu.dot_dimension_numbers<[1], [0], [0], [1], [0, 0, 1, 1], [], []>} : vector<16x24xf32>, vector<24x160xf32>, vector<16x160xf32> -> vector<16x160xf32>
    %192 = arith.addf %185, %191 : vector<16x160xf32>
    %193 = vector.extract_strided_slice %192 {offsets = [0, 0], sizes = [16, 80], strides = [1, 1]} : vector<16x160xf32> to vector<16x80xf32>
    %194 = vector.extract_strided_slice %192 {offsets = [0, 80], sizes = [16, 80], strides = [1, 1]} : vector<16x160xf32> to vector<16x80xf32>
    %195 = arith.maximumf %193, %194 : vector<16x80xf32>
    %196 = vector.extract_strided_slice %195 {offsets = [0, 0], sizes = [8, 80], strides = [1, 1]} : vector<16x80xf32> to vector<8x80xf32>
    %197 = vector.extract_strided_slice %195 {offsets = [8, 0], sizes = [8, 80], strides = [1, 1]} : vector<16x80xf32> to vector<8x80xf32>
    %198 = arith.maximumf %196, %197 : vector<8x80xf32>
    %c0_185 = arith.constant 0 : index
    %c0_186 = arith.constant 0 : index
    %199 = vector.load %arg15[%c0_185, %c0_186] : memref<1x80xf32, #tpu.memory_space<vmem>>, vector<1x80xf32>
    %200 = vector.broadcast %199 : vector<1x80xf32> to vector<8x80xf32>
    %201 = arith.addf %198, %200 : vector<8x80xf32>
    %cst_187 = arith.constant 0.000000e+00 : f32
    %202 = vector.broadcast %cst_187 : f32 to vector<8x80xf32>
    %203 = arith.maximumf %201, %202 : vector<8x80xf32>
    %204 = vector.extract_strided_slice %203 {offsets = [0, 0], sizes = [2, 80], strides = [1, 1]} : vector<8x80xf32> to vector<2x80xf32>
    %c0_188 = arith.constant 0 : index
    %c0_189 = arith.constant 0 : index
    %c0_190 = arith.constant 0 : index
    %205 = vector.load %arg16[%c0_188, %c0_189, %c0_190] : memref<4x80x50xf32, #tpu.memory_space<vmem>>, vector<1x80x50xf32>
    %206 = vector.shape_cast %205 : vector<1x80x50xf32> to vector<80x50xf32>
    %cst_191 = arith.constant dense<0.000000e+00> : vector<2x50xf32>
    %207 = tpu.matmul %204, %206, %cst_191 {dimension_numbers = #tpu.dot_dimension_numbers<[1], [0], [0], [1], [0, 0, 1, 1], [], []>} : vector<2x80xf32>, vector<80x50xf32>, vector<2x50xf32> -> vector<2x50xf32>
    %208 = vector.extract_strided_slice %203 {offsets = [2, 0], sizes = [2, 80], strides = [1, 1]} : vector<8x80xf32> to vector<2x80xf32>
    %c1_192 = arith.constant 1 : index
    %c0_193 = arith.constant 0 : index
    %c0_194 = arith.constant 0 : index
    %209 = vector.load %arg16[%c1_192, %c0_193, %c0_194] : memref<4x80x50xf32, #tpu.memory_space<vmem>>, vector<1x80x50xf32>
    %210 = vector.shape_cast %209 : vector<1x80x50xf32> to vector<80x50xf32>
    %cst_195 = arith.constant dense<0.000000e+00> : vector<2x50xf32>
    %211 = tpu.matmul %208, %210, %cst_195 {dimension_numbers = #tpu.dot_dimension_numbers<[1], [0], [0], [1], [0, 0, 1, 1], [], []>} : vector<2x80xf32>, vector<80x50xf32>, vector<2x50xf32> -> vector<2x50xf32>
    %212 = arith.addf %207, %211 : vector<2x50xf32>
    %213 = vector.extract_strided_slice %203 {offsets = [4, 0], sizes = [2, 80], strides = [1, 1]} : vector<8x80xf32> to vector<2x80xf32>
    %c2_196 = arith.constant 2 : index
    %c0_197 = arith.constant 0 : index
    %c0_198 = arith.constant 0 : index
    %214 = vector.load %arg16[%c2_196, %c0_197, %c0_198] : memref<4x80x50xf32, #tpu.memory_space<vmem>>, vector<1x80x50xf32>
    %215 = vector.shape_cast %214 : vector<1x80x50xf32> to vector<80x50xf32>
    %cst_199 = arith.constant dense<0.000000e+00> : vector<2x50xf32>
    %216 = tpu.matmul %213, %215, %cst_199 {dimension_numbers = #tpu.dot_dimension_numbers<[1], [0], [0], [1], [0, 0, 1, 1], [], []>} : vector<2x80xf32>, vector<80x50xf32>, vector<2x50xf32> -> vector<2x50xf32>
    %217 = arith.addf %212, %216 : vector<2x50xf32>
    %218 = vector.extract_strided_slice %203 {offsets = [6, 0], sizes = [2, 80], strides = [1, 1]} : vector<8x80xf32> to vector<2x80xf32>
    %c3_200 = arith.constant 3 : index
    %c0_201 = arith.constant 0 : index
    %c0_202 = arith.constant 0 : index
    %219 = vector.load %arg16[%c3_200, %c0_201, %c0_202] : memref<4x80x50xf32, #tpu.memory_space<vmem>>, vector<1x80x50xf32>
    %220 = vector.shape_cast %219 : vector<1x80x50xf32> to vector<80x50xf32>
    %cst_203 = arith.constant dense<0.000000e+00> : vector<2x50xf32>
    %221 = tpu.matmul %218, %220, %cst_203 {dimension_numbers = #tpu.dot_dimension_numbers<[1], [0], [0], [1], [0, 0, 1, 1], [], []>} : vector<2x80xf32>, vector<80x50xf32>, vector<2x50xf32> -> vector<2x50xf32>
    %222 = arith.addf %217, %221 : vector<2x50xf32>
    %c0_204 = arith.constant 0 : index
    %c0_205 = arith.constant 0 : index
    %223 = vector.load %arg17[%c0_204, %c0_205] : memref<1x50xf32, #tpu.memory_space<vmem>>, vector<1x50xf32>
    %224 = vector.broadcast %223 : vector<1x50xf32> to vector<2x50xf32>
    %225 = arith.addf %222, %224 : vector<2x50xf32>
    %226 = arith.addf %112, %225 : vector<2x50xf32>
    %cst_206 = arith.constant 5.000000e-01 : f32
    %227 = vector.broadcast %cst_206 : f32 to vector<2x50xf32>
    %228 = arith.mulf %226, %227 : vector<2x50xf32>
    %c0_207 = arith.constant 0 : index
    %c0_208 = arith.constant 0 : index
    %229 = vector.load %arg18[%c0_207, %c0_208] : memref<50x10xf32, #tpu.memory_space<vmem>>, vector<50x10xf32>
    %cst_209 = arith.constant dense<0.000000e+00> : vector<2x10xf32>
    %230 = tpu.matmul %228, %229, %cst_209 {dimension_numbers = #tpu.dot_dimension_numbers<[1], [0], [0], [1], [0, 0, 1, 1], [], []>} : vector<2x50xf32>, vector<50x10xf32>, vector<2x10xf32> -> vector<2x10xf32>
    %c0_210 = arith.constant 0 : index
    %c0_211 = arith.constant 0 : index
    %231 = vector.load %arg19[%c0_210, %c0_211] : memref<1x10xf32, #tpu.memory_space<vmem>>, vector<1x10xf32>
    %232 = vector.broadcast %231 : vector<1x10xf32> to vector<2x10xf32>
    %233 = arith.addf %230, %232 : vector<2x10xf32>
    %cst_212 = arith.constant dense<0xFF800000> : vector<2xf32>
    %234 = vector.multi_reduction <maximumf>, %233, %cst_212 [1] : vector<2x10xf32> to vector<2xf32>
    %235 = vector.shape_cast %234 : vector<2xf32> to vector<2x1xf32>
    %236 = vector.broadcast %235 : vector<2x1xf32> to vector<2x10xf32>
    %237 = arith.subf %233, %236 : vector<2x10xf32>
    %238 = math.exp %237 : vector<2x10xf32>
    %cst_213 = arith.constant dense<0.000000e+00> : vector<2xf32>
    %239 = vector.multi_reduction <add>, %238, %cst_213 [1] : vector<2x10xf32> to vector<2xf32>
    %240 = vector.shape_cast %239 : vector<2xf32> to vector<2x1xf32>
    %241 = math.log %240 : vector<2x1xf32>
    %242 = vector.broadcast %241 : vector<2x1xf32> to vector<2x10xf32>
    %243 = arith.subf %237, %242 : vector<2x10xf32>
    %c0_214 = arith.constant 0 : index
    %c0_215 = arith.constant 0 : index
    %244 = vector.load %arg20[%c0_214, %c0_215] : memref<2x10xf32, #tpu.memory_space<vmem>>, vector<2x10xf32>
    tpu.vector_store %arg20[%c0_214, %c0_215], %243 {strides = array<i32>} : memref<2x10xf32, #tpu.memory_space<vmem>>, vector<2x10xf32>,
    return
  }
}

</mosaic_0001>

<bundles_post_ra>
// kernel: mmnet_forward.1
= control target key start
LH: loop header
LB: loop body
LE: loop exit
PB: predicated region body
PF: predicated region fallthrough
CT: control target
= control target key end

     0   :  { %s10121_s0 = inlined_call_operand.vmem [shape: f32[56,28], index: 0, kind: input, shape index: {}]   ;;  %s10122_s1 = inlined_call_operand.vmem [shape: f32[56,28], index: 1, kind: input, shape index: {}]   ;;  %s10123_s2 = inlined_call_operand.vmem [shape: f32[5,48,56], index: 2, kind: input, shape index: {}]   ;;  %s10124_s3 = inlined_call_operand.vmem [shape: f32[5,28,240], index: 3, kind: input, shape index: {}]   ;;  %s10125_s4 = inlined_call_operand.vmem [shape: f32[1,120], index: 4, kind: input, shape index: {}]   ;;  %s10126_s5 = inlined_call_operand.vmem [shape: f32[5,16,24], index: 5, kind: input, shape index: {}]   ;;  %s10127_s6 = inlined_call_operand.vmem [shape: f32[5,120,160], index: 6, kind: input, shape index: {}]   ;;  %s10128_s7 = inlined_call_operand.vmem [shape: f32[1,80], index: 7, kind: input, shape index: {}]   ;;  %s10129_s8 = inlined_call_operand.vmem [shape: f32[4,80,50], index: 8, kind: input, shape index: {}]   ;;  %s10130_s9 = inlined_call_operand.vmem [shape: f32[1,50], index: 9, kind: input, shape index: {}]   ;;  %s10131_s10 = inlined_call_operand.vmem [shape: f32[5,48,56], index: 10, kind: input, shape index: {}]   ;;  %s10132_s11 = inlined_call_operand.vmem [shape: f32[5,28,240], index: 11, kind: input, shape index: {}]   ;;  %s10133_s12 = inlined_call_operand.vmem [shape: f32[1,120], index: 12, kind: input, shape index: {}]   ;;  %s10134_s13 = inlined_call_operand.vmem [shape: f32[5,16,24], index: 13, kind: input, shape index: {}]   ;;  %s10135_s14 = inlined_call_operand.vmem [shape: f32[5,120,160], index: 14, kind: input, shape index: {}]   ;;  %s10136_s15 = inlined_call_operand.vmem [shape: f32[1,80], index: 15, kind: input, shape index: {}]   ;;  %s10137_s16 = inlined_call_operand.vmem [shape: f32[4,80,50], index: 16, kind: input, shape index: {}]   ;;  %s10138_s17 = inlined_call_operand.vmem [shape: f32[1,50], index: 17, kind: input, shape index: {}]   ;;  %s10139_s18 = inlined_call_operand.vmem [shape: f32[50,10], index: 18, kind: input, shape index: {}]   ;;  %s10140_s19 = inlined_call_operand.vmem [shape: f32[1,10], index: 19, kind: input, shape index: {}]   ;;  %s10141_s20 = inlined_call_operand.hbm [shape: f32[2,10], index: 20, kind: output, shape index: {}]  }
   0x1   :  { %10146 = sst [smem:[#allocation5_spill]] %s10121_s0 }
   0x2   :  { %10147 = sst [smem:[#allocation6_spill]] %s10122_s1 }
   0x3   :  { %10148 = sst [smem:[#allocation7_spill]] %s10123_s2 }
   0x4   :  { %10149 = sst [smem:[#allocation8_spill]] %s10124_s3 }
   0x5   :  { %10150 = sst [smem:[#allocation9_spill]] %s10125_s4 }
   0x6   :  { %s10151_s23 = sld [smem:[#allocation8_spill]]  ;;  %vm109_vm0 = vcmask 1043456   ;;  %vm7514_vm1 = vmmov 1   ;;  %v7515_v7 = vmov 0.0   ;;  %s10154_s26 = sld [smem:[#allocation5_spill]]  ;;  %vm87_vm3 = vcmask 228352  }
   0x7   :  { %vm7638_vm2 = vmpackc.low %vm109_vm0, %vm7514_vm1  ;;  %309 = vmatprep.mubr.f32.mxu1 %v7515_v7  ;;  %180 = vmatprep.mubr.f32.mxu0 %v7515_v7 }
   0xc   :  { %v5740_v0 = vld [vmem:[%s10151_s23 + $0x48] sm:$0xff]  ;;  %v5742_v1 = vld [vmem:[%s10151_s23 + $0x58] sm:$0xff]  ;;  %v5739_v2 = vld [vmem:[%s10151_s23 + $0x40] sm:$0xff] }
   0xd   :  { %v6676_v3 = vpack.c.bf16 %v5742_v1, %v5740_v0  ;;  %v5741_v4 = vld [vmem:[%s10151_s23 + $0x50] sm:$0xff]  ;;  %v5744_v6 = vld [vmem:[%s10151_s23 + $0x68] sm:$0xff]  ;;  %v5746_v9 = vld [vmem:[%s10151_s23 + $0x78] sm:$0xf] }
   0xe   :  { %v6678_v8 = vpack.c.bf16 %v5741_v4, %v5739_v2  ;;  %v5743_v10 = vld [vmem:[%s10151_s23 + $0x60] sm:$0xff]  ;;  %v5745_v11 = vld [vmem:[%s10151_s23 + $0x70] sm:$0xf]  ;;  %v6680_v12 = vpack.c.bf16 %v5746_v9, %v5744_v6  ;;  %v80_v13 = vld [vmem:[%s10151_s23 + $0x8] sm:$0xff] }
   0xf   :  { %6677 = vmatprep.subr.bf16.mxu1 %v6676_v3  ;;  %v6683_v14 = vpack.c.bf16 %v5745_v11, %v5743_v10  ;;  %v82_v15 = vld [vmem:[%s10151_s23 + $0x18] sm:$0xff]  ;;  %v79_v16 = vld [vmem:[%s10151_s23] sm:$0xff]  ;;  %v81_v17 = vld [vmem:[%s10151_s23 + $0x10] sm:$0xff] }
  0x10   :  { %6679 = vmatpush1.bf16.msra.mxu1 %v6678_v8  ;;  %v6666_v18 = vpack.c.bf16 %v82_v15, %v80_v13  ;;  %v6668_v19 = vpack.c.bf16 %v81_v17, %v79_v16  ;;  %v84_v20 = vld [vmem:[%s10151_s23 + $0x28] sm:$0xff]  ;;  %v86_v21 = vld [vmem:[%s10151_s23 + $0x38] sm:$0xf]  ;;  %v83_v23 = vld [vmem:[%s10151_s23 + $0x20] sm:$0xff] }
  0x11   :  { %6682 = vmatprep.subr.msk.bf16.mxu1 %vm7638_vm2, %v6680_v12  ;;  %v6670_v22 = vpack.c.bf16 %v86_v21, %v84_v20  ;;  %v85_v24 = vld [vmem:[%s10151_s23 + $0x30] sm:$0xf]  ;;  %v7685_v25 = vld [vmem:[%s10154_s26] sm:$0xff]  ;;  %v5775_v26 = vld [vmem:[%s10151_s23 + $0x88] sm:$0xff] }
  0x12   :  { %6667 = vmatprep.subr.bf16.mxu0 %v6666_v18  ;;  %v6673_v27 = vpack.c.bf16 %v85_v24, %v83_v23  ;;  %v5777_v28 = vld [vmem:[%s10151_s23 + $0x98] sm:$0xff]  ;;  %v5774_v29 = vld [vmem:[%s10151_s23 + $0x80] sm:$0xff]  ;;  %v5776_v30 = vld [vmem:[%s10151_s23 + $0x90] sm:$0xff] }
  0x13   :  { %6669 = vmatpush1.bf16.msra.mxu0 %v6668_v19  ;;  %v6710_v31 = vpack.c.bf16 %v5777_v28, %v5775_v26  ;;  %v6712_v32 = vpack.c.bf16 %v5776_v30, %v5774_v29  ;;  %v5779_v33 = vld [vmem:[%s10151_s23 + $0xa8] sm:$0xff]  ;;  %v5781_v34 = vld [vmem:[%s10151_s23 + $0xb8] sm:$0xf]  ;;  %v5778_v36 = vld [vmem:[%s10151_s23 + $0xa0] sm:$0xff] }
  0x14   :  { %6685 = vmatpush1.bf16.msk.msra.mxu1 %vm7638_vm2, %v6683_v14  ;;  %6672 = vmatprep.subr.msk.bf16.mxu0 %vm7638_vm2, %v6670_v22  ;;  %v6714_v35 = vpack.c.bf16 %v5781_v34, %v5779_v33  ;;  %v5780_v37 = vld [vmem:[%s10151_s23 + $0xb0] sm:$0xf]  ;;  %v5804_v38 = vld [vmem:[%s10151_s23 + $0xc8] sm:$0xff]  ;;  %v5806_v39 = vld [vmem:[%s10151_s23 + $0xd8] sm:$0xff] }
  0x15   :  { %6711 = vmatprep.subr.bf16.mxu1 %v6710_v31  ;;  %v7727_v40 = vld [vmem:[%s10154_s26 + $0x8] sm:$0xff]  ;;  %v6717_v41 = vpack.c.bf16 %v5780_v37, %v5778_v36  ;;  %v6732_v42 = vpack.c.bf16 %v5806_v39, %v5804_v38  ;;  %v7741_v43 = vld [vmem:[%s10154_s26 + $0x10] sm:$0xff] }
  0x17   :  { %5749 = vmatmul.mubr.msk.f32.vlgmr.msra.gmra.mrb[0].mxu1 %vm87_vm3, %v7685_v25  ;;  %6675 = vmatpush1.bf16.msk.msra.mxu0 %vm7638_vm2, %v6673_v27 }
  0x18   :  { %315 = vmatprep.mubr.f32.mxu1 %v7515_v7  ;;  %6713 = vmatpush1.bf16.msra.mxu1 %v6712_v32 }
  0x19   :  { %6716 = vmatprep.subr.msk.bf16.mxu1 %vm7638_vm2, %v6714_v35 }
  0x1a   :  { %5726 = vmatmul.mubr.msk.f32.vlgmr.msra.gmra.mrb[0].mxu0 %vm87_vm3, %v7685_v25 }
  0x1b   :  { %5750 = vmatmul.mubr.msk.f32.gmra.mrb[2].mxu1 %vm87_vm3, %v7727_v40  ;;  %186 = vmatprep.mubr.f32.mxu0 %v7515_v7 }
  0x1c   :  { %321 = vmatprep.mubr.f32.mxu1 %v7515_v7 }
  0x1d   :  { %25 = vsyncpa [#allocation3], 0  ;;  %6719 = vmatpush1.bf16.msk.msra.mxu1 %vm7638_vm2, %v6717_v41  ;;  %v7754_v44 = vld [vmem:[%s10154_s26 + $0x18] sm:$0xff]  ;;  %v7765_v45 = vld [vmem:[%s10154_s26 + $0x20] sm:$0xff]  ;;  %s10155_s1 = sld [smem:[#allocation7_spill]]  ;;  %vm352_vm4 = vcmask 457728  }
  0x1e   :  { %6733 = vmatprep.subr.bf16.mxu1 %v6732_v42  ;;  %5727 = vmatmul.mubr.msk.f32.gmra.mrb[2].mxu0 %vm87_vm3, %v7727_v40  ;;  %v7776_v46 = vld [vmem:[%s10154_s26 + $0x28] sm:$0xff]  ;;  %v7787_v47 = vld [vmem:[%s10154_s26 + $0x30] sm:$0xff]  ;;  %v5803_v48 = vld [vmem:[%s10151_s23 + $0xc0] sm:$0xff]  ;;  %s7516_s3 = smov 8   ;;  %vm1407_vm5 = vcmask 64512   ;;  %s10156_s30 = sld [smem:[#allocation9_spill]] }
  0x1f   :  { %5751 = vmatmul.mubr.msk.f32.gmra.mrb[4].mxu1 %vm87_vm3, %v7741_v43  ;;  %192 = vmatprep.mubr.f32.mxu0 %v7515_v7  ;;  %v5805_v49 = vld [vmem:[%s10151_s23 + $0xd0] sm:$0xff]  ;;  %v5808_v50 = vld [vmem:[%s10151_s23 + $0xe8] sm:$0xff]  ;;  %v5810_v51 = vld [vmem:[%s10151_s23 + $0xf8] sm:$0xf]  ;;  %vm1474_vm6 = vcmask 982016   ;;  %vm1684_vm7 = vcmask 195584  }
  0x20   :  { %327 = vmatprep.mubr.f32.mxu1 %v7515_v7  ;;  %v6734_v52 = vpack.c.bf16 %v5805_v49, %v5803_v48  ;;  %v6736_v53 = vpack.c.bf16 %v5810_v51, %v5808_v50  ;;  %v5807_v54 = vld [vmem:[%s10151_s23 + $0xe0] sm:$0xff]  ;;  %v5809_v55 = vld [vmem:[%s10151_s23 + $0xf0] sm:$0xf]  ;;  %v5833_v56 = vld [vmem:[%s10151_s23 + $0x108] sm:$0xff]  ;;  %vm7519_vm8 = vmmov 0   ;;  %vm2475_vm9 = vcmask 392192  }
  0x21   :  { %v5835_v57 = vld [vmem:[%s10151_s23 + $0x118] sm:$0xff]  ;;  %v6739_v58 = vpack.c.bf16 %v5809_v55, %v5807_v54  ;;  %v5832_v60 = vld [vmem:[%s10151_s23 + $0x100] sm:$0xff]  ;;  %v5834_v61 = vld [vmem:[%s10151_s23 + $0x110] sm:$0xff]  ;;  %vm2515_vm10 = vcmask 654336   ;;  %vm5622_vm11 = vcmask 1041408   ;;  %vm5618_vm12 = vcmask 408576  }
  0x22   :  { %5728 = vmatmul.mubr.msk.f32.gmra.mrb[4].mxu0 %vm87_vm3, %v7741_v43  ;;  %v6754_v59 = vpack.c.bf16 %v5835_v57, %v5833_v56  ;;  %v5837_v62 = vld [vmem:[%s10151_s23 + $0x128] sm:$0xff]  ;;  %v5839_v63 = vld [vmem:[%s10151_s23 + $0x138] sm:$0xf]  ;;  %v6756_v0 = vpack.c.bf16 %v5834_v61, %v5832_v60  ;;  %v5836_v2 = vld [vmem:[%s10151_s23 + $0x120] sm:$0xff]  ;;  %vm5696_vm13 = vcmask 74752  }
  0x23   :  { %5752 = vmatmul.mubr.msk.f32.gmra.mrb[6].mxu1 %vm87_vm3, %v7754_v44  ;;  %198 = vmatprep.mubr.f32.mxu0 %v7515_v7  ;;  %v6758_v1 = vpack.c.bf16 %v5839_v63, %v5837_v62  ;;  %v5838_v3 = vld [vmem:[%s10151_s23 + $0x130] sm:$0xf]  ;;  %v5734_v50 = vld [vmem:[%s10155_s1 + $0x38] sm:$0xff]  ;;  %v5735_v55 = vld [vmem:[%s10155_s1 + $0x40] sm:$0xff] }
  0x24   :  { %333 = vmatprep.mubr.f32.mxu1 %v7515_v7  ;;  %v6761_v4 = vpack.c.bf16 %v5838_v3, %v5836_v2  ;;  %v5737_v63 = vld [vmem:[%s10155_s1 + $0x50] sm:$0xff]  ;;  %v5738_v2 = vld [vmem:[%s10155_s1 + $0x58] sm:$0xff] }
  0x25   :  { %v6059_v5 = vld [vmem:[%s10131_s10 + $0x58] sm:$0xff] }
  0x26   :  { %5729 = vmatmul.mubr.msk.f32.gmra.mrb[6].mxu0 %vm87_vm3, %v7754_v44 }
  0x27   :  { %5753 = vmatmul.mubr.msk.f32.gmra.mrb[8].mxu1 %vm87_vm3, %v7765_v45  ;;  %204 = vmatprep.mubr.f32.mxu0 %v7515_v7 }
  0x28   :  { %339 = vmatprep.mubr.f32.mxu1 %v7515_v7 }
  0x2a   :  { %5730 = vmatmul.mubr.msk.f32.gmra.mrb[8].mxu0 %vm87_vm3, %v7765_v45 }
  0x2b   :  { %5754 = vmatmul.mubr.msk.f32.gmra.mrb[10].mxu1 %vm87_vm3, %v7776_v46  ;;  %210 = vmatprep.mubr.f32.mxu0 %v7515_v7 }
  0x2c   :  { %345 = vmatprep.mubr.f32.mxu1 %v7515_v7 }
  0x2e   :  { %5731 = vmatmul.mubr.msk.f32.gmra.mrb[10].mxu0 %vm87_vm3, %v7776_v46 }
  0x2f   :  { %5755 = vmatmul.mubr.msk.f32.gmra.mrb[12].mxu1 %vm87_vm3, %v7787_v47  ;;  %216 = vmatprep.mubr.f32.mxu0 %v7515_v7 }
  0x30   :  { %677 = vmatprep.mubr.f32.mxu1 %v7515_v7 }
  0x32   :  { %5732 = vmatmul.mubr.msk.f32.gmra.mrb[12].mxu0 %vm87_vm3, %v7787_v47 }
  0x33   :  { %5784 = vmatmul.mubr.msk.f32.vlgmr.msra.gmra.mrb[14].mxu1 %vm87_vm3, %v7685_v25  ;;  %435 = vmatprep.mubr.f32.mxu0 %v7515_v7 }
  0x34   :  { %683 = vmatprep.mubr.f32.mxu1 %v7515_v7  ;;  %6735 = vmatpush1.bf16.msra.mxu1 %v6734_v52 }
  0x35   :  { %6738 = vmatprep.subr.msk.bf16.mxu1 %vm7638_vm2, %v6736_v53 }
  0x37   :  { %5785 = vmatmul.mubr.msk.f32.gmra.mrb[16].mxu1 %vm87_vm3, %v7727_v40 }
  0x38   :  { %689 = vmatprep.mubr.f32.mxu1 %v7515_v7  ;;  %6741 = vmatpush1.bf16.msk.msra.mxu1 %vm7638_vm2, %v6739_v58  ;;  %v5736_v58 = vld [vmem:[%s10155_s1 + $0x48] sm:$0xff] }
  0x39   :  { %6755 = vmatprep.subr.bf16.mxu1 %v6754_v59 }
  0x3b   :  { %5786 = vmatmul.mubr.msk.f32.gmra.mrb[18].mxu1 %vm87_vm3, %v7741_v43 }
  0x3c   :  { %695 = vmatprep.mubr.f32.mxu1 %v7515_v7 }
  0x3f   :  { %5787 = vmatmul.mubr.msk.f32.gmra.mrb[20].mxu1 %vm87_vm3, %v7754_v44 }
  0x40   :  { %701 = vmatprep.mubr.f32.mxu1 %v7515_v7 }
  0x43   :  { %5788 = vmatmul.mubr.msk.f32.gmra.mrb[22].mxu1 %vm87_vm3, %v7765_v45 }
  0x44   :  { %707 = vmatprep.mubr.f32.mxu1 %v7515_v7 }
  0x47   :  { %5789 = vmatmul.mubr.msk.f32.gmra.mrb[24].mxu1 %vm87_vm3, %v7776_v46 }
  0x48   :  { %713 = vmatprep.mubr.f32.mxu1 %v7515_v7 }
  0x4b   :  { %5790 = vmatmul.mubr.msk.f32.gmra.mrb[26].mxu1 %vm87_vm3, %v7787_v47 }
  0x4c   :  { %937 = vmatprep.mubr.f32.mxu1 %v7515_v7 }
  0x4f   :  { %5813 = vmatmul.mubr.msk.f32.vlgmr.msra.gmra.mrb[28].mxu1 %vm87_vm3, %v7685_v25 }
  0x50   :  { %943 = vmatprep.mubr.f32.mxu1 %v7515_v7  ;;  %6757 = vmatpush1.bf16.msra.mxu1 %v6756_v0 }
  0x51   :  { %6760 = vmatprep.subr.msk.bf16.mxu1 %vm7638_vm2, %v6758_v1 }
  0x53   :  { %5814 = vmatmul.mubr.msk.f32.gmra.mrb[30].mxu1 %vm87_vm3, %v7727_v40 }
  0x54   :  { %949 = vmatprep.mubr.f32.mxu1 %v7515_v7  ;;  %6763 = vmatpush1.bf16.msk.msra.mxu1 %vm7638_vm2, %v6761_v4 }
  0x57   :  { %5815 = vmatmul.mubr.msk.f32.gmra.mrb[32].mxu1 %vm87_vm3, %v7741_v43 }
  0x58   :  { %955 = vmatprep.mubr.f32.mxu1 %v7515_v7 }
  0x5b   :  { %5816 = vmatmul.mubr.msk.f32.gmra.mrb[34].mxu1 %vm87_vm3, %v7754_v44 }
  0x5c   :  { %961 = vmatprep.mubr.f32.mxu1 %v7515_v7 }
  0x5f   :  { %5817 = vmatmul.mubr.msk.f32.gmra.mrb[36].mxu1 %vm87_vm3, %v7765_v45 }
  0x60   :  { %967 = vmatprep.mubr.f32.mxu1 %v7515_v7 }
  0x63   :  { %5818 = vmatmul.mubr.msk.f32.gmra.mrb[38].mxu1 %vm87_vm3, %v7776_v46 }
  0x64   :  { %973 = vmatprep.mubr.f32.mxu1 %v7515_v7 }
  0x67   :  { %5819 = vmatmul.mubr.msk.f32.gmra.mrb[40].mxu1 %vm87_vm3, %v7787_v47 }
  0x68   :  { %1197 = vmatprep.mubr.f32.mxu1 %v7515_v7 }
  0x6b   :  { %5842 = vmatmul.mubr.msk.f32.vlgmr.msra.gmra.mrb[42].mxu1 %vm87_vm3, %v7685_v25 }
  0x6c   :  { %1203 = vmatprep.mubr.f32.mxu1 %v7515_v7 }
  0x6f   :  { %5843 = vmatmul.mubr.msk.f32.gmra.mrb[44].mxu1 %vm87_vm3, %v7727_v40 }
  0x70   :  { %1209 = vmatprep.mubr.f32.mxu1 %v7515_v7 }
  0x73   :  { %5844 = vmatmul.mubr.msk.f32.gmra.mrb[46].mxu1 %vm87_vm3, %v7741_v43 }
  0x74   :  { %1215 = vmatprep.mubr.f32.mxu1 %v7515_v7 }
  0x77   :  { %5845 = vmatmul.mubr.msk.f32.gmra.mrb[48].mxu1 %vm87_vm3, %v7754_v44 }
  0x78   :  { %1221 = vmatprep.mubr.f32.mxu1 %v7515_v7 }
  0x7b   :  { %5846 = vmatmul.mubr.msk.f32.gmra.mrb[50].mxu1 %vm87_vm3, %v7765_v45  ;;  %v5733_v45 = vld [vmem:[%s10155_s1 + $0x30] sm:$0xff] }
  0x7c   :  { %1227 = vmatprep.mubr.f32.mxu1 %v7515_v7 }
  0x7f   :  { %5847 = vmatmul.mubr.msk.f32.gmra.mrb[52].mxu1 %vm87_vm3, %v7776_v46 }
  0x80   :  { %1233 = vmatprep.mubr.f32.mxu1 %v7515_v7 }
  0x83   :  { %5848 = vmatmul.mubr.msk.f32.gmra.mrb[54].mxu1 %vm87_vm3, %v7787_v47 }
  0x84   :  { %1665 = vmatprep.mubr.f32.mxu1 %v7515_v7 }
  0xea   :  { %v311_v6 = vpop.f32.mrb[0].mxu1 }
  0xeb   :  { %v313_v8 = vpop.f32.mrb[1].mxu1 }
  0xed   :  { %v182_v10 = vpop.f32.mrb[0].mxu0 }
  0xee   :  { %v317_v9 = vpop.f32.mrb[2].mxu1  ;;  %v184_v13 = vpop.f32.mrb[1].mxu0 }
  0xef   :  { %v6688_v11 = vpack.c.bf16 %v317_v9, %v311_v6  ;;  %v319_v12 = vpop.f32.mrb[3].mxu1  ;;  %v73_v9 = vld [vmem:[%s10155_s1] sm:$0xff] }
  0xf0   :  { %v6686_v14 = vpack.c.bf16 %v319_v12, %v313_v8  ;;  %v74_v12 = vld [vmem:[%s10155_s1 + $0x8] sm:$0xff] }
  0xf1   :  { %v188_v16 = vpop.f32.mrb[2].mxu0 }
  0xf2   :  { %v323_v15 = vpop.f32.mrb[4].mxu1  ;;  %6687 = vmatprep.subr.bf16.mxu0 %v6686_v14  ;;  %v6700_v18 = vpack.c.bf16 %v188_v16, %v182_v10  ;;  %v190_v19 = vpop.f32.mrb[3].mxu0 }
  0xf3   :  { %v325_v17 = vpop.f32.mrb[5].mxu1  ;;  %6689 = vmatpush1.bf16.msra.mxu0 %v6688_v11  ;;  %v6698_v20 = vpack.c.bf16 %v190_v19, %v184_v13 }
  0xf5   :  { %v194_v22 = vpop.f32.mrb[4].mxu0 }
  0xf6   :  { %v329_v21 = vpop.f32.mrb[6].mxu1  ;;  %v196_v25 = vpop.f32.mrb[5].mxu0 }
  0xf7   :  { %v6692_v23 = vpack.c.bf16 %v329_v21, %v323_v15  ;;  %v331_v24 = vpop.f32.mrb[7].mxu1  ;;  %v75_v15 = vld [vmem:[%s10155_s1 + $0x10] sm:$0xff] }
  0xf8   :  { %v6690_v26 = vpack.c.bf16 %v331_v24, %v325_v17 }
  0xf9   :  { %v200_v28 = vpop.f32.mrb[6].mxu0 }
  0xfa   :  { %v335_v27 = vpop.f32.mrb[8].mxu1  ;;  %6691 = vmatprep.subr.bf16.mxu0 %v6690_v26  ;;  %v6704_v30 = vpack.c.bf16 %v200_v28, %v194_v22  ;;  %v202_v31 = vpop.f32.mrb[7].mxu0  ;;  %v78_v28 = vld [vmem:[%s10155_s1 + $0x28] sm:$0xff] }
  0xfb   :  { %v337_v29 = vpop.f32.mrb[9].mxu1  ;;  %6693 = vmatpush1.bf16.msra.mxu0 %v6692_v23  ;;  %v6702_v32 = vpack.c.bf16 %v202_v31, %v196_v25  ;;  %v77_v23 = vld [vmem:[%s10155_s1 + $0x20] sm:$0xff] }
  0xfc   :  { %v5768_v31 = vld [vmem:[%s10155_s1 + $0x60] sm:$0xff] }
  0xfd   :  { %v206_v34 = vpop.f32.mrb[8].mxu0 }
  0xfe   :  { %v341_v33 = vpop.f32.mrb[10].mxu1  ;;  %v208_v37 = vpop.f32.mrb[9].mxu0 }
  0xff   :  { %v6696_v35 = vpack.c.bf16 %v341_v33, %v335_v27  ;;  %v343_v36 = vpop.f32.mrb[11].mxu1 }
 0x100   :  { %v6694_v38 = vpack.c.bf16 %v343_v36, %v337_v29  ;;  %v5769_v36 = vld [vmem:[%s10155_s1 + $0x68] sm:$0xff] }
 0x101   :  { %v212_v40 = vpop.f32.mrb[10].mxu0 }
 0x102   :  { %6695 = vmatprep.subr.bf16.mxu0 %v6694_v38  ;;  %v347_v39 = vpop.f32.mrb[12].mxu1  ;;  %v6708_v42 = vpack.c.bf16 %v212_v40, %v206_v34  ;;  %v214_v43 = vpop.f32.mrb[11].mxu0 }
 0x103   :  { %6697 = vmatpush1.bf16.msra.mxu0 %v6696_v35  ;;  %v349_v41 = vpop.f32.mrb[13].mxu1  ;;  %v6706_v44 = vpack.c.bf16 %v214_v43, %v208_v37 }
 0x104   :  { %383 = vmatprep.subr.mxu0 %v349_v41 }
 0x105   :  { %v218_v47 = vpop.f32.mrb[12].mxu0 }
 0x106   :  { %v679_v46 = vpop.f32.mrb[14].mxu1  ;;  %v220_v49 = vpop.f32.mrb[13].mxu0 }
 0x107   :  { %384 = vmatpush1.msra.mxu0 %v347_v39  ;;  %v681_v48 = vpop.f32.mrb[15].mxu1  ;;  %v5770_v39 = vld [vmem:[%s10155_s1 + $0x70] sm:$0xff] }
 0x108   :  { %5756 = vmatmul.mubr.msk.f32.vlgmr.msra.gmra.mrb[14].mxu0 %vm352_vm4, %v5733_v45  ;;  %6699 = vmatprep.subr.bf16.mxu0 %v6698_v20  ;;  %v76_v20 = vld [vmem:[%s10155_s1 + $0x18] sm:$0xff] }
 0x109   :  { %6701 = vmatpush1.bf16.msra.mxu0 %v6700_v18  ;;  %441 = vmatprep.mubr.f32.mxu0 %v7515_v7 }
 0x10a   :  { %6703 = vmatprep.subr.bf16.mxu0 %v6702_v32  ;;  %v685_v51 = vpop.f32.mrb[16].mxu1 }
 0x10b   :  { %v6722_v52 = vpack.c.bf16 %v685_v51, %v679_v46  ;;  %v687_v53 = vpop.f32.mrb[17].mxu1 }
 0x10c   :  { %5757 = vmatmul.mubr.msk.f32.gmra.mrb[16].mxu0 %vm352_vm4, %v5734_v50  ;;  %v6720_v54 = vpack.c.bf16 %v687_v53, %v681_v48  ;;  %v5773_v50 = vld [vmem:[%s10155_s1 + $0x88] sm:$0xff] }
 0x10d   :  { %6705 = vmatpush1.bf16.msra.mxu0 %v6704_v30  ;;  %447 = vmatprep.mubr.f32.mxu0 %v7515_v7 }
 0x10e   :  { %6707 = vmatprep.subr.bf16.mxu0 %v6706_v44  ;;  %v691_v56 = vpop.f32.mrb[18].mxu1 }
 0x10f   :  { %v693_v57 = vpop.f32.mrb[19].mxu1 }
 0x110   :  { %5758 = vmatmul.mubr.msk.f32.gmra.mrb[18].mxu0 %vm352_vm4, %v5735_v55  ;;  %v5797_v55 = vld [vmem:[%s10155_s1 + $0x90] sm:$0xff] }
 0x111   :  { %6709 = vmatpush1.bf16.msra.mxu0 %v6708_v42  ;;  %453 = vmatprep.mubr.f32.mxu0 %v7515_v7  ;;  %v5771_v42 = vld [vmem:[%s10155_s1 + $0x78] sm:$0xff] }
 0x112   :  { %502 = vmatprep.subr.mxu0 %v220_v49  ;;  %v697_v59 = vpop.f32.mrb[20].mxu1 }
 0x113   :  { %v6726_v60 = vpack.c.bf16 %v697_v59, %v691_v56  ;;  %v699_v61 = vpop.f32.mrb[21].mxu1 }
 0x114   :  { %5759 = vmatmul.mubr.msk.f32.gmra.mrb[20].mxu0 %vm352_vm4, %v5736_v58  ;;  %v6724_v62 = vpack.c.bf16 %v699_v61, %v693_v57  ;;  %v5798_v58 = vld [vmem:[%s10155_s1 + $0x98] sm:$0xff] }
 0x115   :  { %503 = vmatpush1.msra.mxu0 %v218_v47  ;;  %459 = vmatprep.mubr.f32.mxu0 %v7515_v7  ;;  %v5772_v47 = vld [vmem:[%s10155_s1 + $0x80] sm:$0xff] }
 0x116   :  { %6721 = vmatprep.subr.bf16.mxu0 %v6720_v54  ;;  %v703_v0 = vpop.f32.mrb[22].mxu1 }
 0x117   :  { %v705_v1 = vpop.f32.mrb[23].mxu1 }
 0x118   :  { %5760 = vmatmul.mubr.msk.f32.gmra.mrb[22].mxu0 %vm352_vm4, %v5737_v63  ;;  %v5799_v63 = vld [vmem:[%s10155_s1 + $0xa0] sm:$0xff] }
 0x119   :  { %465 = vmatprep.mubr.f32.mxu0 %v7515_v7 }
 0x11a   :  { %v709_v3 = vpop.f32.mrb[24].mxu1 }
 0x11b   :  { %v6730_v4 = vpack.c.bf16 %v709_v3, %v703_v0  ;;  %v711_v6 = vpop.f32.mrb[25].mxu1  ;;  %v5801_v3 = vld [vmem:[%s10155_s1 + $0xb0] sm:$0xff] }
 0x11c   :  { %5761 = vmatmul.mubr.msk.f32.gmra.mrb[24].mxu0 %vm352_vm4, %v5738_v2  ;;  %v6728_v8 = vpack.c.bf16 %v711_v6, %v705_v1  ;;  %v5800_v2 = vld [vmem:[%s10155_s1 + $0xa8] sm:$0xff]  ;;  %v5826_v6 = vld [vmem:[%s10155_s1 + $0xc0] sm:$0xff] }
 0x11d   :  { %554 = vmatprep.mubr.f32.mxu0 %v7515_v7 }
 0x11e   :  { %v715_v10 = vpop.f32.mrb[26].mxu1 }
 0x11f   :  { %v717_v11 = vpop.f32.mrb[27].mxu1 }
 0x120   :  { %5762 = vmatmul.mubr.msk.f32.vlgmr.msra.gmra.mrb[14].mxu0 %vm352_vm4, %v73_v9  ;;  %v5828_v9 = vld [vmem:[%s10155_s1 + $0xd0] sm:$0xff] }
 0x121   :  { %6723 = vmatpush1.bf16.msra.mxu0 %v6722_v52  ;;  %560 = vmatprep.mubr.f32.mxu0 %v7515_v7 }
 0x122   :  { %6725 = vmatprep.subr.bf16.mxu0 %v6724_v62  ;;  %v939_v13 = vpop.f32.mrb[28].mxu1 }
 0x123   :  { %v941_v14 = vpop.f32.mrb[29].mxu1 }
 0x124   :  { %5763 = vmatmul.mubr.msk.f32.gmra.mrb[16].mxu0 %vm352_vm4, %v74_v12  ;;  %v5831_v12 = vld [vmem:[%s10155_s1 + $0xe8] sm:$0xff] }
 0x125   :  { %6727 = vmatpush1.bf16.msra.mxu0 %v6726_v60  ;;  %566 = vmatprep.mubr.f32.mxu0 %v7515_v7 }
 0x126   :  { %6729 = vmatprep.subr.bf16.mxu0 %v6728_v8  ;;  %v945_v16 = vpop.f32.mrb[30].mxu1  ;;  %v5827_v8 = vld [vmem:[%s10155_s1 + $0xc8] sm:$0xff] }
 0x127   :  { %v6744_v17 = vpack.c.bf16 %v945_v16, %v939_v13  ;;  %v947_v18 = vpop.f32.mrb[31].mxu1  ;;  %v5862_v13 = vld [vmem:[%s10127_s6 + $0xf8] sm:$0xff] }
 0x128   :  { %5764 = vmatmul.mubr.msk.f32.gmra.mrb[18].mxu0 %vm352_vm4, %v75_v15  ;;  %v6742_v19 = vpack.c.bf16 %v947_v18, %v941_v14  ;;  %v5864_v14 = vld [vmem:[%s10127_s6 + $0x108] sm:$0xff]  ;;  %v5861_v18 = vld [vmem:[%s10127_s6 + $0xf0] sm:$0xff] }
 0x129   :  { %6731 = vmatpush1.bf16.msra.mxu0 %v6730_v4  ;;  %572 = vmatprep.mubr.f32.mxu0 %v7515_v7  ;;  %v5802_v4 = vld [vmem:[%s10155_s1 + $0xb8] sm:$0xff]  ;;  %v1445_v15 = vld [vmem:[%s10127_s6 + $0x8] sm:$0xff]  ;;  %v6804_v16 = vpack.c.bf16 %v5864_v14, %v5862_v13 }
 0x12a   :  { %750 = vmatprep.subr.mxu0 %v717_v11  ;;  %v951_v21 = vpop.f32.mrb[32].mxu1  ;;  %v5830_v11 = vld [vmem:[%s10155_s1 + $0xe0] sm:$0xff]  ;;  %v1465_v13 = vld [vmem:[%s10127_s6 + $0xa8] sm:$0xff] }
 0x12b   :  { %v953_v22 = vpop.f32.mrb[33].mxu1  ;;  %6805 = vmatprep.subr.bf16.mxu1 %v6804_v16  ;;  %v1467_v16 = vld [vmem:[%s10127_s6 + $0xb8] sm:$0xff] }
 0x12c   :  { %5765 = vmatmul.mubr.msk.f32.gmra.mrb[20].mxu0 %vm352_vm4, %v76_v20 }
 0x12d   :  { %751 = vmatpush1.msra.mxu0 %v715_v10  ;;  %578 = vmatprep.mubr.f32.mxu0 %v7515_v7  ;;  %v5829_v10 = vld [vmem:[%s10155_s1 + $0xd8] sm:$0xff] }
 0x12e   :  { %6743 = vmatprep.subr.bf16.mxu0 %v6742_v19  ;;  %v957_v24 = vpop.f32.mrb[34].mxu1  ;;  %v5863_v19 = vld [vmem:[%s10127_s6 + $0x100] sm:$0xff] }
 0x12f   :  { %v6748_v25 = vpack.c.bf16 %v957_v24, %v951_v21  ;;  %v959_v26 = vpop.f32.mrb[35].mxu1  ;;  %v6806_v21 = vpack.c.bf16 %v5863_v19, %v5861_v18  ;;  %v5866_v24 = vld [vmem:[%s10127_s6 + $0x118] sm:$0xff]  ;;  %v5883_v18 = vld [vmem:[%s10127_s6 + $0x1a0] sm:$0xff] }
 0x130   :  { %5766 = vmatmul.mubr.msk.f32.gmra.mrb[22].mxu0 %vm352_vm4, %v77_v23  ;;  %v6746_v27 = vpack.c.bf16 %v959_v26, %v953_v22  ;;  %v1444_v22 = vld [vmem:[%s10127_s6] sm:$0xff]  ;;  %v1446_v23 = vld [vmem:[%s10127_s6 + $0x10] sm:$0xff]  ;;  %v5868_v26 = vld [vmem:[%s10127_s6 + $0x128] sm:$0xff] }
 0x131   :  { %584 = vmatprep.mubr.f32.mxu0 %v7515_v7  ;;  %6807 = vmatpush1.bf16.msra.mxu1 %v6806_v21 }
 0x132   :  { %v963_v29 = vpop.f32.mrb[36].mxu1 }
 0x133   :  { %v965_v30 = vpop.f32.mrb[37].mxu1 }
 0x134   :  { %5767 = vmatmul.mubr.msk.f32.gmra.mrb[24].mxu0 %vm352_vm4, %v78_v28  ;;  %v1451_v28 = vld [vmem:[%s10127_s6 + $0x38] sm:$0xff] }
 0x135   :  { %802 = vmatprep.mubr.f32.mxu0 %v7515_v7 }
 0x136   :  { %v969_v32 = vpop.f32.mrb[38].mxu1 }
 0x137   :  { %v6752_v33 = vpack.c.bf16 %v969_v32, %v963_v29  ;;  %v971_v34 = vpop.f32.mrb[39].mxu1  ;;  %v6808_v29 = vpack.c.bf16 %v5868_v26, %v5866_v24  ;;  %v5867_v32 = vld [vmem:[%s10127_s6 + $0x120] sm:$0xff]  ;;  %v5886_v26 = vld [vmem:[%s10127_s6 + $0x1b8] sm:$0xff] }
 0x138   :  { %5791 = vmatmul.mubr.msk.f32.vlgmr.msra.gmra.mrb[14].mxu0 %vm352_vm4, %v5768_v31  ;;  %v6750_v35 = vpack.c.bf16 %v971_v34, %v965_v30  ;;  %v5865_v31 = vld [vmem:[%s10127_s6 + $0x110] sm:$0xff]  ;;  %v1448_v34 = vld [vmem:[%s10127_s6 + $0x20] sm:$0xff] }
 0x139   :  { %6745 = vmatpush1.bf16.msra.mxu0 %v6744_v17  ;;  %808 = vmatprep.mubr.f32.mxu0 %v7515_v7  ;;  %v1447_v17 = vld [vmem:[%s10127_s6 + $0x18] sm:$0xff] }
 0x13a   :  { %6747 = vmatprep.subr.bf16.mxu0 %v6746_v27  ;;  %v975_v37 = vpop.f32.mrb[40].mxu1  ;;  %v6776_v20 = vpack.c.bf16 %v1447_v17, %v1445_v15  ;;  %v1449_v27 = vld [vmem:[%s10127_s6 + $0x28] sm:$0xff]  ;;  %6809 = vmatprep.subr.bf16.mxu1 %v6808_v29  ;;  %v5881_v17 = vld [vmem:[%s10127_s6 + $0x190] sm:$0xff] }
 0x13b   :  { %v977_v38 = vpop.f32.mrb[41].mxu1  ;;  %v6780_v30 = vpack.c.bf16 %v1451_v28, %v1449_v27  ;;  %v6826_v21 = vpack.c.bf16 %v5883_v18, %v5881_v17  ;;  %v5888_v27 = vld [vmem:[%s10127_s6 + $0x1c8] sm:$0xff] }
 0x13c   :  { %5792 = vmatmul.mubr.msk.f32.gmra.mrb[16].mxu0 %vm352_vm4, %v5769_v36  ;;  %v6828_v29 = vpack.c.bf16 %v5888_v27, %v5886_v26  ;;  %v5909_v18 = vld [vmem:[%s10127_s6 + $0x228] sm:$0xff] }
 0x13d   :  { %6749 = vmatpush1.bf16.msra.mxu0 %v6748_v25  ;;  %814 = vmatprep.mubr.f32.mxu0 %v7515_v7  ;;  %v6778_v25 = vpack.c.bf16 %v1446_v23, %v1444_v22  ;;  %v1464_v22 = vld [vmem:[%s10127_s6 + $0xa0] sm:$0xff]  ;;  %v1466_v23 = vld [vmem:[%s10127_s6 + $0xb0] sm:$0xff] }
 0x13e   :  { %6751 = vmatprep.subr.bf16.mxu0 %v6750_v35  ;;  %v1199_v40 = vpop.f32.mrb[42].mxu1  ;;  %v1450_v35 = vld [vmem:[%s10127_s6 + $0x30] sm:$0xff]  ;;  %v6798_v24 = vpack.c.bf16 %v1466_v23, %v1464_v22 }
 0x13f   :  { %v1201_v41 = vpop.f32.mrb[43].mxu1  ;;  %v6782_v36 = vpack.c.bf16 %v1450_v35, %v1448_v34  ;;  %v5887_v34 = vld [vmem:[%s10127_s6 + $0x1c0] sm:$0xff] }
 0x140   :  { %5793 = vmatmul.mubr.msk.f32.gmra.mrb[18].mxu0 %vm352_vm4, %v5770_v39  ;;  %v1453_v39 = vld [vmem:[%s10127_s6 + $0x48] sm:$0xff]  ;;  %v1468_v35 = vld [vmem:[%s10127_s6 + $0xc0] sm:$0xff] }
 0x141   :  { %820 = vmatprep.mubr.f32.mxu0 %v7515_v7  ;;  %6753 = vmatpush1.bf16.msra.mxu0 %v6752_v33  ;;  %v6810_v33 = vpack.c.bf16 %v5867_v32, %v5865_v31  ;;  %v1471_v31 = vld [vmem:[%s10127_s6 + $0xd8] sm:$0xff]  ;;  %v5885_v32 = vld [vmem:[%s10127_s6 + $0x1b0] sm:$0xff] }
 0x142   :  { %1010 = vmatprep.subr.mxu0 %v977_v38  ;;  %v1205_v43 = vpop.f32.mrb[44].mxu1  ;;  %v5872_v38 = vld [vmem:[%s10127_s6 + $0x148] sm:$0xff] }
 0x143   :  { %v6766_v44 = vpack.c.bf16 %v1205_v43, %v1199_v40  ;;  %v1207_v45 = vpop.f32.mrb[45].mxu1  ;;  %6811 = vmatpush1.bf16.msra.mxu1 %v6810_v33  ;;  %v5871_v43 = vld [vmem:[%s10127_s6 + $0x140] sm:$0xff] }
 0x144   :  { %5794 = vmatmul.mubr.msk.f32.gmra.mrb[20].mxu0 %vm352_vm4, %v5771_v42  ;;  %v6764_v46 = vpack.c.bf16 %v1207_v45, %v1201_v41  ;;  %v1455_v41 = vld [vmem:[%s10127_s6 + $0x58] sm:$0xff]  ;;  %v5869_v42 = vld [vmem:[%s10127_s6 + $0x130] sm:$0xff] }
 0x145   :  { %826 = vmatprep.mubr.f32.mxu0 %v7515_v7  ;;  %1011 = vmatpush1.msra.mxu0 %v975_v37  ;;  %v5870_v37 = vld [vmem:[%s10127_s6 + $0x138] sm:$0xff]  ;;  %v6814_v45 = vpack.c.bf16 %v5871_v43, %v5869_v42  ;;  %v5901_v42 = vld [vmem:[%s10127_s6 + $0x1e8] sm:$0xff] }
 0x146   :  { %6765 = vmatprep.subr.bf16.mxu0 %v6764_v46  ;;  %v1211_v48 = vpop.f32.mrb[46].mxu1  ;;  %v6812_v40 = vpack.c.bf16 %v5872_v38, %v5870_v37  ;;  %v1452_v46 = vld [vmem:[%s10127_s6 + $0x40] sm:$0xff]  ;;  %v6830_v37 = vpack.c.bf16 %v5887_v34, %v5885_v32  ;;  %v5903_v43 = vld [vmem:[%s10127_s6 + $0x1f8] sm:$0xff] }
 0x147   :  { %v1213_v49 = vpop.f32.mrb[47].mxu1 }
 0x148   :  { %5795 = vmatmul.mubr.msk.f32.gmra.mrb[22].mxu0 %vm352_vm4, %v5772_v47  ;;  %6813 = vmatprep.subr.bf16.mxu1 %v6812_v40  ;;  %v1454_v47 = vld [vmem:[%s10127_s6 + $0x50] sm:$0xff] }
 0x149   :  { %832 = vmatprep.mubr.f32.mxu0 %v7515_v7  ;;  %6815 = vmatpush1.bf16.msra.mxu1 %v6814_v45  ;;  %v5889_v45 = vld [vmem:[%s10127_s6 + $0x1d0] sm:$0xff] }
 0x14a   :  { %v1217_v51 = vpop.f32.mrb[48].mxu1 }
 0x14b   :  { %v6770_v52 = vpack.c.bf16 %v1217_v51, %v1211_v48  ;;  %v1219_v53 = vpop.f32.mrb[49].mxu1  ;;  %v6786_v48 = vpack.c.bf16 %v1454_v47, %v1452_v46  ;;  %v6840_v46 = vpack.c.bf16 %v5903_v43, %v5901_v42  ;;  %v5917_v42 = vld [vmem:[%s10127_s6 + $0x268] sm:$0xff]  ;;  %v5919_v43 = vld [vmem:[%s10127_s6 + $0x278] sm:$0xff] }
 0x14c   :  { %5796 = vmatmul.mubr.msk.f32.gmra.mrb[24].mxu0 %vm352_vm4, %v5773_v50  ;;  %v6768_v54 = vpack.c.bf16 %v1219_v53, %v1213_v49  ;;  %v5874_v49 = vld [vmem:[%s10127_s6 + $0x158] sm:$0xff]  ;;  %v5876_v50 = vld [vmem:[%s10127_s6 + $0x168] sm:$0xff] }
 0x14d   :  { %1062 = vmatprep.mubr.f32.mxu0 %v7515_v7  ;;  %v6816_v51 = vpack.c.bf16 %v5876_v50, %v5874_v49  ;;  %v1459_v53 = vld [vmem:[%s10127_s6 + $0x78] sm:$0xff] }
 0x14e   :  { %v1223_v56 = vpop.f32.mrb[50].mxu1 }
 0x14f   :  { %v1225_v57 = vpop.f32.mrb[51].mxu1  ;;  %6817 = vmatprep.subr.bf16.mxu1 %v6816_v51 }
 0x150   :  { %5820 = vmatmul.mubr.msk.f32.vlgmr.msra.gmra.mrb[14].mxu0 %vm352_vm4, %v5797_v55 }
 0x151   :  { %6767 = vmatpush1.bf16.msra.mxu0 %v6766_v44  ;;  %1068 = vmatprep.mubr.f32.mxu0 %v7515_v7  ;;  %v6784_v44 = vpack.c.bf16 %v1455_v41, %v1453_v39  ;;  %v5890_v41 = vld [vmem:[%s10127_s6 + $0x1d8] sm:$0xff] }
 0x152   :  { %6769 = vmatprep.subr.bf16.mxu0 %v6768_v54  ;;  %v1229_v59 = vpop.f32.mrb[52].mxu1  ;;  %v5873_v54 = vld [vmem:[%s10127_s6 + $0x150] sm:$0xff] }
 0x153   :  { %v6774_v60 = vpack.c.bf16 %v1229_v59, %v1223_v56  ;;  %v1231_v61 = vpop.f32.mrb[53].mxu1  ;;  %v5875_v56 = vld [vmem:[%s10127_s6 + $0x160] sm:$0xff] }
 0x154   :  { %5821 = vmatmul.mubr.msk.f32.gmra.mrb[16].mxu0 %vm352_vm4, %v5798_v58  ;;  %v6772_v62 = vpack.c.bf16 %v1231_v61, %v1225_v57  ;;  %v1456_v57 = vld [vmem:[%s10127_s6 + $0x60] sm:$0xff]  ;;  %v1458_v58 = vld [vmem:[%s10127_s6 + $0x70] sm:$0xff]  ;;  %v6818_v59 = vpack.c.bf16 %v5875_v56, %v5873_v54  ;;  %v5878_v61 = vld [vmem:[%s10127_s6 + $0x178] sm:$0xff] }
 0x155   :  { %1074 = vmatprep.mubr.f32.mxu0 %v7515_v7  ;;  %6771 = vmatpush1.bf16.msra.mxu0 %v6770_v52  ;;  %v1457_v52 = vld [vmem:[%s10127_s6 + $0x68] sm:$0xff] }
 0x156   :  { %6773 = vmatprep.subr.bf16.mxu0 %v6772_v62  ;;  %v1235_v0 = vpop.f32.mrb[54].mxu1  ;;  %v6788_v55 = vpack.c.bf16 %v1459_v53, %v1457_v52  ;;  %v5880_v62 = vld [vmem:[%s10127_s6 + $0x188] sm:$0xff]  ;;  %6819 = vmatpush1.bf16.msra.mxu1 %v6818_v59 }
 0x157   :  { %v1237_v1 = vpop.f32.mrb[55].mxu1 }
 0x158   :  { %5822 = vmatmul.mubr.msk.f32.gmra.mrb[18].mxu0 %vm352_vm4, %v5799_v63  ;;  %v1461_v63 = vld [vmem:[%s10127_s6 + $0x88] sm:$0xff] }
 0x159   :  { %1080 = vmatprep.mubr.f32.mxu0 %v7515_v7  ;;  %6775 = vmatpush1.bf16.msra.mxu0 %v6774_v60  ;;  %v6790_v60 = vpack.c.bf16 %v1458_v58, %v1456_v57 }
 0x15a   :  { %1270 = vmatprep.subr.mxu0 %v1237_v1  ;;  %v1463_v1 = vld [vmem:[%s10127_s6 + $0x98] sm:$0xff] }
 0x15c   :  { %5823 = vmatmul.mubr.msk.f32.gmra.mrb[20].mxu0 %vm352_vm4, %v5800_v2  ;;  %v5877_v2 = vld [vmem:[%s10127_s6 + $0x170] sm:$0xff] }
 0x15d   :  { %1086 = vmatprep.mubr.f32.mxu0 %v7515_v7  ;;  %1271 = vmatpush1.msra.mxu0 %v1235_v0  ;;  %v6820_v0 = vpack.c.bf16 %v5880_v62, %v5878_v61 }
 0x15e   :  { %6777 = vmatprep.subr.bf16.mxu0 %v6776_v20  ;;  %v6796_v20 = vpack.c.bf16 %v1467_v16, %v1465_v13  ;;  %v5906_v16 = vld [vmem:[%s10127_s6 + $0x210] sm:$0xff] }
 0x15f   :  { %6821 = vmatprep.subr.bf16.mxu1 %v6820_v0 }
 0x160   :  { %5824 = vmatmul.mubr.msk.f32.gmra.mrb[22].mxu0 %vm352_vm4, %v5801_v3  ;;  %v5879_v3 = vld [vmem:[%s10127_s6 + $0x180] sm:$0xff] }
 0x161   :  { %1092 = vmatprep.mubr.f32.mxu0 %v7515_v7 }
 0x164   :  { %5825 = vmatmul.mubr.msk.f32.gmra.mrb[24].mxu0 %vm352_vm4, %v5802_v4  ;;  %v6792_v4 = vpack.c.bf16 %v1463_v1, %v1461_v63  ;;  %v8278_v63 = vld [vmem:[%s10156_s30] ss:$0 sm:$0xff]  ;;  %s10157_s30 = sld [smem:[#allocation6_spill]] }
 0x165   :  { %1322 = vmatprep.mubr.f32.mxu0 %v7515_v7 }
 0x168   :  { %5849 = vmatmul.mubr.msk.f32.vlgmr.msra.gmra.mrb[14].mxu0 %vm352_vm4, %v5826_v6  ;;  %v6822_v6 = vpack.c.bf16 %v5879_v3, %v5877_v2  ;;  %v5900_v3 = vld [vmem:[%s10127_s6 + $0x1e0] sm:$0xff] }
 0x169   :  { %1328 = vmatprep.mubr.f32.mxu0 %v7515_v7  ;;  %6779 = vmatpush1.bf16.msra.mxu0 %v6778_v25 }
 0x16a   :  { %6781 = vmatprep.subr.bf16.mxu0 %v6780_v30  ;;  %6823 = vmatpush1.bf16.msra.mxu1 %v6822_v6  ;;  %v1469_v30 = vld [vmem:[%s10127_s6 + $0xc8] sm:$0xff] }
 0x16b   :  { %v6800_v33 = vpack.c.bf16 %v1471_v31, %v1469_v30  ;;  %v5905_v6 = vld [vmem:[%s10127_s6 + $0x208] sm:$0xff]  ;;  %v5915_v30 = vld [vmem:[%s10127_s6 + $0x258] sm:$0xff] }
 0x16c   :  { %5850 = vmatmul.mubr.msk.f32.gmra.mrb[16].mxu0 %vm352_vm4, %v5827_v8  ;;  %v1460_v8 = vld [vmem:[%s10127_s6 + $0x80] sm:$0xff] }
 0x16d   :  { %1334 = vmatprep.mubr.f32.mxu0 %v7515_v7  ;;  %6783 = vmatpush1.bf16.msra.mxu0 %v6782_v36  ;;  %v1470_v36 = vld [vmem:[%s10127_s6 + $0xd0] sm:$0xff] }
 0x16e   :  { %6785 = vmatprep.subr.bf16.mxu0 %v6784_v44  ;;  %v6802_v38 = vpack.c.bf16 %v1470_v36, %v1468_v35  ;;  %v1473_v44 = vld [vmem:[%s10127_s6 + $0xe8] sm:$0xff] }
 0x170   :  { %5851 = vmatmul.mubr.msk.f32.gmra.mrb[18].mxu0 %vm352_vm4, %v5828_v9  ;;  %v1462_v9 = vld [vmem:[%s10127_s6 + $0x90] sm:$0xff] }
 0x171   :  { %1340 = vmatprep.mubr.f32.mxu0 %v7515_v7  ;;  %6787 = vmatpush1.bf16.msra.mxu0 %v6786_v48  ;;  %v1472_v48 = vld [vmem:[%s10127_s6 + $0xe0] sm:$0xff] }
 0x172   :  { %6789 = vmatprep.subr.bf16.mxu0 %v6788_v55 }
 0x174   :  { %5852 = vmatmul.mubr.msk.f32.gmra.mrb[20].mxu0 %vm352_vm4, %v5829_v10  ;;  %v6794_v10 = vpack.c.bf16 %v1462_v9, %v1460_v8  ;;  %v5907_v8 = vld [vmem:[%s10127_s6 + $0x218] sm:$0xff] }
 0x175   :  { %1346 = vmatprep.mubr.f32.mxu0 %v7515_v7  ;;  %6791 = vmatpush1.bf16.msra.mxu0 %v6790_v60 }
 0x176   :  { %6793 = vmatprep.subr.bf16.mxu0 %v6792_v4  ;;  %v5902_v4 = vld [vmem:[%s10127_s6 + $0x1f0] sm:$0xff] }
 0x178   :  { %5853 = vmatmul.mubr.msk.f32.gmra.mrb[22].mxu0 %vm352_vm4, %v5830_v11  ;;  %v5882_v11 = vld [vmem:[%s10127_s6 + $0x198] sm:$0xff] }
 0x179   :  { %1352 = vmatprep.mubr.f32.mxu0 %v7515_v7  ;;  %6795 = vmatpush1.bf16.msra.mxu0 %v6794_v10 }
 0x17a   :  { %6797 = vmatprep.subr.bf16.mxu0 %v6796_v20 }
 0x17c   :  { %5854 = vmatmul.mubr.msk.f32.gmra.mrb[24].mxu0 %vm352_vm4, %v5831_v12  ;;  %v5884_v12 = vld [vmem:[%s10127_s6 + $0x1a8] sm:$0xff] }
 0x17d   :  { %1548 = vmatprep.mubr.f32.mxu0 %v7515_v7  ;;  %v6824_v15 = vpack.c.bf16 %v5884_v12, %v5882_v11  ;;  %6799 = vmatpush1.bf16.msra.mxu0 %v6798_v24  ;;  %v6842_v11 = vpack.c.bf16 %v5902_v4, %v5900_v3  ;;  %v5977_v3 = vld [vmem:[%s10127_s6 + $0x3d8] sm:$0xff]  ;;  %v5974_v4 = vld [vmem:[%s10127_s6 + $0x3c0] sm:$0xff] }
 0x17e   :  { %6801 = vmatprep.subr.bf16.mxu0 %v6800_v33 }
 0x17f   :  { %6825 = vmatprep.subr.bf16.mxu1 %v6824_v15  ;;  %v5904_v15 = vld [vmem:[%s10127_s6 + $0x200] sm:$0xff] }
 0x180   :  { %6827 = vmatpush1.bf16.msra.mxu1 %v6826_v21  ;;  %v6846_v23 = vpack.c.bf16 %v5906_v16, %v5904_v15  ;;  %v5978_v15 = vld [vmem:[%s10127_s6 + $0x3e0] sm:$0xff]  ;;  %v5980_v16 = vld [vmem:[%s10127_s6 + $0x3f0] sm:$0xff] }
 0x181   :  { %6829 = vmatprep.subr.bf16.mxu1 %v6828_v29  ;;  %6803 = vmatpush1.bf16.msra.mxu0 %v6802_v38  ;;  %v5913_v29 = vld [vmem:[%s10127_s6 + $0x248] sm:$0xff]  ;;  %v5912_v38 = vld [vmem:[%s10127_s6 + $0x240] sm:$0xff] }
 0x182   :  { %1512 = vmatprep.subr.mxu0 %v1473_v44 }
 0x184   :  { %6831 = vmatpush1.bf16.msra.mxu1 %v6830_v37  ;;  %v6852_v37 = vpack.c.bf16 %v5915_v30, %v5913_v29  ;;  %v5991_v29 = vld [vmem:[%s10127_s6 + $0x448] sm:$0xff]  ;;  %v5993_v30 = vld [vmem:[%s10127_s6 + $0x458] sm:$0xff] }
 0x185   :  { %1629 = vmatprep.subr.mxu1 %v5890_v41  ;;  %1513 = vmatpush1.msra.mxu0 %v1472_v48  ;;  %v6856_v48 = vpack.c.bf16 %v5919_v43, %v5917_v42  ;;  %v5996_v42 = vld [vmem:[%s10127_s6 + $0x470] sm:$0xff]  ;;  %v5999_v43 = vld [vmem:[%s10127_s6 + $0x488] sm:$0xff] }
 0x188   :  { %1630 = vmatpush1.msra.mxu1 %v5889_v45 }
 0x189   :  { %6841 = vmatprep.subr.bf16.mxu1 %v6840_v46 }
 0x23b   :  { %v8191_v14 = vpop.f32.mrb[14].mxu0 }
 0x23c   :  { %1383 = vrot.lane.b32.xlu0 %v8191_v14, %s7516_s3  ;;  %v1326_v19 = vpop.f32.mrb[15].mxu0 }
 0x23f   :  { %v8210_v25 = vpop.f32.mrb[16].mxu0 }
 0x240   :  { %1385 = vrot.lane.b32.xlu0 %v1326_v19, %s7516_s3  ;;  %v1332_v28 = vpop.f32.mrb[17].mxu0  ;;  %v5911_v19 = vld [vmem:[%s10127_s6 + $0x238] sm:$0xff] }
 0x241   :  { %v6848_v27 = vpack.c.bf16 %v5911_v19, %v5909_v18  ;;  %v5985_v18 = vld [vmem:[%s10127_s6 + $0x418] sm:$0xff]  ;;  %v6910_v19 = vpack.c.bf16 %v5980_v16, %v5978_v15 }
 0x243   :  { %v8237_v39 = vpop.f32.mrb[18].mxu0 }
 0x244   :  { %1387 = vrot.lane.b32.xlu0 %v8210_v25, %s7516_s3  ;;  %v1338_v40 = vpop.f32.mrb[19].mxu0 }
 0x247   :  { %v1342_v47 = vpop.f32.mrb[20].mxu0 }
 0x248   :  { %1395 = vrot.lane.b32.xlu1 %v1342_v47, %s7516_s3  ;;  %v1344_v49 = vpop.f32.mrb[21].mxu0 }
 0x24b   :  { %v1348_v50 = vpop.f32.mrb[22].mxu0 }
 0x24c   :  { %1397 = vrot.lane.b32.xlu1 %v1344_v49, %s7516_s3  ;;  %1399 = vrot.lane.b32.xlu0 %v1348_v50, %s7516_s3  ;;  %v1350_v51 = vpop.f32.mrb[23].mxu0  ;;  %v5918_v49 = vld [vmem:[%s10127_s6 + $0x270] sm:$0xff] }
 0x24f   :  { %v8262_v52 = vpop.f32.mrb[24].mxu0 }
 0x250   :  { %1389 = vrot.lane.b32.xlu1 %v1332_v28, %s7516_s3  ;;  %1391 = vrot.lane.b32.xlu0 %v8237_v39, %s7516_s3  ;;  %v1356_v53 = vpop.f32.mrb[25].mxu0  ;;  %v5910_v28 = vld [vmem:[%s10127_s6 + $0x230] sm:$0xff] }
 0x254   :  { %1401 = vrot.lane.b32.xlu1 %v1350_v51, %s7516_s3  ;;  %1403 = vrot.lane.b32.xlu0 %v8262_v52, %s7516_s3  ;;  %v5923_v51 = vld [vmem:[%s10127_s6 + $0x298] sm:$0xff] }
 0x258   :  { %1393 = vrot.lane.b32.xlu1 %v1338_v40, %s7516_s3  ;;  %v5914_v40 = vld [vmem:[%s10127_s6 + $0x250] sm:$0xff] }
 0x259   :  { %v6854_v46 = vpack.c.bf16 %v5914_v40, %v5912_v38 }
 0x25c   :  { %1405 = vrot.lane.b32.xlu1 %v1356_v53, %s7516_s3 }
 0x2ae   :  { %v1384_v54 = vpop.permute.xlu0 %1383 }
 0x2b2   :  { %v1386_v55 = vpop.permute.xlu0 %1385 }
 0x2b3   :  { %v1408_v57 = vsel %vm1407_vm5, %v1384_v54, %v1386_v55 }
 0x2b4   :  { %v1420_v61 = vmax.f32 %v8191_v14, %v1408_v57  ;;  %v6844_v14 = vpack.c.bf16 %v5907_v8, %v5905_v6  ;;  %v5922_v57 = vld [vmem:[%s10127_s6 + $0x290] sm:$0xff]  ;;  %v5979_v8 = vld [vmem:[%s10127_s6 + $0x3e8] sm:$0xff] }
 0x2b5   :  { %v5976_v6 = vld [vmem:[%s10127_s6 + $0x3d0] sm:$0xff] }
 0x2b6   :  { %v1388_v58 = vpop.permute.xlu0 %1387 }
 0x2ba   :  { %v1396_v56 = vpop.permute.xlu1 %1395 }
 0x2be   :  { %v1398_v59 = vpop.permute.xlu1 %1397  ;;  %v1400_v1 = vpop.permute.xlu0 %1399 }
 0x2bf   :  { %v1411_v60 = vsel %vm1407_vm5, %v1396_v56, %v1398_v59  ;;  %v5920_v56 = vld [vmem:[%s10127_s6 + $0x280] sm:$0xff]  ;;  %v5927_v59 = vld [vmem:[%s10127_s6 + $0x2b8] sm:$0xff] }
 0x2c0   :  { %v1423_v62 = vmax.f32 %v1342_v47, %v1411_v60  ;;  %v6862_v60 = vpack.c.bf16 %v5922_v57, %v5920_v56 }
 0x2c2   :  { %v1426_v0 = vmax.f32 %v1420_v61, %v1423_v62  ;;  %v1390_v2 = vpop.permute.xlu1 %1389  ;;  %v1392_v21 = vpop.permute.xlu0 %1391  ;;  %v5924_v62 = vld [vmem:[%s10127_s6 + $0x2a0] sm:$0xff] }
 0x2c3   :  { %v1409_v10 = vsel %vm1407_vm5, %v1388_v58, %v1390_v2  ;;  %v5925_v58 = vld [vmem:[%s10127_s6 + $0x2a8] sm:$0xff] }
 0x2c4   :  { %v1436_v9 = vadd.f32 %v8278_v63, %v1426_v0  ;;  %v1421_v20 = vmax.f32 %v8210_v25, %v1409_v10  ;;  %v5908_v25 = vld [vmem:[%s10127_s6 + $0x220] sm:$0xff]  ;;  %v6864_v61 = vpack.c.bf16 %v5927_v59, %v5925_v58  ;;  %v5975_v2 = vld [vmem:[%s10127_s6 + $0x3c8] sm:$0xff] }
 0x2c5   :  { %v6850_v33 = vpack.c.bf16 %v5910_v28, %v5908_v25  ;;  %v5928_v10 = vld [vmem:[%s10127_s6 + $0x2c0] sm:$0xff]  ;;  %v5988_v28 = vld [vmem:[%s10127_s6 + $0x430] sm:$0xff] }
 0x2c6   :  { %v8294_v12 = vmax.f32 %v1436_v9, 0.0  ;;  %v1402_v13 = vpop.permute.xlu1 %1401  ;;  %v1404_v35 = vpop.permute.xlu0 %1403  ;;  %v5981_v9 = vld [vmem:[%s10127_s6 + $0x3f8] sm:$0xff]  ;;  %v5986_v25 = vld [vmem:[%s10127_s6 + $0x420] sm:$0xff] }
 0x2c7   :  { %v1412_v17 = vsel %vm1407_vm5, %v1400_v1, %v1402_v13  ;;  %v5929_v1 = vld [vmem:[%s10127_s6 + $0x2c8] sm:$0xff]  ;;  %v6906_v13 = vpack.c.bf16 %v5976_v6, %v5974_v4  ;;  %v5859_v4 = vld [vmem:[%s10126_s5 + $0x10] sm:$0xff]  ;;  %v5860_v6 = vld [vmem:[%s10126_s5 + $0x18] sm:$0xff] }
 0x2c8   :  { %v1424_v22 = vmax.f32 %v1348_v50, %v1412_v17  ;;  %5856 = vmatmul.mubr.msk.f32.vlgmr.msra.gmra.mrb[26].mxu0 %vm1474_vm6, %v8294_v12  ;;  %5891 = vmatmul.mubr.msk.f32.vlgmr.msra.gmra.mrb[56].mxu1 %vm1474_vm6, %v8294_v12  ;;  %v5921_v50 = vld [vmem:[%s10127_s6 + $0x288] sm:$0xff] }
 0x2c9   :  { %6843 = vmatpush1.bf16.msra.mxu1 %v6842_v11  ;;  %1554 = vmatprep.mubr.f32.mxu0 %v7515_v7  ;;  %v6860_v55 = vpack.c.bf16 %v5923_v51, %v5921_v50  ;;  %v6904_v11 = vpack.c.bf16 %v5977_v3, %v5975_v2  ;;  %v5983_v17 = vld [vmem:[%s10127_s6 + $0x408] sm:$0xff]  ;;  %v6002_v50 = vld [vmem:[%s10127_s6 + $0x4a0] sm:$0xff] }
 0x2ca   :  { %v1427_v24 = vmax.f32 %v1421_v20, %v1424_v22  ;;  %v1394_v26 = vpop.permute.xlu1 %1393  ;;  %6845 = vmatprep.subr.bf16.mxu1 %v6844_v14  ;;  %1671 = vmatprep.mubr.f32.mxu1 %v7515_v7  ;;  %v6908_v14 = vpack.c.bf16 %v5981_v9, %v5979_v8  ;;  %v6912_v20 = vpack.c.bf16 %v5985_v18, %v5983_v17  ;;  %v5984_v22 = vld [vmem:[%s10127_s6 + $0x410] sm:$0xff]  ;;  %v1442_v8 = vld [vmem:[%s10126_s5] sm:$0xff]  ;;  %v1443_v9 = vld [vmem:[%s10126_s5 + $0x8] sm:$0xff] }
 0x2cb   :  { %v1410_v32 = vsel %vm1407_vm5, %v1392_v21, %v1394_v26  ;;  %v5982_v21 = vld [vmem:[%s10127_s6 + $0x400] sm:$0xff]  ;;  %v5938_v17 = vld [vmem:[%s10127_s6 + $0x2d8] sm:$0xff]  ;;  %v5940_v18 = vld [vmem:[%s10127_s6 + $0x2e8] sm:$0xff] }
 0x2cc   :  { %v1437_v31 = vadd.f32 %v8278_v63, %v1427_v24  ;;  %v1422_v44 = vmax.f32 %v8237_v39, %v1410_v32  ;;  %v5916_v39 = vld [vmem:[%s10127_s6 + $0x260] sm:$0xff]  ;;  %v5989_v24 = vld [vmem:[%s10127_s6 + $0x438] sm:$0xff]  ;;  %v6914_v26 = vpack.c.bf16 %v5984_v22, %v5982_v21  ;;  %v6920_v32 = vpack.c.bf16 %v5993_v30, %v5991_v29  ;;  %v5941_v29 = vld [vmem:[%s10127_s6 + $0x2f0] sm:$0xff] }
 0x2cd   :  { %6847 = vmatpush1.bf16.msra.mxu1 %v6846_v23  ;;  %v6858_v53 = vpack.c.bf16 %v5918_v49, %v5916_v39  ;;  %v5987_v23 = vld [vmem:[%s10127_s6 + $0x428] sm:$0xff]  ;;  %v5939_v21 = vld [vmem:[%s10127_s6 + $0x2e0] sm:$0xff] }
 0x2ce   :  { %v8330_v34 = vmax.f32 %v1437_v31, 0.0  ;;  %v1406_v36 = vpop.permute.xlu1 %1405  ;;  %6849 = vmatprep.subr.bf16.mxu1 %v6848_v27  ;;  %v6916_v27 = vpack.c.bf16 %v5989_v24, %v5987_v23  ;;  %v6918_v31 = vpack.c.bf16 %v5988_v28, %v5986_v25  ;;  %v6003_v49 = vld [vmem:[%s10127_s6 + $0x4a8] sm:$0xff]  ;;  %v5942_v23 = vld [vmem:[%s10127_s6 + $0x2f8] sm:$0xff]  ;;  %v5943_v30 = vld [vmem:[%s10127_s6 + $0x300] sm:$0xff] }
 0x2cf   :  { %v1413_v41 = vsel %vm1407_vm5, %v1404_v35, %v1406_v36  ;;  %v5992_v35 = vld [vmem:[%s10127_s6 + $0x450] sm:$0xff]  ;;  %v5995_v36 = vld [vmem:[%s10127_s6 + $0x468] sm:$0xff] }
 0x2d0   :  { %v1425_v45 = vmax.f32 %v8262_v52, %v1413_v41  ;;  %5857 = vmatmul.mubr.msk.f32.gmra.mrb[28].mxu0 %vm1474_vm6, %v8330_v34  ;;  %5892 = vmatmul.mubr.msk.f32.gmra.mrb[58].mxu1 %vm1474_vm6, %v8330_v34  ;;  %v5994_v41 = vld [vmem:[%s10127_s6 + $0x460] sm:$0xff]  ;;  %v5944_v24 = vld [vmem:[%s10127_s6 + $0x308] sm:$0xff] }
 0x2d1   :  { %6851 = vmatpush1.bf16.msra.mxu1 %v6850_v33  ;;  %1560 = vmatprep.mubr.f32.mxu0 %v7515_v7  ;;  %v5990_v33 = vld [vmem:[%s10127_s6 + $0x440] sm:$0xff]  ;;  %v6876_v28 = vpack.c.bf16 %v5944_v24, %v5942_v23  ;;  %v2852_v23 = vld [vmem:[%s10132_s11 + $0x8] sm:$0xff]  ;;  %v2854_v24 = vld [vmem:[%s10132_s11 + $0x18] sm:$0xff] }
 0x2d2   :  { %v1428_v47 = vmax.f32 %v1422_v44, %v1425_v45  ;;  %6853 = vmatprep.subr.bf16.mxu1 %v6852_v37  ;;  %1677 = vmatprep.mubr.f32.mxu1 %v7515_v7  ;;  %v5997_v37 = vld [vmem:[%s10127_s6 + $0x478] sm:$0xff]  ;;  %v6922_v38 = vpack.c.bf16 %v5992_v35, %v5990_v33  ;;  %v6926_v45 = vpack.c.bf16 %v5996_v42, %v5994_v41  ;;  %v5899_v35 = vld [vmem:[%s10126_s5 + $0x28] sm:$0xff] }
 0x2d3   :  { %v6924_v40 = vpack.c.bf16 %v5997_v37, %v5995_v36  ;;  %v6001_v44 = vld [vmem:[%s10127_s6 + $0x498] sm:$0xff]  ;;  %v6878_v33 = vpack.c.bf16 %v5943_v30, %v5941_v29  ;;  %v5945_v37 = vld [vmem:[%s10127_s6 + $0x310] sm:$0xff]  ;;  %v5952_v41 = vld [vmem:[%s10127_s6 + $0x348] sm:$0xff]  ;;  %v7517_v30 = vmov 0.0|0.0  }
 0x2d4   :  { %v1438_v52 = vadd.f32 %v8278_v63, %v1428_v47  ;;  %v5926_v63 = vld [vmem:[%s10127_s6 + $0x2b0] sm:$0xff]  ;;  %v5998_v47 = vld [vmem:[%s10127_s6 + $0x480] sm:$0xff]  ;;  %v2858_v29 = vld [vmem:[%s10132_s11 + $0x38] sm:$0xf] }
 0x2d5   :  { %6855 = vmatpush1.bf16.msra.mxu1 %v6854_v46  ;;  %v6866_v0 = vpack.c.bf16 %v5926_v63, %v5924_v62  ;;  %v6928_v46 = vpack.c.bf16 %v6001_v44, %v5999_v43  ;;  %v5949_v44 = vld [vmem:[%s10127_s6 + $0x330] sm:$0xff] }
 0x2d6   :  { %v8366_v54 = vmax.f32 %v1438_v52, 0.0  ;;  %6857 = vmatprep.subr.bf16.mxu1 %v6856_v48  ;;  %v6000_v48 = vld [vmem:[%s10127_s6 + $0x490] sm:$0xff] }
 0x2d7   :  { %v6930_v39 = vpack.c.bf16 %v6000_v48, %v5998_v47  ;;  %v5956_v47 = vld [vmem:[%s10127_s6 + $0x368] sm:$0xff] }
 0x2d8   :  { %5858 = vmatmul.mubr.msk.f32.gmra.mrb[30].mxu0 %vm1474_vm6, %v8366_v54  ;;  %5893 = vmatmul.mubr.msk.f32.gmra.mrb[60].mxu1 %vm1474_vm6, %v8366_v54 }
 0x2d9   :  { %6859 = vmatpush1.bf16.msra.mxu1 %v6858_v53  ;;  %1949 = vmatprep.mubr.f32.mxu1 %v7515_v7 }
 0x2da   :  { %6861 = vmatprep.subr.bf16.mxu1 %v6860_v55  ;;  %1755 = vmatprep.mubr.f32.mxu0 %v7515_v7 }
 0x2dd   :  { %6863 = vmatpush1.bf16.msra.mxu1 %v6862_v60 }
 0x2de   :  { %6865 = vmatprep.subr.bf16.mxu1 %v6864_v61 }
 0x2e1   :  { %6867 = vmatpush1.bf16.msra.mxu1 %v6866_v0 }
 0x2e2   :  { %1913 = vmatprep.subr.mxu1 %v5929_v1 }
 0x2e5   :  { %1914 = vmatpush1.msra.mxu1 %v5928_v10 }
 0x2e6   :  { %5930 = vmatmul.mubr.msk.f32.vlgmr.msra.gmra.mrb[62].mxu1 %vm1474_vm6, %v8294_v12  ;;  %6905 = vmatprep.subr.bf16.mxu1 %v6904_v11 }
 0x2e7   :  { %6907 = vmatpush1.bf16.msra.mxu1 %v6906_v13  ;;  %1955 = vmatprep.mubr.f32.mxu1 %v7515_v7 }
 0x2e8   :  { %6909 = vmatprep.subr.bf16.mxu1 %v6908_v14 }
 0x2ea   :  { %5931 = vmatmul.mubr.msk.f32.gmra.mrb[64].mxu1 %vm1474_vm6, %v8330_v34 }
 0x2eb   :  { %6911 = vmatpush1.bf16.msra.mxu1 %v6910_v19  ;;  %1961 = vmatprep.mubr.f32.mxu1 %v7515_v7 }
 0x2ec   :  { %6913 = vmatprep.subr.bf16.mxu1 %v6912_v20  ;;  %v5937_v20 = vld [vmem:[%s10127_s6 + $0x2d0] sm:$0xff] }
 0x2ed   :  { %v6874_v25 = vpack.c.bf16 %v5939_v21, %v5937_v20  ;;  %v5972_v21 = vld [vmem:[%s10126_s5 + $0x40] sm:$0xff] }
 0x2ee   :  { %5932 = vmatmul.mubr.msk.f32.gmra.mrb[66].mxu1 %vm1474_vm6, %v8366_v54 }
 0x2ef   :  { %6915 = vmatpush1.bf16.msra.mxu1 %v6914_v26  ;;  %2357 = vmatprep.mubr.f32.mxu1 %v7515_v7  ;;  %v6872_v26 = vpack.c.bf16 %v5940_v18, %v5938_v17 }
 0x2f0   :  { %6917 = vmatprep.subr.bf16.mxu1 %v6916_v27  ;;  %v5898_v27 = vld [vmem:[%s10126_s5 + $0x20] sm:$0xff] }
 0x2f3   :  { %6919 = vmatpush1.bf16.msra.mxu1 %v6918_v31  ;;  %v5946_v31 = vld [vmem:[%s10127_s6 + $0x318] sm:$0xff] }
 0x2f4   :  { %6921 = vmatprep.subr.bf16.mxu1 %v6920_v32  ;;  %v5948_v32 = vld [vmem:[%s10127_s6 + $0x328] sm:$0xff] }
 0x2f5   :  { %v6880_v36 = vpack.c.bf16 %v5948_v32, %v5946_v31 }
 0x2f7   :  { %6923 = vmatpush1.bf16.msra.mxu1 %v6922_v38  ;;  %v5947_v38 = vld [vmem:[%s10127_s6 + $0x320] sm:$0xff] }
 0x2f8   :  { %6925 = vmatprep.subr.bf16.mxu1 %v6924_v40  ;;  %v5950_v40 = vld [vmem:[%s10127_s6 + $0x338] sm:$0xff]  ;;  %v6882_v42 = vpack.c.bf16 %v5947_v38, %v5945_v37  ;;  %v6061_v37 = vld [vmem:[%s10132_s11 + $0x48] sm:$0xff] }
 0x2f9   :  { %v6884_v43 = vpack.c.bf16 %v5952_v41, %v5950_v40  ;;  %v6063_v38 = vld [vmem:[%s10132_s11 + $0x58] sm:$0xff]  ;;  %v6060_v40 = vld [vmem:[%s10132_s11 + $0x40] sm:$0xff]  ;;  %v6062_v41 = vld [vmem:[%s10132_s11 + $0x50] sm:$0xff] }
 0x2fb   :  { %6927 = vmatpush1.bf16.msra.mxu1 %v6926_v45  ;;  %v5951_v45 = vld [vmem:[%s10127_s6 + $0x340] sm:$0xff] }
 0x2fc   :  { %6929 = vmatprep.subr.bf16.mxu1 %v6928_v46  ;;  %v5954_v46 = vld [vmem:[%s10127_s6 + $0x358] sm:$0xff]  ;;  %v6886_v48 = vpack.c.bf16 %v5951_v45, %v5949_v44  ;;  %v6010_v45 = vld [vmem:[%s10129_s8 + $0x50] sm:$0xff] }
 0x2fd   :  { %v6067_v44 = vld [vmem:[%s10132_s11 + $0x78] sm:$0xf] }
 0x2ff   :  { %6931 = vmatpush1.bf16.msra.mxu1 %v6930_v39  ;;  %v6888_v39 = vpack.c.bf16 %v5956_v47, %v5954_v46  ;;  %v8707_v46 = vld [vmem:[%s10157_s30] sm:$0xff]  ;;  %v7008_v47 = vpack.c.bf16 %v6062_v41, %v6060_v40  ;;  %v2501_v41 = vld [vmem:[%s10129_s8 + $0x48] sm:$0xff] }
 0x300   :  { %2321 = vmatprep.subr.mxu1 %v6003_v49  ;;  %v5953_v49 = vld [vmem:[%s10127_s6 + $0x350] sm:$0xff]  ;;  %v2500_v40 = vld [vmem:[%s10129_s8 + $0x40] sm:$0xff] }
 0x303   :  { %2322 = vmatpush1.msra.mxu1 %v6002_v50  ;;  %v5955_v50 = vld [vmem:[%s10127_s6 + $0x360] sm:$0xff] }
 0x304   :  { %6004 = vmatmul.mubr.msk.f32.vlgmr.msra.gmra.mrb[68].mxu1 %vm1474_vm6, %v8294_v12  ;;  %6936 = vmatprep.subr.bf16.mxu1 %v7517_v30 }
 0x305   :  { %2363 = vmatprep.mubr.f32.mxu1 %v7515_v7 }
 0x308   :  { %6005 = vmatmul.mubr.msk.f32.gmra.mrb[70].mxu1 %vm1474_vm6, %v8330_v34 }
 0x309   :  { %2369 = vmatprep.mubr.f32.mxu1 %v7515_v7 }
 0x30c   :  { %6006 = vmatmul.mubr.msk.f32.gmra.mrb[72].mxu1 %vm1474_vm6, %v8366_v54 }
 0x30d   :  { %6485 = vmatprep.mubr.msk.f32.mxu1 %vm7519_vm8, %v7515_v7 }
 0x39b   :  { %v1550_v51 = vpop.f32.mrb[26].mxu0  ;;  %v1667_v52 = vpop.f32.mrb[56].mxu1 }
 0x39c   :  { %v1552_v53 = vpop.f32.mrb[27].mxu0  ;;  %v1669_v55 = vpop.f32.mrb[57].mxu1 }
 0x3a3   :  { %v1556_v56 = vpop.f32.mrb[28].mxu0  ;;  %v1673_v57 = vpop.f32.mrb[58].mxu1 }
 0x3a4   :  { %v6838_v58 = vpack.c.bf16 %v1556_v56, %v1550_v51  ;;  %v6834_v59 = vpack.c.bf16 %v1673_v57, %v1667_v52  ;;  %v1558_v60 = vpop.f32.mrb[29].mxu0  ;;  %v1675_v61 = vpop.f32.mrb[59].mxu1  ;;  %v5958_v51 = vld [vmem:[%s10127_s6 + $0x378] sm:$0xff]  ;;  %v5960_v52 = vld [vmem:[%s10127_s6 + $0x388] sm:$0xff]  ;;  %v5957_v56 = vld [vmem:[%s10127_s6 + $0x370] sm:$0xff] }
 0x3a5   :  { %v6836_v62 = vpack.c.bf16 %v1558_v60, %v1552_v53  ;;  %v6832_v63 = vpack.c.bf16 %v1675_v61, %v1669_v55  ;;  %v6890_v53 = vpack.c.bf16 %v5955_v50, %v5953_v49  ;;  %v6892_v55 = vpack.c.bf16 %v5960_v52, %v5958_v51  ;;  %v5959_v57 = vld [vmem:[%s10127_s6 + $0x380] sm:$0xff]  ;;  %v6066_v50 = vld [vmem:[%s10132_s11 + $0x70] sm:$0xf]  ;;  %v8724_v52 = vld [vmem:[%s10157_s30 + $0x8] sm:$0xff] }
 0x3a6   :  { %v6064_v49 = vld [vmem:[%s10132_s11 + $0x60] sm:$0xff] }
 0x3a7   :  { %6833 = vmatprep.subr.bf16.mxu0 %v6832_v63 }
 0x3a8   :  { %6835 = vmatpush1.bf16.msra.mxu0 %v6834_v59  ;;  %v5964_v59 = vld [vmem:[%s10127_s6 + $0x3a8] sm:$0xff] }
 0x3ab   :  { %v1562_v0 = vpop.f32.mrb[30].mxu0  ;;  %v1679_v1 = vpop.f32.mrb[60].mxu1 }
 0x3ac   :  { %v1564_v2 = vpop.f32.mrb[31].mxu0  ;;  %v1681_v3 = vpop.f32.mrb[61].mxu1 }
 0x3ad   :  { %1695 = vmatprep.subr.mxu0 %v1681_v3 }
 0x3ae   :  { %1696 = vmatpush1.msra.mxu0 %v1679_v1  ;;  %v5963_v1 = vld [vmem:[%s10127_s6 + $0x3a0] sm:$0xff] }
 0x3af   :  { %6837 = vmatprep.subr.bf16.mxu0 %v6836_v62  ;;  %5894 = vmatmul.mubr.msk.f32.vlgmr.msra.gmra.mrb[32].mxu0 %vm1684_vm7, %v5859_v4  ;;  %v6894_v62 = vpack.c.bf16 %v5959_v57, %v5957_v56  ;;  %v8745_v56 = vld [vmem:[%s10157_s30 + $0x18] sm:$0xff]  ;;  %v8753_v57 = vld [vmem:[%s10157_s30 + $0x20] sm:$0xff] }
 0x3b0   :  { %6839 = vmatpush1.bf16.msra.mxu0 %v6838_v58  ;;  %1761 = vmatprep.mubr.f32.mxu0 %v7515_v7  ;;  %v5962_v58 = vld [vmem:[%s10127_s6 + $0x398] sm:$0xff] }
 0x3b1   :  { %1778 = vmatprep.subr.mxu0 %v1564_v2  ;;  %v6896_v63 = vpack.c.bf16 %v5964_v59, %v5962_v58  ;;  %v8761_v58 = vld [vmem:[%s10157_s30 + $0x28] sm:$0xff]  ;;  %v8769_v59 = vld [vmem:[%s10157_s30 + $0x30] sm:$0xff] }
 0x3b3   :  { %5895 = vmatmul.mubr.msk.f32.gmra.mrb[34].mxu0 %vm1684_vm7, %v5860_v6 }
 0x3b4   :  { %1779 = vmatpush1.msra.mxu0 %v1562_v0  ;;  %1838 = vmatprep.mubr.f32.mxu0 %v7515_v7  ;;  %v5961_v0 = vld [vmem:[%s10127_s6 + $0x390] sm:$0xff] }
 0x3b5   :  { %v6898_v6 = vpack.c.bf16 %v5963_v1, %v5961_v0  ;;  %v6015_v0 = vld [vmem:[%s10129_s8 + $0x78] sm:$0xff] }
 0x3b7   :  { %5896 = vmatmul.mubr.msk.f32.vlgmr.msra.gmra.mrb[32].mxu0 %vm1684_vm7, %v1442_v8 }
 0x3b8   :  { %1844 = vmatprep.mubr.f32.mxu0 %v7515_v7 }
 0x3b9   :  { %v1951_v10 = vpop.f32.mrb[62].mxu1 }
 0x3ba   :  { %v1953_v11 = vpop.f32.mrb[63].mxu1 }
 0x3bb   :  { %5897 = vmatmul.mubr.msk.f32.gmra.mrb[34].mxu0 %vm1684_vm7, %v1443_v9  ;;  %v5966_v9 = vld [vmem:[%s10127_s6 + $0x3b8] sm:$0xff] }
 0x3bc   :  { %2038 = vmatprep.mubr.f32.mxu0 %v7515_v7 }
 0x3bd   :  { %v1957_v13 = vpop.f32.mrb[64].mxu1 }
 0x3be   :  { %v6870_v14 = vpack.c.bf16 %v1957_v13, %v1951_v10  ;;  %v1959_v15 = vpop.f32.mrb[65].mxu1  ;;  %v5965_v13 = vld [vmem:[%s10127_s6 + $0x3b0] sm:$0xff] }
 0x3bf   :  { %v6868_v16 = vpack.c.bf16 %v1959_v15, %v1953_v11 }
 0x3c1   :  { %v1963_v19 = vpop.f32.mrb[66].mxu1  ;;  %6869 = vmatprep.subr.bf16.mxu0 %v6868_v16 }
 0x3c2   :  { %v1965_v22 = vpop.f32.mrb[67].mxu1  ;;  %6871 = vmatpush1.bf16.msra.mxu0 %v6870_v14 }
 0x3c3   :  { %1978 = vmatprep.subr.mxu0 %v1965_v22  ;;  %v5973_v22 = vld [vmem:[%s10126_s5 + $0x48] sm:$0xff] }
 0x3c6   :  { %1979 = vmatpush1.msra.mxu0 %v1963_v19 }
 0x3c7   :  { %6873 = vmatprep.subr.bf16.mxu0 %v6872_v26  ;;  %5933 = vmatmul.mubr.msk.f32.vlgmr.msra.gmra.mrb[32].mxu0 %vm1684_vm7, %v5898_v27  ;;  %v2851_v26 = vld [vmem:[%s10132_s11] sm:$0xff]  ;;  %v6996_v27 = vpack.c.bf16 %v2854_v24, %v2852_v23  ;;  %v2493_v24 = vld [vmem:[%s10129_s8 + $0x8] sm:$0xff] }
 0x3c8   :  { %6875 = vmatpush1.bf16.msra.mxu0 %v6874_v25  ;;  %2044 = vmatprep.mubr.f32.mxu0 %v7515_v7  ;;  %v2853_v25 = vld [vmem:[%s10132_s11 + $0x10] sm:$0xff]  ;;  %v2492_v23 = vld [vmem:[%s10129_s8] sm:$0xff] }
 0x3c9   :  { %6877 = vmatprep.subr.bf16.mxu0 %v6876_v28  ;;  %v2856_v28 = vld [vmem:[%s10132_s11 + $0x28] sm:$0xff]  ;;  %v6998_v31 = vpack.c.bf16 %v2853_v25, %v2851_v26 }
 0x3ca   :  { %v7000_v32 = vpack.c.bf16 %v2858_v29, %v2856_v28  ;;  %v2494_v28 = vld [vmem:[%s10129_s8 + $0x10] sm:$0xff]  ;;  %v2495_v29 = vld [vmem:[%s10129_s8 + $0x18] sm:$0xff] }
 0x3cb   :  { %5934 = vmatmul.mubr.msk.f32.gmra.mrb[34].mxu0 %vm1684_vm7, %v5899_v35  ;;  %v2857_v35 = vld [vmem:[%s10132_s11 + $0x30] sm:$0xf] }
 0x3cc   :  { %6879 = vmatpush1.bf16.msra.mxu0 %v6878_v33  ;;  %2153 = vmatprep.mubr.f32.mxu0 %v7515_v7  ;;  %v2855_v33 = vld [vmem:[%s10132_s11 + $0x20] sm:$0xff] }
 0x3cd   :  { %6881 = vmatprep.subr.bf16.mxu0 %v6880_v36  ;;  %v7003_v36 = vpack.c.bf16 %v2857_v35, %v2855_v33  ;;  %v2497_v33 = vld [vmem:[%s10129_s8 + $0x28] sm:$0xff] }
 0x3d0   :  { %6883 = vmatpush1.bf16.msra.mxu0 %v6882_v42  ;;  %v7006_v42 = vpack.c.bf16 %v6063_v38, %v6061_v37  ;;  %v2499_v37 = vld [vmem:[%s10129_s8 + $0x38] sm:$0xff] }
 0x3d1   :  { %6885 = vmatprep.subr.bf16.mxu0 %v6884_v43  ;;  %v6065_v43 = vld [vmem:[%s10132_s11 + $0x68] sm:$0xff] }
 0x3d4   :  { %6887 = vmatpush1.bf16.msra.mxu0 %v6886_v48  ;;  %v6011_v48 = vld [vmem:[%s10129_s8 + $0x58] sm:$0xff] }
 0x3d5   :  { %6889 = vmatprep.subr.bf16.mxu0 %v6888_v39  ;;  %v7010_v39 = vpack.c.bf16 %v6067_v44, %v6065_v43  ;;  %v6937_v51 = vpack.c.bf16 %v6011_v48, %v6010_v45  ;;  %v6022_v43 = vld [vmem:[%s10129_s8 + $0xa0] sm:$0xff]  ;;  %v6023_v44 = vld [vmem:[%s10129_s8 + $0xa8] sm:$0xff]  ;;  %v6025_v48 = vld [vmem:[%s10129_s8 + $0xb8] sm:$0xff] }
 0x3d6   :  { %v6967_v45 = vpack.c.bf16 %v6023_v44, %v6022_v43  ;;  %v6037_v43 = vld [vmem:[%s10129_s8 + $0x110] sm:$0xff]  ;;  %v6038_v44 = vld [vmem:[%s10129_s8 + $0x118] sm:$0xff] }
 0x3d7   :  { %v2359_v60 = vpop.f32.mrb[68].mxu1  ;;  %6938 = vmatpush3.bf16.msra.mxu1 %v6937_v51  ;;  %v6026_v51 = vld [vmem:[%s10129_s8 + $0xc0] sm:$0xff] }
 0x3d8   :  { %6891 = vmatpush1.bf16.msra.mxu0 %v6890_v53  ;;  %v2361_v61 = vpop.f32.mrb[69].mxu1  ;;  %v7013_v53 = vpack.c.bf16 %v6066_v50, %v6064_v49  ;;  %6939 = vmatprep.subr.bf16.mxu1 %v7517_v30 }
 0x3d9   :  { %6893 = vmatprep.subr.bf16.mxu0 %v6892_v55  ;;  %v8735_v55 = vld [vmem:[%s10157_s30 + $0x10] sm:$0xff]  ;;  %s7518_s30 = smov 48  }
 0x3db   :  { %v2365_v2 = vpop.f32.mrb[70].mxu1 }
 0x3dc   :  { %v6934_v3 = vpack.c.bf16 %v2365_v2, %v2359_v60  ;;  %6895 = vmatpush1.bf16.msra.mxu0 %v6894_v62  ;;  %v2367_v4 = vpop.f32.mrb[71].mxu1  ;;  %v6012_v60 = vld [vmem:[%s10129_s8 + $0x60] sm:$0xff] }
 0x3dd   :  { %v6932_v8 = vpack.c.bf16 %v2367_v4, %v2361_v61  ;;  %6897 = vmatprep.subr.bf16.mxu0 %v6896_v63  ;;  %v6013_v61 = vld [vmem:[%s10129_s8 + $0x68] sm:$0xff]  ;;  %v6014_v63 = vld [vmem:[%s10129_s8 + $0x70] sm:$0xff]  ;;  %v6016_v2 = vld [vmem:[%s10129_s8 + $0x80] sm:$0xff] }
 0x3de   :  { %v6940_v62 = vpack.c.bf16 %v6013_v61, %v6012_v60  ;;  %v6943_v1 = vpack.c.bf16 %v6015_v0, %v6014_v63 }
 0x3df   :  { %v2371_v10 = vpop.f32.mrb[72].mxu1 }
 0x3e0   :  { %6899 = vmatpush1.bf16.msra.mxu0 %v6898_v6  ;;  %v2373_v11 = vpop.f32.mrb[73].mxu1  ;;  %6941 = vmatpush3.bf16.msra.mxu1 %v6940_v62  ;;  %v6018_v6 = vld [vmem:[%s10129_s8 + $0x90] sm:$0xff] }
 0x3e1   :  { %2117 = vmatprep.subr.mxu0 %v5966_v9  ;;  %6942 = vmatprep.subr.bf16.mxu1 %v7517_v30 }
 0x3e4   :  { %2118 = vmatpush1.msra.mxu0 %v5965_v13  ;;  %6944 = vmatpush3.bf16.msra.mxu1 %v6943_v1 }
 0x3e5   :  { %5967 = vmatmul.mubr.msk.f32.vlgmr.msra.gmra.mrb[36].mxu0 %vm1474_vm6, %v8294_v12  ;;  %6945 = vmatprep.subr.bf16.mxu1 %v7517_v30 }
 0x3e6   :  { %2159 = vmatprep.mubr.f32.mxu0 %v7515_v7 }
 0x3e9   :  { %5968 = vmatmul.mubr.msk.f32.gmra.mrb[38].mxu0 %vm1474_vm6, %v8330_v34  ;;  %v5935_v34 = vld [vmem:[%s10126_s5 + $0x30] sm:$0xff] }
 0x3ea   :  { %2165 = vmatprep.mubr.f32.mxu0 %v7515_v7 }
 0x3ed   :  { %5969 = vmatmul.mubr.msk.f32.gmra.mrb[40].mxu0 %vm1474_vm6, %v8366_v54  ;;  %v5936_v54 = vld [vmem:[%s10126_s5 + $0x38] sm:$0xff] }
 0x3ee   :  { %2242 = vmatprep.mubr.f32.mxu0 %v7515_v7 }
 0x4b8   :  { %v2155_v14 = vpop.f32.mrb[36].mxu0 }
 0x4b9   :  { %v2157_v15 = vpop.f32.mrb[37].mxu0 }
 0x4bc   :  { %v2161_v16 = vpop.f32.mrb[38].mxu0 }
 0x4bd   :  { %v6902_v17 = vpack.c.bf16 %v2161_v16, %v2155_v14  ;;  %v2163_v18 = vpop.f32.mrb[39].mxu0 }
 0x4be   :  { %v6900_v19 = vpack.c.bf16 %v2163_v18, %v2157_v15 }
 0x4c0   :  { %v2167_v20 = vpop.f32.mrb[40].mxu0  ;;  %6901 = vmatprep.subr.bf16.mxu0 %v6900_v19 }
 0x4c1   :  { %v2169_v12 = vpop.f32.mrb[41].mxu0  ;;  %6903 = vmatpush1.bf16.msra.mxu0 %v6902_v17 }
 0x4c2   :  { %2182 = vmatprep.subr.mxu0 %v2169_v12 }
 0x4c5   :  { %2183 = vmatpush1.msra.mxu0 %v2167_v20 }
 0x4c6   :  { %5970 = vmatmul.mubr.msk.f32.vlgmr.msra.gmra.mrb[32].mxu0 %vm1684_vm7, %v5935_v34  ;;  %6933 = vmatprep.subr.bf16.mxu0 %v6932_v8  ;;  %v6019_v8 = vld [vmem:[%s10129_s8 + $0x98] sm:$0xff] }
 0x4c7   :  { %6935 = vmatpush1.bf16.msra.mxu0 %v6934_v3  ;;  %2248 = vmatprep.mubr.f32.mxu0 %v7515_v7  ;;  %v6017_v3 = vld [vmem:[%s10129_s8 + $0x88] sm:$0xff]  ;;  %v6949_v9 = vpack.c.bf16 %v6019_v8, %v6018_v6 }
 0x4c8   :  { %2386 = vmatprep.subr.mxu0 %v2373_v11  ;;  %v6946_v4 = vpack.c.bf16 %v6017_v3, %v6016_v2  ;;  %v6028_v3 = vld [vmem:[%s10129_s8 + $0xd0] sm:$0xff] }
 0x4ca   :  { %5971 = vmatmul.mubr.msk.f32.gmra.mrb[34].mxu0 %vm1684_vm7, %v5936_v54  ;;  %6947 = vmatpush3.bf16.msra.mxu1 %v6946_v4  ;;  %v6009_v54 = vld [vmem:[%s10128_s7] ss:$0 sm:$0xff]  ;;  %v6029_v4 = vld [vmem:[%s10129_s8 + $0xd8] sm:$0xff] }
 0x4cb   :  { %2387 = vmatpush1.msra.mxu0 %v2371_v10  ;;  %2446 = vmatprep.mubr.f32.mxu0 %v7515_v7 }
 0x4cc   :  { %6997 = vmatprep.subr.bf16.mxu0 %v6996_v27  ;;  %6948 = vmatprep.subr.bf16.mxu1 %v7517_v30  ;;  %v6952_v27 = vpack.c.bf16 %v2493_v24, %v2492_v23 }
 0x4ce   :  { %6007 = vmatmul.mubr.msk.f32.vlgmr.msra.gmra.mrb[32].mxu0 %vm1684_vm7, %v5972_v21  ;;  %6950 = vmatpush3.bf16.msra.mxu1 %v6949_v9 }
 0x4cf   :  { %2452 = vmatprep.mubr.f32.mxu0 %v7515_v7  ;;  %6999 = vmatpush1.bf16.msra.mxu0 %v6998_v31  ;;  %v6955_v31 = vpack.c.bf16 %v2495_v29, %v2494_v28 }
 0x4d0   :  { %7002 = vmatprep.subr.msk.bf16.mxu0 %vm7638_vm2, %v7000_v32  ;;  %6951 = vmatprep.subr.bf16.mxu1 %v7517_v30  ;;  %v2496_v32 = vld [vmem:[%s10129_s8 + $0x20] sm:$0xff] }
 0x4d1   :  { %v6958_v35 = vpack.c.bf16 %v2497_v33, %v2496_v32  ;;  %v6035_v32 = vld [vmem:[%s10129_s8 + $0x100] sm:$0xff]  ;;  %v6036_v33 = vld [vmem:[%s10129_s8 + $0x108] sm:$0xff] }
 0x4d2   :  { %6008 = vmatmul.mubr.msk.f32.gmra.mrb[34].mxu0 %vm1684_vm7, %v5973_v22 }
 0x4d3   :  { %2950 = vmatprep.mubr.f32.mxu0 %v7515_v7  ;;  %7005 = vmatpush1.bf16.msk.msra.mxu0 %vm7638_vm2, %v7003_v36  ;;  %v2498_v36 = vld [vmem:[%s10129_s8 + $0x30] sm:$0xff] }
 0x4d4   :  { %7007 = vmatprep.subr.bf16.mxu0 %v7006_v42  ;;  %v6961_v38 = vpack.c.bf16 %v2499_v37, %v2498_v36  ;;  %v6964_v42 = vpack.c.bf16 %v2501_v41, %v2500_v40  ;;  %v6985_v40 = vpack.c.bf16 %v6036_v33, %v6035_v32  ;;  %v6100_v32 = vld [vmem:[%s10132_s11 + $0xa8] sm:$0xff]  ;;  %v6102_v33 = vld [vmem:[%s10132_s11 + $0xb8] sm:$0xf] }
 0x4d6   :  { %6047 = vmatmul.mubr.msk.f32.vlgmr.msra.gmra.mrb[42].mxu0 %vm87_vm3, %v8707_v46 }
 0x4d7   :  { %2956 = vmatprep.mubr.f32.mxu0 %v7515_v7  ;;  %7009 = vmatpush1.bf16.msra.mxu0 %v7008_v47  ;;  %v6024_v47 = vld [vmem:[%s10129_s8 + $0xb0] sm:$0xff] }
 0x4d8   :  { %7012 = vmatprep.subr.msk.bf16.mxu0 %vm7638_vm2, %v7010_v39  ;;  %v6970_v49 = vpack.c.bf16 %v6025_v48, %v6024_v47 }
 0x4da   :  { %6048 = vmatmul.mubr.msk.f32.gmra.mrb[44].mxu0 %vm87_vm3, %v8724_v52 }
 0x4db   :  { %2962 = vmatprep.mubr.f32.mxu0 %v7515_v7  ;;  %7015 = vmatpush1.bf16.msk.msra.mxu0 %vm7638_vm2, %v7013_v53  ;;  %v6027_v53 = vld [vmem:[%s10129_s8 + $0xc8] sm:$0xff] }
 0x4dc   :  { %v6973_v1 = vpack.c.bf16 %v6027_v53, %v6026_v51  ;;  %v6988_v51 = vpack.c.bf16 %v6038_v44, %v6037_v43  ;;  %v6160_v43 = vld [vmem:[%s10132_s11 + $0x138] sm:$0xf] }
 0x4de   :  { %6049 = vmatmul.mubr.msk.f32.gmra.mrb[46].mxu0 %vm87_vm3, %v8735_v55 }
 0x4df   :  { %2968 = vmatprep.mubr.f32.mxu0 %v7515_v7 }
 0x4e2   :  { %6050 = vmatmul.mubr.msk.f32.gmra.mrb[48].mxu0 %vm87_vm3, %v8745_v56 }
 0x4e3   :  { %2974 = vmatprep.mubr.f32.mxu0 %v7515_v7 }
 0x4e6   :  { %6051 = vmatmul.mubr.msk.f32.gmra.mrb[50].mxu0 %vm87_vm3, %v8753_v57 }
 0x4e7   :  { %2980 = vmatprep.mubr.f32.mxu0 %v7515_v7 }
 0x4ea   :  { %6052 = vmatmul.mubr.msk.f32.gmra.mrb[52].mxu0 %vm87_vm3, %v8761_v58 }
 0x4eb   :  { %2986 = vmatprep.mubr.f32.mxu0 %v7515_v7 }
 0x4ee   :  { %6053 = vmatmul.mubr.msk.f32.gmra.mrb[54].mxu0 %vm87_vm3, %v8769_v59 }
 0x4ef   :  { %3079 = vmatprep.mubr.f32.mxu0 %v7515_v7 }
 0x4f2   :  { %6070 = vmatmul.mubr.msk.f32.vlgmr.msra.gmra.mrb[56].mxu0 %vm87_vm3, %v8707_v46 }
 0x4f3   :  { %3085 = vmatprep.mubr.f32.mxu0 %v7515_v7 }
 0x4f6   :  { %6071 = vmatmul.mubr.msk.f32.gmra.mrb[58].mxu0 %vm87_vm3, %v8724_v52 }
 0x4f7   :  { %3091 = vmatprep.mubr.f32.mxu0 %v7515_v7 }
 0x4fa   :  { %6072 = vmatmul.mubr.msk.f32.gmra.mrb[60].mxu0 %vm87_vm3, %v8735_v55 }
 0x4fb   :  { %3097 = vmatprep.mubr.f32.mxu0 %v7515_v7 }
 0x4fe   :  { %6073 = vmatmul.mubr.msk.f32.gmra.mrb[62].mxu0 %vm87_vm3, %v8745_v56 }
 0x4ff   :  { %3103 = vmatprep.mubr.f32.mxu0 %v7515_v7 }
 0x502   :  { %6074 = vmatmul.mubr.msk.f32.gmra.mrb[64].mxu0 %vm87_vm3, %v8753_v57 }
 0x503   :  { %3109 = vmatprep.mubr.f32.mxu0 %v7515_v7 }
 0x506   :  { %6075 = vmatmul.mubr.msk.f32.gmra.mrb[66].mxu0 %vm87_vm3, %v8761_v58 }
 0x507   :  { %3115 = vmatprep.mubr.f32.mxu0 %v7515_v7 }
 0x50a   :  { %6076 = vmatmul.mubr.msk.f32.gmra.mrb[68].mxu0 %vm87_vm3, %v8769_v59 }
 0x50b   :  { %3204 = vmatprep.mubr.f32.mxu0 %v7515_v7 }
 0x5a1   :  { %v2448_v10 = vpop.f32.mrb[32].mxu0 }
 0x5a2   :  { %2467 = vrot.lane.b32.xlu0 %v2448_v10, %s7518_s30  ;;  %v2450_v11 = vpop.f32.mrb[33].mxu0 }
 0x5a3   :  { %2469 = vrot.lane.b32.xlu1 %v2450_v11, %s7518_s30 }
 0x5a5   :  { %v2454_v13 = vpop.f32.mrb[34].mxu0 }
 0x5a6   :  { %2471 = vrot.lane.b32.xlu0 %v2454_v13, %s7518_s30  ;;  %v2456_v14 = vpop.f32.mrb[35].mxu0 }
 0x5a7   :  { %2473 = vrot.lane.b32.xlu1 %v2456_v14, %s7518_s30 }
 0x5a9   :  { %v8889_v39 = vpop.f32.mrb[42].mxu0 }
 0x5aa   :  { %v8893_v50 = vpop.f32.mrb[43].mxu0 }
 0x5ad   :  { %v8902_v60 = vpop.f32.mrb[44].mxu0 }
 0x5ae   :  { %v7030_v61 = vpack.c.bf16 %v8902_v60, %v8889_v39  ;;  %v8906_v62 = vpop.f32.mrb[45].mxu0  ;;  %v6099_v39 = vld [vmem:[%s10132_s11 + $0xa0] sm:$0xff]  ;;  %v6101_v60 = vld [vmem:[%s10132_s11 + $0xb0] sm:$0xf] }
 0x5af   :  { %v7028_v63 = vpack.c.bf16 %v8906_v62, %v8893_v50  ;;  %v7044_v62 = vpack.c.bf16 %v6102_v33, %v6100_v32  ;;  %v6089_v33 = vld [vmem:[%s10131_s10 + $0x60] sm:$0xff] }
 0x5b1   :  { %v8910_v0 = vpop.f32.mrb[46].mxu0 }
 0x5b2   :  { %v8912_v2 = vpop.f32.mrb[47].mxu0 }
 0x5b5   :  { %v8921_v6 = vpop.f32.mrb[48].mxu0 }
 0x5b6   :  { %v7034_v8 = vpack.c.bf16 %v8921_v6, %v8910_v0  ;;  %v8925_v9 = vpop.f32.mrb[49].mxu0  ;;  %v6129_v0 = vld [vmem:[%s10132_s11 + $0xe8] sm:$0xff]  ;;  %v6131_v6 = vld [vmem:[%s10132_s11 + $0xf8] sm:$0xf] }
 0x5b9   :  { %v8929_v11 = vpop.f32.mrb[50].mxu0 }
 0x5ba   :  { %v8931_v14 = vpop.f32.mrb[51].mxu0 }
 0x614   :  { %v2468_v15 = vpop.permute.xlu0 %2467 }
 0x615   :  { %v2470_v16 = vpop.permute.xlu1 %2469 }
 0x616   :  { %v2476_v17 = vsel %vm2475_vm9, %v2468_v15, %v2470_v16  ;;  %v6030_v15 = vld [vmem:[%s10129_s8 + $0xe0] sm:$0xff]  ;;  %v6031_v16 = vld [vmem:[%s10129_s8 + $0xe8] sm:$0xff] }
 0x617   :  { %v2480_v12 = vmax.f32 %v2448_v10, %v2476_v17  ;;  %v7032_v10 = vpack.c.bf16 %v8925_v9, %v8912_v2  ;;  %v8940_v17 = vpop.f32.mrb[52].mxu0  ;;  %v6124_v9 = vld [vmem:[%s10132_s11 + $0xc0] sm:$0xff] }
 0x618   :  { %v2472_v18 = vpop.permute.xlu0 %2471 }
 0x619   :  { %v2474_v19 = vpop.permute.xlu1 %2473 }
 0x61a   :  { %v2477_v20 = vsel %vm2475_vm9, %v2472_v18, %v2474_v19  ;;  %v7038_v18 = vpack.c.bf16 %v8940_v17, %v8929_v11  ;;  %v8944_v19 = vpop.f32.mrb[53].mxu0  ;;  %v6154_v11 = vld [vmem:[%s10132_s11 + $0x108] sm:$0xff]  ;;  %v6156_v17 = vld [vmem:[%s10132_s11 + $0x118] sm:$0xff] }
 0x61b   :  { %v2481_v34 = vmax.f32 %v2454_v13, %v2477_v20  ;;  %v6976_v13 = vpack.c.bf16 %v6029_v4, %v6028_v3  ;;  %v7036_v20 = vpack.c.bf16 %v8944_v19, %v8931_v14  ;;  %v6039_v3 = vld [vmem:[%s10129_s8 + $0x120] sm:$0xff]  ;;  %v6040_v4 = vld [vmem:[%s10129_s8 + $0x128] sm:$0xff]  ;;  %v7066_v19 = vpack.c.bf16 %v6131_v6, %v6129_v0 }
 0x61d   :  { %v2482_v21 = vmax.f32 %v2480_v12, %v2481_v34  ;;  %v8948_v12 = vpop.f32.mrb[54].mxu0  ;;  %v6979_v34 = vpack.c.bf16 %v6031_v16, %v6030_v15 }
 0x61f   :  { %v2490_v22 = vadd.f32 %v6009_v54, %v2482_v21  ;;  %v8950_v54 = vpop.f32.mrb[55].mxu0  ;;  %v6033_v21 = vld [vmem:[%s10129_s8 + $0xf0] sm:$0xff] }
 0x620   :  { %v3081_v23 = vpop.f32.mrb[56].mxu0 }
 0x621   :  { %v8840_v26 = vmax.f32 %v2490_v22, 0.0  ;;  %v6034_v22 = vld [vmem:[%s10129_s8 + $0xf8] sm:$0xff]  ;;  %v3083_v24 = vpop.f32.mrb[57].mxu0 }
 0x623   :  { %v2514_v25 = vrot.slane %v8840_v26, 2  ;;  %v2756_v50 = vrot.slane %v8840_v26, 6 }
 0x625   :  { %6486 = vmatmul.mubr.msk.f32.vlgmr.msra.gmra.mrb[74].mxu1 %vm2515_vm10, %v2514_v25  ;;  %v6982_v25 = vpack.c.bf16 %v6034_v22, %v6033_v21  ;;  %v6041_v21 = vld [vmem:[%s10129_s8 + $0x130] sm:$0xff]  ;;  %v6042_v22 = vld [vmem:[%s10129_s8 + $0x138] sm:$0xff] }
 0x626   :  { %6953 = vmatpush3.bf16.msra.mxu1 %v6952_v27  ;;  %6508 = vmatprep.mubr.msk.f32.mxu1 %vm7519_vm8, %v7515_v7  ;;  %v3087_v27 = vpop.f32.mrb[58].mxu0 }
 0x627   :  { %6954 = vmatprep.subr.bf16.mxu1 %v7517_v30  ;;  %v7018_v28 = vpack.c.bf16 %v3087_v27, %v3081_v23  ;;  %v3089_v29 = vpop.f32.mrb[59].mxu0  ;;  %v6096_v23 = vld [vmem:[%s10132_s11 + $0x88] sm:$0xff]  ;;  %v6054_v27 = vld [vmem:[%s10131_s10 + $0x30] sm:$0xff] }
 0x628   :  { %v3093_v36 = vpop.f32.mrb[60].mxu0 }
 0x629   :  { %v3095_v37 = vpop.f32.mrb[61].mxu0 }
 0x62a   :  { %6956 = vmatpush3.bf16.msra.mxu1 %v6955_v31  ;;  %v2671_v31 = vrot.slane %v8840_v26, 4 }
 0x62b   :  { %6957 = vmatprep.subr.bf16.mxu1 %v7517_v30 }
 0x62e   :  { %6959 = vmatpush3.bf16.msra.mxu1 %v6958_v35  ;;  %v7016_v35 = vpack.c.bf16 %v3089_v29, %v3083_v24  ;;  %v6098_v24 = vld [vmem:[%s10132_s11 + $0x98] sm:$0xff]  ;;  %v6095_v29 = vld [vmem:[%s10132_s11 + $0x80] sm:$0xff] }
 0x62f   :  { %6960 = vmatprep.subr.bf16.mxu1 %v7517_v30 }
 0x630   :  { %7017 = vmatprep.subr.bf16.mxu0 %v7016_v35  ;;  %v6055_v35 = vld [vmem:[%s10131_s10 + $0x38] sm:$0xff] }
 0x631   :  { %7019 = vmatpush1.bf16.msra.mxu0 %v7018_v28  ;;  %v7040_v28 = vpack.c.bf16 %v6098_v24, %v6096_v23 }
 0x632   :  { %6962 = vmatpush3.bf16.msra.mxu1 %v6961_v38  ;;  %v3099_v38 = vpop.f32.mrb[62].mxu0 }
 0x633   :  { %6963 = vmatprep.subr.bf16.mxu1 %v7517_v30  ;;  %v7022_v41 = vpack.c.bf16 %v3099_v38, %v3093_v36  ;;  %v7084_v38 = vpack.c.bf16 %v6156_v17, %v6154_v11 }
 0x636   :  { %6965 = vmatpush3.bf16.msra.mxu1 %v6964_v42  ;;  %v3101_v42 = vpop.f32.mrb[63].mxu0 }
 0x637   :  { %6966 = vmatprep.subr.bf16.mxu1 %v7517_v30  ;;  %v3105_v47 = vpop.f32.mrb[64].mxu0 }
 0x638   :  { %v3107_v48 = vpop.f32.mrb[65].mxu0 }
 0x639   :  { %6509 = vmatmul.mubr.msk.f32.vlgmr.msra.gmra.mrb[74].mxu1 %vm2515_vm10, %v8840_v26  ;;  %v7047_v26 = vpack.c.bf16 %v6101_v60, %v6099_v39 }
 0x63a   :  { %6968 = vmatpush3.bf16.msra.mxu1 %v6967_v45  ;;  %6531 = vmatprep.mubr.msk.f32.mxu1 %vm7519_vm8, %v7515_v7  ;;  %v7020_v45 = vpack.c.bf16 %v3101_v42, %v3095_v37  ;;  %v6130_v37 = vld [vmem:[%s10132_s11 + $0xf0] sm:$0xf]  ;;  %v6158_v42 = vld [vmem:[%s10132_s11 + $0x128] sm:$0xff] }
 0x63b   :  { %6969 = vmatprep.subr.bf16.mxu1 %v7517_v30 }
 0x63c   :  { %7021 = vmatprep.subr.bf16.mxu0 %v7020_v45  ;;  %v7088_v45 = vpack.c.bf16 %v6160_v43, %v6158_v42  ;;  %v6119_v43 = vld [vmem:[%s10131_s10 + $0x98] sm:$0xff] }
 0x63d   :  { %7023 = vmatpush1.bf16.msra.mxu0 %v7022_v41  ;;  %v6155_v41 = vld [vmem:[%s10132_s11 + $0x110] sm:$0xff] }
 0x63e   :  { %6971 = vmatpush3.bf16.msra.mxu1 %v6970_v49  ;;  %v3111_v49 = vpop.f32.mrb[66].mxu0 }
 0x63f   :  { %6972 = vmatprep.subr.bf16.mxu1 %v7517_v30  ;;  %v7026_v53 = vpack.c.bf16 %v3111_v49, %v3105_v47  ;;  %v6157_v47 = vld [vmem:[%s10132_s11 + $0x120] sm:$0xff] }
 0x642   :  { %6974 = vmatpush3.bf16.msra.mxu1 %v6973_v1  ;;  %v3113_v1 = vpop.f32.mrb[67].mxu0 }
 0x643   :  { %6975 = vmatprep.subr.bf16.mxu1 %v7517_v30  ;;  %v3117_v15 = vpop.f32.mrb[68].mxu0 }
 0x644   :  { %v3119_v16 = vpop.f32.mrb[69].mxu0 }
 0x646   :  { %6977 = vmatpush3.bf16.msra.mxu1 %v6976_v13  ;;  %v7024_v13 = vpack.c.bf16 %v3113_v1, %v3107_v48  ;;  %v6159_v48 = vld [vmem:[%s10132_s11 + $0x130] sm:$0xf] }
 0x647   :  { %6978 = vmatprep.subr.bf16.mxu1 %v7517_v30  ;;  %v7091_v49 = vpack.c.bf16 %v6159_v48, %v6157_v47 }
 0x648   :  { %7025 = vmatprep.subr.bf16.mxu0 %v7024_v13 }
 0x649   :  { %7027 = vmatpush1.bf16.msra.mxu0 %v7026_v53 }
 0x64a   :  { %6980 = vmatpush3.bf16.msra.mxu1 %v6979_v34  ;;  %v6991_v34 = vpack.c.bf16 %v6040_v4, %v6039_v3  ;;  %3152 = vmatprep.subr.mxu0 %v3119_v16 }
 0x64b   :  { %6981 = vmatprep.subr.bf16.mxu1 %v7517_v30 }
 0x64d   :  { %6532 = vmatmul.mubr.msk.f32.vlgmr.msra.gmra.mrb[74].mxu1 %vm2515_vm10, %v2671_v31  ;;  %v6097_v31 = vld [vmem:[%s10132_s11 + $0x90] sm:$0xff]  ;;  %3153 = vmatpush1.msra.mxu0 %v3117_v15 }
 0x64e   :  { %6983 = vmatpush3.bf16.msra.mxu1 %v6982_v25  ;;  %6554 = vmatprep.mubr.msk.f32.mxu1 %vm7519_vm8, %v7515_v7  ;;  %v6994_v25 = vpack.c.bf16 %v6042_v22, %v6041_v21  ;;  %v7042_v36 = vpack.c.bf16 %v6097_v31, %v6095_v29 }
 0x64f   :  { %6984 = vmatprep.subr.bf16.mxu1 %v7517_v30  ;;  %7029 = vmatprep.subr.bf16.mxu0 %v7028_v63  ;;  %v6127_v63 = vld [vmem:[%s10132_s11 + $0xd8] sm:$0xff] }
 0x650   :  { %6077 = vmatmul.mubr.msk.f32.vlgmr.msra.gmra.mrb[70].mxu0 %vm352_vm4, %v6054_v27 }
 0x651   :  { %7031 = vmatpush1.bf16.msra.mxu0 %v7030_v61  ;;  %3210 = vmatprep.mubr.f32.mxu0 %v7515_v7  ;;  %v6125_v61 = vld [vmem:[%s10132_s11 + $0xc8] sm:$0xff] }
 0x652   :  { %6986 = vmatpush3.bf16.msra.mxu1 %v6985_v40  ;;  %7033 = vmatprep.subr.bf16.mxu0 %v7032_v10  ;;  %v7062_v2 = vpack.c.bf16 %v6127_v63, %v6125_v61  ;;  %v6126_v10 = vld [vmem:[%s10132_s11 + $0xd0] sm:$0xff] }
 0x653   :  { %6987 = vmatprep.subr.bf16.mxu1 %v7517_v30  ;;  %v7064_v14 = vpack.c.bf16 %v6126_v10, %v6124_v9  ;;  %v6058_v40 = vld [vmem:[%s10131_s10 + $0x50] sm:$0xff]  ;;  %v6092_v9 = vld [vmem:[%s10131_s10 + $0x78] sm:$0xff] }
 0x654   :  { %6078 = vmatmul.mubr.msk.f32.gmra.mrb[72].mxu0 %vm352_vm4, %v6055_v35  ;;  %v6091_v63 = vld [vmem:[%s10131_s10 + $0x70] sm:$0xff] }
 0x655   :  { %7035 = vmatpush1.bf16.msra.mxu0 %v7034_v8  ;;  %3216 = vmatprep.mubr.f32.mxu0 %v7515_v7  ;;  %v6056_v8 = vld [vmem:[%s10131_s10 + $0x40] sm:$0xff] }
 0x656   :  { %6989 = vmatpush3.bf16.msra.mxu1 %v6988_v51  ;;  %7037 = vmatprep.subr.bf16.mxu0 %v7036_v20  ;;  %v6128_v20 = vld [vmem:[%s10132_s11 + $0xe0] sm:$0xff] }
 0x657   :  { %6990 = vmatprep.subr.bf16.mxu1 %v7517_v30 }
 0x658   :  { %6079 = vmatmul.mubr.msk.f32.gmra.mrb[74].mxu0 %vm352_vm4, %v6056_v8 }
 0x659   :  { %7039 = vmatpush1.bf16.msra.mxu0 %v7038_v18  ;;  %3222 = vmatprep.mubr.f32.mxu0 %v7515_v7  ;;  %v6057_v18 = vld [vmem:[%s10131_s10 + $0x48] sm:$0xff] }
 0x65a   :  { %6992 = vmatpush3.bf16.msra.mxu1 %v6991_v34  ;;  %3271 = vmatprep.subr.mxu0 %v8950_v54  ;;  %v7069_v54 = vpack.c.bf16 %v6130_v37, %v6128_v20  ;;  %v6094_v37 = vld [vmem:[%s10131_s10 + $0x88] sm:$0xff] }
 0x65b   :  { %6993 = vmatprep.subr.bf16.mxu1 %v7517_v30 }
 0x65c   :  { %6080 = vmatmul.mubr.msk.f32.gmra.mrb[76].mxu0 %vm352_vm4, %v6057_v18 }
 0x65d   :  { %3272 = vmatpush1.msra.mxu0 %v8948_v12  ;;  %3228 = vmatprep.mubr.f32.mxu0 %v7515_v7  ;;  %v6153_v12 = vld [vmem:[%s10132_s11 + $0x100] sm:$0xff] }
 0x65e   :  { %6995 = vmatpush3.bf16.msra.mxu1 %v6994_v25  ;;  %v7086_v44 = vpack.c.bf16 %v6155_v41, %v6153_v12  ;;  %v6118_v12 = vld [vmem:[%s10131_s10 + $0x90] sm:$0xff] }
 0x65f   :  { %7041 = vmatprep.subr.bf16.mxu1 %v7040_v28 }
 0x660   :  { %6081 = vmatmul.mubr.msk.f32.gmra.mrb[78].mxu0 %vm352_vm4, %v6058_v40 }
 0x661   :  { %6555 = vmatmul.mubr.msk.f32.vlgmr.msra.gmra.mrb[74].mxu1 %vm2515_vm10, %v2756_v50  ;;  %3234 = vmatprep.mubr.f32.mxu0 %v7515_v7  ;;  %v6090_v50 = vld [vmem:[%s10131_s10 + $0x68] sm:$0xff] }
 0x662   :  { %7043 = vmatpush1.bf16.msra.mxu1 %v7042_v36  ;;  %3446 = vmatprep.mubr.f32.mxu1 %v7515_v7 }
 0x663   :  { %7046 = vmatprep.subr.msk.bf16.mxu1 %vm7638_vm2, %v7044_v62 }
 0x664   :  { %6082 = vmatmul.mubr.msk.f32.gmra.mrb[80].mxu0 %vm352_vm4, %v6059_v5 }
 0x665   :  { %3323 = vmatprep.mubr.f32.mxu0 %v7515_v7 }
 0x666   :  { %7049 = vmatpush1.bf16.msk.msra.mxu1 %vm7638_vm2, %v7047_v26 }
 0x667   :  { %7063 = vmatprep.subr.bf16.mxu1 %v7062_v2 }
 0x669   :  { %6105 = vmatmul.mubr.msk.f32.vlgmr.msra.gmra.mrb[76].mxu1 %vm87_vm3, %v8707_v46 }
 0x66a   :  { %3452 = vmatprep.mubr.f32.mxu1 %v7515_v7  ;;  %7065 = vmatpush1.bf16.msra.mxu1 %v7064_v14  ;;  %v6093_v14 = vld [vmem:[%s10131_s10 + $0x80] sm:$0xff] }
 0x66b   :  { %7068 = vmatprep.subr.msk.bf16.mxu1 %vm7638_vm2, %v7066_v19 }
 0x66d   :  { %6106 = vmatmul.mubr.msk.f32.gmra.mrb[78].mxu1 %vm87_vm3, %v8724_v52 }
 0x66e   :  { %3458 = vmatprep.mubr.f32.mxu1 %v7515_v7  ;;  %7071 = vmatpush1.bf16.msk.msra.mxu1 %vm7638_vm2, %v7069_v54 }
 0x66f   :  { %7085 = vmatprep.subr.bf16.mxu1 %v7084_v38 }
 0x671   :  { %6107 = vmatmul.mubr.msk.f32.gmra.mrb[80].mxu1 %vm87_vm3, %v8735_v55 }
 0x672   :  { %3464 = vmatprep.mubr.f32.mxu1 %v7515_v7 }
 0x675   :  { %6108 = vmatmul.mubr.msk.f32.gmra.mrb[82].mxu1 %vm87_vm3, %v8745_v56 }
 0x676   :  { %3470 = vmatprep.mubr.f32.mxu1 %v7515_v7 }
 0x679   :  { %6109 = vmatmul.mubr.msk.f32.gmra.mrb[84].mxu1 %vm87_vm3, %v8753_v57 }
 0x67a   :  { %3476 = vmatprep.mubr.f32.mxu1 %v7515_v7 }
 0x67d   :  { %6110 = vmatmul.mubr.msk.f32.gmra.mrb[86].mxu1 %vm87_vm3, %v8761_v58 }
 0x67e   :  { %3482 = vmatprep.mubr.f32.mxu1 %v7515_v7 }
 0x681   :  { %6111 = vmatmul.mubr.msk.f32.gmra.mrb[88].mxu1 %vm87_vm3, %v8769_v59 }
 0x682   :  { %3706 = vmatprep.mubr.f32.mxu1 %v7515_v7 }
 0x685   :  { %6134 = vmatmul.mubr.msk.f32.vlgmr.msra.gmra.mrb[90].mxu1 %vm87_vm3, %v8707_v46 }
 0x686   :  { %3712 = vmatprep.mubr.f32.mxu1 %v7515_v7  ;;  %7087 = vmatpush1.bf16.msra.mxu1 %v7086_v44 }
 0x687   :  { %7090 = vmatprep.subr.msk.bf16.mxu1 %vm7638_vm2, %v7088_v45 }
 0x689   :  { %6135 = vmatmul.mubr.msk.f32.gmra.mrb[92].mxu1 %vm87_vm3, %v8724_v52 }
 0x68a   :  { %3718 = vmatprep.mubr.f32.mxu1 %v7515_v7  ;;  %7093 = vmatpush1.bf16.msk.msra.mxu1 %vm7638_vm2, %v7091_v49  ;;  %v6120_v49 = vld [vmem:[%s10131_s10 + $0xa0] sm:$0xff] }
 0x68d   :  { %6136 = vmatmul.mubr.msk.f32.gmra.mrb[94].mxu1 %vm87_vm3, %v8735_v55 }
 0x68e   :  { %3724 = vmatprep.mubr.f32.mxu1 %v7515_v7 }
 0x691   :  { %6137 = vmatmul.mubr.msk.f32.gmra.mrb[96].mxu1 %vm87_vm3, %v8745_v56 }
 0x692   :  { %3730 = vmatprep.mubr.f32.mxu1 %v7515_v7 }
 0x695   :  { %6138 = vmatmul.mubr.msk.f32.gmra.mrb[98].mxu1 %vm87_vm3, %v8753_v57 }
 0x696   :  { %3736 = vmatprep.mubr.f32.mxu1 %v7515_v7 }
 0x699   :  { %6139 = vmatmul.mubr.msk.f32.gmra.mrb[100].mxu1 %vm87_vm3, %v8761_v58 }
 0x69a   :  { %3742 = vmatprep.mubr.f32.mxu1 %v7515_v7 }
 0x69d   :  { %6140 = vmatmul.mubr.msk.f32.gmra.mrb[102].mxu1 %vm87_vm3, %v8769_v59 }
 0x69e   :  { %3966 = vmatprep.mubr.f32.mxu1 %v7515_v7 }
 0x6a1   :  { %6163 = vmatmul.mubr.msk.f32.vlgmr.msra.gmra.mrb[104].mxu1 %vm87_vm3, %v8707_v46  ;;  %v2845_v46 = vld [vmem:[%s10131_s10] sm:$0xff] }
 0x6a2   :  { %3972 = vmatprep.mubr.f32.mxu1 %v7515_v7  ;;  %6083 = vmatmul.mubr.msk.f32.vlgmr.msra.gmra.mrb[70].mxu0 %vm352_vm4, %v2845_v46 }
 0x6a3   :  { %3329 = vmatprep.mubr.f32.mxu0 %v7515_v7 }
 0x6a5   :  { %6164 = vmatmul.mubr.msk.f32.gmra.mrb[106].mxu1 %vm87_vm3, %v8724_v52  ;;  %v2846_v52 = vld [vmem:[%s10131_s10 + $0x8] sm:$0xff] }
 0x6a6   :  { %3978 = vmatprep.mubr.f32.mxu1 %v7515_v7  ;;  %6084 = vmatmul.mubr.msk.f32.gmra.mrb[72].mxu0 %vm352_vm4, %v2846_v52  ;;  %v6121_v52 = vld [vmem:[%s10131_s10 + $0xa8] sm:$0xff] }
 0x6a7   :  { %3335 = vmatprep.mubr.f32.mxu0 %v7515_v7 }
 0x6a9   :  { %6165 = vmatmul.mubr.msk.f32.gmra.mrb[108].mxu1 %vm87_vm3, %v8735_v55  ;;  %v2847_v55 = vld [vmem:[%s10131_s10 + $0x10] sm:$0xff] }
 0x6aa   :  { %3984 = vmatprep.mubr.f32.mxu1 %v7515_v7  ;;  %6085 = vmatmul.mubr.msk.f32.gmra.mrb[74].mxu0 %vm352_vm4, %v2847_v55 }
 0x6ab   :  { %3341 = vmatprep.mubr.f32.mxu0 %v7515_v7 }
 0x6ad   :  { %6166 = vmatmul.mubr.msk.f32.gmra.mrb[110].mxu1 %vm87_vm3, %v8745_v56  ;;  %v2848_v56 = vld [vmem:[%s10131_s10 + $0x18] sm:$0xff] }
 0x6ae   :  { %3990 = vmatprep.mubr.f32.mxu1 %v7515_v7  ;;  %6086 = vmatmul.mubr.msk.f32.gmra.mrb[76].mxu0 %vm352_vm4, %v2848_v56 }
 0x6af   :  { %3347 = vmatprep.mubr.f32.mxu0 %v7515_v7 }
 0x6b1   :  { %6167 = vmatmul.mubr.msk.f32.gmra.mrb[112].mxu1 %vm87_vm3, %v8753_v57  ;;  %v2849_v57 = vld [vmem:[%s10131_s10 + $0x20] sm:$0xff] }
 0x6b2   :  { %3996 = vmatprep.mubr.f32.mxu1 %v7515_v7  ;;  %6087 = vmatmul.mubr.msk.f32.gmra.mrb[78].mxu0 %vm352_vm4, %v2849_v57 }
 0x6b3   :  { %3353 = vmatprep.mubr.f32.mxu0 %v7515_v7 }
 0x6b5   :  { %6168 = vmatmul.mubr.msk.f32.gmra.mrb[114].mxu1 %vm87_vm3, %v8761_v58  ;;  %v2850_v58 = vld [vmem:[%s10131_s10 + $0x28] sm:$0xff] }
 0x6b6   :  { %4002 = vmatprep.mubr.f32.mxu1 %v7515_v7  ;;  %6088 = vmatmul.mubr.msk.f32.gmra.mrb[80].mxu0 %vm352_vm4, %v2850_v58 }
 0x6b7   :  { %3571 = vmatprep.mubr.f32.mxu0 %v7515_v7 }
 0x6b9   :  { %6169 = vmatmul.mubr.msk.f32.gmra.mrb[116].mxu1 %vm87_vm3, %v8769_v59 }
 0x6ba   :  { %4315 = vmatprep.mubr.f32.mxu1 %v7515_v7 }
 0x73c   :  { %v3448_v59 = vpop.f32.mrb[76].mxu1 }
 0x73d   :  { %v3450_v51 = vpop.f32.mrb[77].mxu1 }
 0x740   :  { %v3454_v53 = vpop.f32.mrb[78].mxu1 }
 0x741   :  { %v7052_v1 = vpack.c.bf16 %v3454_v53, %v3448_v59  ;;  %v3456_v3 = vpop.f32.mrb[79].mxu1  ;;  %v6122_v59 = vld [vmem:[%s10131_s10 + $0xb0] sm:$0xff] }
 0x742   :  { %v7050_v4 = vpack.c.bf16 %v3456_v3, %v3450_v51 }
 0x744   :  { %7051 = vmatprep.subr.bf16.mxu0 %v7050_v4  ;;  %v3460_v13 = vpop.f32.mrb[80].mxu1 }
 0x745   :  { %7053 = vmatpush1.bf16.msra.mxu0 %v7052_v1  ;;  %v3462_v15 = vpop.f32.mrb[81].mxu1  ;;  %v6123_v1 = vld [vmem:[%s10131_s10 + $0xb8] sm:$0xff] }
 0x748   :  { %v3466_v16 = vpop.f32.mrb[82].mxu1 }
 0x749   :  { %v7056_v34 = vpack.c.bf16 %v3466_v16, %v3460_v13  ;;  %v3468_v21 = vpop.f32.mrb[83].mxu1 }
 0x74a   :  { %v7054_v22 = vpack.c.bf16 %v3468_v21, %v3462_v15  ;;  %v6147_v21 = vld [vmem:[%s10131_s10 + $0xc0] sm:$0xff] }
 0x74c   :  { %7055 = vmatprep.subr.bf16.mxu0 %v7054_v22  ;;  %v3472_v23 = vpop.f32.mrb[84].mxu1  ;;  %v6148_v22 = vld [vmem:[%s10131_s10 + $0xc8] sm:$0xff] }
 0x74d   :  { %7057 = vmatpush1.bf16.msra.mxu0 %v7056_v34  ;;  %v3474_v24 = vpop.f32.mrb[85].mxu1 }
 0x750   :  { %v3478_v27 = vpop.f32.mrb[86].mxu1 }
 0x751   :  { %v7060_v25 = vpack.c.bf16 %v3478_v27, %v3472_v23  ;;  %v3480_v28 = vpop.f32.mrb[87].mxu1  ;;  %v6149_v23 = vld [vmem:[%s10131_s10 + $0xd0] sm:$0xff]  ;;  %v6151_v27 = vld [vmem:[%s10131_s10 + $0xe0] sm:$0xff] }
 0x752   :  { %v7058_v29 = vpack.c.bf16 %v3480_v28, %v3474_v24  ;;  %v6150_v24 = vld [vmem:[%s10131_s10 + $0xd8] sm:$0xff] }
 0x753   :  { %v6183_v28 = vld [vmem:[%s10135_s14 + $0xf8] sm:$0xff] }
 0x754   :  { %7059 = vmatprep.subr.bf16.mxu0 %v7058_v29  ;;  %v3484_v31 = vpop.f32.mrb[88].mxu1  ;;  %v6185_v29 = vld [vmem:[%s10135_s14 + $0x108] sm:$0xff] }
 0x755   :  { %7061 = vmatpush1.bf16.msra.mxu0 %v7060_v25  ;;  %v3486_v32 = vpop.f32.mrb[89].mxu1  ;;  %v6152_v25 = vld [vmem:[%s10131_s10 + $0xe8] sm:$0xff] }
 0x756   :  { %3519 = vmatprep.subr.mxu0 %v3486_v32  ;;  %v7134_v32 = vpack.c.bf16 %v6185_v29, %v6183_v28  ;;  %v4233_v29 = vld [vmem:[%s10135_s14 + $0xa8] sm:$0xff] }
 0x758   :  { %v3708_v35 = vpop.f32.mrb[90].mxu1 }
 0x759   :  { %3520 = vmatpush1.msra.mxu0 %v3484_v31  ;;  %v3710_v36 = vpop.f32.mrb[91].mxu1  ;;  %v4213_v31 = vld [vmem:[%s10135_s14 + $0x8] sm:$0xff] }
 0x75a   :  { %6112 = vmatmul.mubr.msk.f32.vlgmr.msra.gmra.mrb[70].mxu0 %vm352_vm4, %v6089_v33  ;;  %v4215_v33 = vld [vmem:[%s10135_s14 + $0x18] sm:$0xff] }
 0x75b   :  { %3577 = vmatprep.mubr.f32.mxu0 %v7515_v7 }
 0x75c   :  { %v3714_v62 = vpop.f32.mrb[92].mxu1 }
 0x75d   :  { %v7074_v39 = vpack.c.bf16 %v3714_v62, %v3708_v35  ;;  %v3716_v60 = vpop.f32.mrb[93].mxu1  ;;  %v6182_v35 = vld [vmem:[%s10135_s14 + $0xf0] sm:$0xff] }
 0x75e   :  { %v7072_v61 = vpack.c.bf16 %v3716_v60, %v3710_v36  ;;  %6113 = vmatmul.mubr.msk.f32.gmra.mrb[72].mxu0 %vm352_vm4, %v6090_v50  ;;  %v6184_v36 = vld [vmem:[%s10135_s14 + $0x100] sm:$0xff]  ;;  %v7106_v50 = vpack.c.bf16 %v4215_v33, %v4213_v31  ;;  %v4214_v60 = vld [vmem:[%s10135_s14 + $0x10] sm:$0xff]  ;;  %v4235_v31 = vld [vmem:[%s10135_s14 + $0xb8] sm:$0xff] }
 0x75f   :  { %3583 = vmatprep.mubr.f32.mxu0 %v7515_v7  ;;  %v7136_v62 = vpack.c.bf16 %v6184_v36, %v6182_v35  ;;  %v7126_v33 = vpack.c.bf16 %v4235_v31, %v4233_v29  ;;  %v6204_v35 = vld [vmem:[%s10135_s14 + $0x1a0] sm:$0xff] }
 0x760   :  { %7073 = vmatprep.subr.bf16.mxu0 %v7072_v61  ;;  %v3720_v26 = vpop.f32.mrb[94].mxu1  ;;  %v6187_v61 = vld [vmem:[%s10135_s14 + $0x118] sm:$0xff]  ;;  %7107 = vmatprep.subr.bf16.mxu1 %v7106_v50  ;;  %v4232_v36 = vld [vmem:[%s10135_s14 + $0xa0] sm:$0xff]  ;;  %v4234_v50 = vld [vmem:[%s10135_s14 + $0xb0] sm:$0xff] }
 0x761   :  { %7075 = vmatpush1.bf16.msra.mxu0 %v7074_v39  ;;  %v3722_v2 = vpop.f32.mrb[95].mxu1  ;;  %v4212_v39 = vld [vmem:[%s10135_s14] sm:$0xff] }
 0x762   :  { %6114 = vmatmul.mubr.msk.f32.gmra.mrb[74].mxu0 %vm352_vm4, %v6091_v63  ;;  %v7108_v63 = vpack.c.bf16 %v4214_v60, %v4212_v39  ;;  %v7128_v39 = vpack.c.bf16 %v4234_v50, %v4232_v36 }
 0x763   :  { %3589 = vmatprep.mubr.f32.mxu0 %v7515_v7 }
 0x764   :  { %v3726_v10 = vpop.f32.mrb[96].mxu1  ;;  %7109 = vmatpush1.bf16.msra.mxu1 %v7108_v63  ;;  %v6209_v63 = vld [vmem:[%s10135_s14 + $0x1c8] sm:$0xff] }
 0x765   :  { %v7078_v0 = vpack.c.bf16 %v3726_v10, %v3720_v26  ;;  %v3728_v6 = vpop.f32.mrb[97].mxu1  ;;  %v6189_v26 = vld [vmem:[%s10135_s14 + $0x128] sm:$0xff] }
 0x766   :  { %v7076_v8 = vpack.c.bf16 %v3728_v6, %v3722_v2  ;;  %6115 = vmatmul.mubr.msk.f32.gmra.mrb[76].mxu0 %vm352_vm4, %v6092_v9  ;;  %v4217_v2 = vld [vmem:[%s10135_s14 + $0x28] sm:$0xff]  ;;  %v4219_v9 = vld [vmem:[%s10135_s14 + $0x38] sm:$0xff]  ;;  %v7138_v10 = vpack.c.bf16 %v6189_v26, %v6187_v61  ;;  %v6186_v6 = vld [vmem:[%s10135_s14 + $0x110] sm:$0xff] }
 0x767   :  { %3595 = vmatprep.mubr.f32.mxu0 %v7515_v7  ;;  %v6207_v61 = vld [vmem:[%s10135_s14 + $0x1b8] sm:$0xff] }
 0x768   :  { %7077 = vmatprep.subr.bf16.mxu0 %v7076_v8  ;;  %v3732_v19 = vpop.f32.mrb[98].mxu1  ;;  %v6188_v8 = vld [vmem:[%s10135_s14 + $0x120] sm:$0xff] }
 0x769   :  { %7079 = vmatpush1.bf16.msra.mxu0 %v7078_v0  ;;  %v3734_v20 = vpop.f32.mrb[99].mxu1  ;;  %v7110_v0 = vpack.c.bf16 %v4219_v9, %v4217_v2  ;;  %v7158_v2 = vpack.c.bf16 %v6209_v63, %v6207_v61  ;;  %v4237_v9 = vld [vmem:[%s10135_s14 + $0xc8] sm:$0xff] }
 0x76a   :  { %6116 = vmatmul.mubr.msk.f32.gmra.mrb[78].mxu0 %vm352_vm4, %v6093_v14  ;;  %v4216_v14 = vld [vmem:[%s10135_s14 + $0x20] sm:$0xff]  ;;  %v6269_v61 = vld [vmem:[%s10135_s14 + $0x328] sm:$0xff] }
 0x76b   :  { %3601 = vmatprep.mubr.f32.mxu0 %v7515_v7  ;;  %7111 = vmatprep.subr.bf16.mxu1 %v7110_v0  ;;  %v6206_v0 = vld [vmem:[%s10135_s14 + $0x1b0] sm:$0xff] }
 0x76c   :  { %v3738_v11 = vpop.f32.mrb[100].mxu1 }
 0x76d   :  { %v7082_v17 = vpack.c.bf16 %v3738_v11, %v3732_v19  ;;  %v3740_v18 = vpop.f32.mrb[101].mxu1  ;;  %v7140_v19 = vpack.c.bf16 %v6188_v8, %v6186_v6  ;;  %v6193_v11 = vld [vmem:[%s10135_s14 + $0x148] sm:$0xff]  ;;  %v6208_v8 = vld [vmem:[%s10135_s14 + $0x1c0] sm:$0xff] }
 0x76e   :  { %v7080_v54 = vpack.c.bf16 %v3740_v18, %v3734_v20  ;;  %6117 = vmatmul.mubr.msk.f32.gmra.mrb[80].mxu0 %vm352_vm4, %v6094_v37  ;;  %v4218_v20 = vld [vmem:[%s10135_s14 + $0x30] sm:$0xff]  ;;  %v6191_v37 = vld [vmem:[%s10135_s14 + $0x138] sm:$0xff] }
 0x76f   :  { %3831 = vmatprep.mubr.f32.mxu0 %v7515_v7  ;;  %v7142_v18 = vpack.c.bf16 %v6193_v11, %v6191_v37 }
 0x770   :  { %7081 = vmatprep.subr.bf16.mxu0 %v7080_v54  ;;  %v3744_v38 = vpop.f32.mrb[102].mxu1  ;;  %v4221_v54 = vld [vmem:[%s10135_s14 + $0x48] sm:$0xff] }
 0x771   :  { %7083 = vmatpush1.bf16.msra.mxu0 %v7082_v17  ;;  %v3746_v40 = vpop.f32.mrb[103].mxu1  ;;  %v7112_v17 = vpack.c.bf16 %v4218_v20, %v4216_v14  ;;  %v4236_v14 = vld [vmem:[%s10135_s14 + $0xc0] sm:$0xff]  ;;  %v7160_v20 = vpack.c.bf16 %v6208_v8, %v6206_v0  ;;  %v6266_v8 = vld [vmem:[%s10135_s14 + $0x310] sm:$0xff] }
 0x772   :  { %3779 = vmatprep.subr.mxu0 %v3746_v40  ;;  %v6190_v40 = vld [vmem:[%s10135_s14 + $0x130] sm:$0xff] }
 0x773   :  { %7113 = vmatpush1.bf16.msra.mxu1 %v7112_v17 }
 0x774   :  { %v3968_v41 = vpop.f32.mrb[104].mxu1 }
 0x775   :  { %3780 = vmatpush1.msra.mxu0 %v3744_v38  ;;  %v3970_v42 = vpop.f32.mrb[105].mxu1  ;;  %v4223_v38 = vld [vmem:[%s10135_s14 + $0x58] sm:$0xff] }
 0x776   :  { %6141 = vmatmul.mubr.msk.f32.vlgmr.msra.gmra.mrb[70].mxu0 %vm352_vm4, %v6118_v12  ;;  %v7114_v12 = vpack.c.bf16 %v4223_v38, %v4221_v54  ;;  %v6259_v54 = vld [vmem:[%s10135_s14 + $0x2d8] sm:$0xff]  ;;  %v6261_v38 = vld [vmem:[%s10135_s14 + $0x2e8] sm:$0xff] }
 0x777   :  { %3837 = vmatprep.mubr.f32.mxu0 %v7515_v7 }
 0x778   :  { %v3974_v44 = vpop.f32.mrb[106].mxu1  ;;  %7115 = vmatprep.subr.bf16.mxu1 %v7114_v12  ;;  %v6210_v12 = vld [vmem:[%s10135_s14 + $0x1d0] sm:$0xff] }
 0x779   :  { %v7096_v45 = vpack.c.bf16 %v3974_v44, %v3968_v41  ;;  %v3976_v47 = vpop.f32.mrb[107].mxu1  ;;  %v6192_v41 = vld [vmem:[%s10135_s14 + $0x140] sm:$0xff] }
 0x77a   :  { %v7094_v48 = vpack.c.bf16 %v3976_v47, %v3970_v42  ;;  %6142 = vmatmul.mubr.msk.f32.gmra.mrb[72].mxu0 %vm352_vm4, %v6119_v43  ;;  %v4220_v42 = vld [vmem:[%s10135_s14 + $0x40] sm:$0xff]  ;;  %v4222_v43 = vld [vmem:[%s10135_s14 + $0x50] sm:$0xff]  ;;  %v7144_v44 = vpack.c.bf16 %v6192_v41, %v6190_v40  ;;  %v6195_v47 = vld [vmem:[%s10135_s14 + $0x158] sm:$0xff]  ;;  %v7202_v41 = vpack.c.bf16 %v6261_v38, %v6259_v54 }
 0x77b   :  { %3843 = vmatprep.mubr.f32.mxu0 %v7515_v7  ;;  %v4241_v40 = vld [vmem:[%s10135_s14 + $0xe8] sm:$0xff] }
 0x77c   :  { %7095 = vmatprep.subr.bf16.mxu0 %v7094_v48  ;;  %v3980_v5 = vpop.f32.mrb[108].mxu1  ;;  %v6197_v48 = vld [vmem:[%s10135_s14 + $0x168] sm:$0xff] }
 0x77d   :  { %7097 = vmatpush1.bf16.msra.mxu0 %v7096_v45  ;;  %v3982_v46 = vpop.f32.mrb[109].mxu1  ;;  %v7116_v45 = vpack.c.bf16 %v4222_v43, %v4220_v42  ;;  %v4240_v43 = vld [vmem:[%s10135_s14 + $0xe0] sm:$0xff] }
 0x77e   :  { %6143 = vmatmul.mubr.msk.f32.gmra.mrb[74].mxu0 %vm352_vm4, %v6120_v49  ;;  %v7146_v49 = vpack.c.bf16 %v6197_v48, %v6195_v47 }
 0x77f   :  { %3849 = vmatprep.mubr.f32.mxu0 %v7515_v7  ;;  %7117 = vmatpush1.bf16.msra.mxu1 %v7116_v45 }
 0x780   :  { %v3986_v55 = vpop.f32.mrb[110].mxu1 }
 0x781   :  { %v7100_v56 = vpack.c.bf16 %v3986_v55, %v3980_v5  ;;  %v3988_v57 = vpop.f32.mrb[111].mxu1  ;;  %v4225_v5 = vld [vmem:[%s10135_s14 + $0x68] sm:$0xff] }
 0x782   :  { %v7098_v58 = vpack.c.bf16 %v3988_v57, %v3982_v46  ;;  %6144 = vmatmul.mubr.msk.f32.gmra.mrb[76].mxu0 %vm352_vm4, %v6121_v52  ;;  %v4227_v46 = vld [vmem:[%s10135_s14 + $0x78] sm:$0xff]  ;;  %v6194_v52 = vld [vmem:[%s10135_s14 + $0x150] sm:$0xff]  ;;  %v4224_v57 = vld [vmem:[%s10135_s14 + $0x60] sm:$0xff] }
 0x783   :  { %3855 = vmatprep.mubr.f32.mxu0 %v7515_v7  ;;  %v7118_v55 = vpack.c.bf16 %v4227_v46, %v4225_v5 }
 0x784   :  { %7099 = vmatprep.subr.bf16.mxu0 %v7098_v58  ;;  %v3992_v51 = vpop.f32.mrb[112].mxu1  ;;  %v4226_v58 = vld [vmem:[%s10135_s14 + $0x70] sm:$0xff] }
 0x785   :  { %7101 = vmatpush1.bf16.msra.mxu0 %v7100_v56  ;;  %v3994_v53 = vpop.f32.mrb[113].mxu1  ;;  %v6196_v56 = vld [vmem:[%s10135_s14 + $0x160] sm:$0xff]  ;;  %7119 = vmatprep.subr.bf16.mxu1 %v7118_v55 }
 0x786   :  { %6145 = vmatmul.mubr.msk.f32.gmra.mrb[78].mxu0 %vm352_vm4, %v6122_v59  ;;  %v7148_v59 = vpack.c.bf16 %v6196_v56, %v6194_v52 }
 0x787   :  { %3861 = vmatprep.mubr.f32.mxu0 %v7515_v7 }
 0x788   :  { %v3998_v3 = vpop.f32.mrb[114].mxu1 }
 0x789   :  { %v7104_v4 = vpack.c.bf16 %v3998_v3, %v3992_v51  ;;  %v4000_v13 = vpop.f32.mrb[115].mxu1  ;;  %v7120_v51 = vpack.c.bf16 %v4226_v58, %v4224_v57 }
 0x78a   :  { %v7102_v15 = vpack.c.bf16 %v4000_v13, %v3994_v53  ;;  %6146 = vmatmul.mubr.msk.f32.gmra.mrb[80].mxu0 %vm352_vm4, %v6123_v1  ;;  %v6199_v53 = vld [vmem:[%s10135_s14 + $0x178] sm:$0xff]  ;;  %v6201_v1 = vld [vmem:[%s10135_s14 + $0x188] sm:$0xff] }
 0x78b   :  { %4091 = vmatprep.mubr.f32.mxu0 %v7515_v7  ;;  %7121 = vmatpush1.bf16.msra.mxu1 %v7120_v51  ;;  %v7150_v3 = vpack.c.bf16 %v6201_v1, %v6199_v53  ;;  %v4231_v13 = vld [vmem:[%s10135_s14 + $0x98] sm:$0xff] }
 0x78c   :  { %7103 = vmatprep.subr.bf16.mxu0 %v7102_v15  ;;  %v4004_v16 = vpop.f32.mrb[116].mxu1  ;;  %v6198_v15 = vld [vmem:[%s10135_s14 + $0x170] sm:$0xff] }
 0x78d   :  { %7105 = vmatpush1.bf16.msra.mxu0 %v7104_v4  ;;  %v4006_v34 = vpop.f32.mrb[117].mxu1  ;;  %v4229_v4 = vld [vmem:[%s10135_s14 + $0x88] sm:$0xff] }
 0x78e   :  { %4039 = vmatprep.subr.mxu0 %v4006_v34  ;;  %v6200_v34 = vld [vmem:[%s10135_s14 + $0x180] sm:$0xff] }
 0x791   :  { %4040 = vmatpush1.msra.mxu0 %v4004_v16  ;;  %v7122_v16 = vpack.c.bf16 %v4231_v13, %v4229_v4  ;;  %v6176_v13 = vld [vmem:[%s10133_s12] ss:$0 sm:$0xff] }
 0x792   :  { %6170 = vmatmul.mubr.msk.f32.vlgmr.msra.gmra.mrb[70].mxu0 %vm352_vm4, %v6147_v21  ;;  %7135 = vmatprep.subr.bf16.mxu0 %v7134_v32  ;;  %v4228_v21 = vld [vmem:[%s10135_s14 + $0x80] sm:$0xff]  ;;  %v6202_v32 = vld [vmem:[%s10135_s14 + $0x190] sm:$0xff] }
 0x793   :  { %4097 = vmatprep.mubr.f32.mxu0 %v7515_v7  ;;  %7137 = vmatpush1.bf16.msra.mxu0 %v7136_v62  ;;  %v7156_v62 = vpack.c.bf16 %v6204_v35, %v6202_v32 }
 0x794   :  { %7139 = vmatprep.subr.bf16.mxu0 %v7138_v10  ;;  %7123 = vmatprep.subr.bf16.mxu1 %v7122_v16  ;;  %v4239_v10 = vld [vmem:[%s10135_s14 + $0xd8] sm:$0xff] }
 0x795   :  { %v7130_v6 = vpack.c.bf16 %v4239_v10, %v4237_v9 }
 0x796   :  { %6171 = vmatmul.mubr.msk.f32.gmra.mrb[72].mxu0 %vm352_vm4, %v6148_v22  ;;  %v4230_v22 = vld [vmem:[%s10135_s14 + $0x90] sm:$0xff] }
 0x797   :  { %4103 = vmatprep.mubr.f32.mxu0 %v7515_v7  ;;  %7141 = vmatpush1.bf16.msra.mxu0 %v7140_v19  ;;  %v4238_v19 = vld [vmem:[%s10135_s14 + $0xd0] sm:$0xff] }
 0x798   :  { %7143 = vmatprep.subr.bf16.mxu0 %v7142_v18  ;;  %v7132_v37 = vpack.c.bf16 %v4238_v19, %v4236_v14  ;;  %v6211_v18 = vld [vmem:[%s10135_s14 + $0x1d8] sm:$0xff]  ;;  %v6268_v14 = vld [vmem:[%s10135_s14 + $0x320] sm:$0xff] }
 0x79a   :  { %6172 = vmatmul.mubr.msk.f32.gmra.mrb[74].mxu0 %vm352_vm4, %v6149_v23  ;;  %v7152_v23 = vpack.c.bf16 %v6200_v34, %v6198_v15 }
 0x79b   :  { %4109 = vmatprep.mubr.f32.mxu0 %v7515_v7  ;;  %7145 = vmatpush1.bf16.msra.mxu0 %v7144_v44 }
 0x79c   :  { %7147 = vmatprep.subr.bf16.mxu0 %v7146_v49 }
 0x79e   :  { %6173 = vmatmul.mubr.msk.f32.gmra.mrb[76].mxu0 %vm352_vm4, %v6150_v24  ;;  %v7124_v24 = vpack.c.bf16 %v4230_v22, %v4228_v21  ;;  %v6258_v21 = vld [vmem:[%s10135_s14 + $0x2d0] sm:$0xff]  ;;  %v6260_v22 = vld [vmem:[%s10135_s14 + $0x2e0] sm:$0xff] }
 0x79f   :  { %4115 = vmatprep.mubr.f32.mxu0 %v7515_v7  ;;  %7149 = vmatpush1.bf16.msra.mxu0 %v7148_v59  ;;  %v7204_v32 = vpack.c.bf16 %v6260_v22, %v6258_v21  ;;  %v6297_v21 = vld [vmem:[%s10135_s14 + $0x3d0] sm:$0xff]  ;;  %v6300_v22 = vld [vmem:[%s10135_s14 + $0x3e8] sm:$0xff] }
 0x7a0   :  { %7151 = vmatprep.subr.bf16.mxu0 %v7150_v3  ;;  %7125 = vmatpush1.bf16.msra.mxu1 %v7124_v24  ;;  %v6263_v24 = vld [vmem:[%s10135_s14 + $0x2f8] sm:$0xff] }
 0x7a1   :  { %7127 = vmatprep.subr.bf16.mxu1 %v7126_v33 }
 0x7a2   :  { %6174 = vmatmul.mubr.msk.f32.gmra.mrb[78].mxu0 %vm352_vm4, %v6151_v27  ;;  %v6203_v27 = vld [vmem:[%s10135_s14 + $0x198] sm:$0xff] }
 0x7a3   :  { %4121 = vmatprep.mubr.f32.mxu0 %v7515_v7  ;;  %7153 = vmatpush1.bf16.msra.mxu0 %v7152_v23 }
 0x7a4   :  { %7129 = vmatpush1.bf16.msra.mxu1 %v7128_v39  ;;  %v6264_v39 = vld [vmem:[%s10135_s14 + $0x300] sm:$0xff] }
 0x7a5   :  { %7131 = vmatprep.subr.bf16.mxu1 %v7130_v6 }
 0x7a6   :  { %6175 = vmatmul.mubr.msk.f32.gmra.mrb[80].mxu0 %vm352_vm4, %v6152_v25  ;;  %v6205_v25 = vld [vmem:[%s10135_s14 + $0x1a8] sm:$0xff] }
 0x7a7   :  { %4432 = vmatprep.mubr.f32.mxu0 %v7515_v7  ;;  %v7154_v28 = vpack.c.bf16 %v6205_v25, %v6203_v27  ;;  %v6265_v27 = vld [vmem:[%s10135_s14 + $0x308] sm:$0xff] }
 0x7a8   :  { %7133 = vmatpush1.bf16.msra.mxu1 %v7132_v37  ;;  %v7206_v50 = vpack.c.bf16 %v6265_v27, %v6263_v24  ;;  %v6273_v37 = vld [vmem:[%s10135_s14 + $0x348] sm:$0xff]  ;;  %v6286_v24 = vld [vmem:[%s10135_s14 + $0x3b0] sm:$0xff] }
 0x7a9   :  { %7155 = vmatprep.subr.bf16.mxu0 %v7154_v28  ;;  %4279 = vmatprep.subr.mxu1 %v4241_v40  ;;  %v6270_v40 = vld [vmem:[%s10135_s14 + $0x330] sm:$0xff] }
 0x7aa   :  { %7157 = vmatpush1.bf16.msra.mxu0 %v7156_v62  ;;  %v6262_v62 = vld [vmem:[%s10135_s14 + $0x2f0] sm:$0xff] }
 0x7ab   :  { %7159 = vmatprep.subr.bf16.mxu0 %v7158_v2  ;;  %v7208_v9 = vpack.c.bf16 %v6264_v39, %v6262_v62  ;;  %v6303_v62 = vld [vmem:[%s10135_s14 + $0x400] sm:$0xff]  ;;  %v6305_v39 = vld [vmem:[%s10135_s14 + $0x410] sm:$0xff] }
 0x7ac   :  { %4280 = vmatpush1.msra.mxu1 %v4240_v43 }
 0x7ae   :  { %7161 = vmatpush1.bf16.msra.mxu0 %v7160_v20  ;;  %v6271_v20 = vld [vmem:[%s10135_s14 + $0x338] sm:$0xff] }
 0x7af   :  { %4396 = vmatprep.subr.mxu0 %v6211_v18  ;;  %v7212_v18 = vpack.c.bf16 %v6268_v14, %v6266_v8  ;;  %v7214_v38 = vpack.c.bf16 %v6273_v37, %v6271_v20  ;;  %v6313_v20 = vld [vmem:[%s10135_s14 + $0x450] sm:$0xff]  ;;  %v6316_v37 = vld [vmem:[%s10135_s14 + $0x468] sm:$0xff] }
 0x7b2   :  { %4397 = vmatpush1.msra.mxu0 %v6210_v12  ;;  %v6272_v12 = vld [vmem:[%s10135_s14 + $0x340] sm:$0xff] }
 0x7b3   :  { %7203 = vmatprep.subr.bf16.mxu0 %v7202_v41  ;;  %v6275_v41 = vld [vmem:[%s10135_s14 + $0x358] sm:$0xff] }
 0x865   :  { %v9456_v60 = vpop.f32.mrb[70].mxu0 }
 0x866   :  { %4152 = vrot.lane.b32.xlu0 %v9456_v60, %s7516_s3  ;;  %v4095_v26 = vpop.f32.mrb[71].mxu0 }
 0x867   :  { %4154 = vrot.lane.b32.xlu1 %v4095_v26, %s7516_s3 }
 0x869   :  { %v4099_v11 = vpop.f32.mrb[72].mxu0 }
 0x86a   :  { %4156 = vrot.lane.b32.xlu0 %v4099_v11, %s7516_s3  ;;  %v4101_v17 = vpop.f32.mrb[73].mxu0 }
 0x86b   :  { %4158 = vrot.lane.b32.xlu1 %v4101_v17, %s7516_s3 }
 0x86d   :  { %v9502_v42 = vpop.f32.mrb[74].mxu0 }
 0x86e   :  { %v4107_v44 = vpop.f32.mrb[75].mxu0 }
 0x871   :  { %v4111_v45 = vpop.f32.mrb[76].mxu0 }
 0x872   :  { %4164 = vrot.lane.b32.xlu0 %v4111_v45, %s7516_s3  ;;  %v4113_v47 = vpop.f32.mrb[77].mxu0 }
 0x873   :  { %4166 = vrot.lane.b32.xlu1 %v4113_v47, %s7516_s3 }
 0x875   :  { %v4117_v48 = vpop.f32.mrb[78].mxu0 }
 0x876   :  { %4168 = vrot.lane.b32.xlu0 %v4117_v48, %s7516_s3  ;;  %v4119_v49 = vpop.f32.mrb[79].mxu0 }
 0x877   :  { %4170 = vrot.lane.b32.xlu1 %v4119_v49, %s7516_s3  ;;  %v6276_v49 = vld [vmem:[%s10135_s14 + $0x360] sm:$0xff] }
 0x879   :  { %v9511_v5 = vpop.f32.mrb[80].mxu0 }
 0x87a   :  { %4160 = vrot.lane.b32.xlu0 %v9502_v42, %s7516_s3  ;;  %v4125_v46 = vpop.f32.mrb[81].mxu0 }
 0x87b   :  { %4162 = vrot.lane.b32.xlu1 %v4107_v44, %s7516_s3  ;;  %v7216_v44 = vpack.c.bf16 %v6272_v12, %v6270_v40  ;;  %v6320_v40 = vld [vmem:[%s10135_s14 + $0x488] sm:$0xff]  ;;  %v6322_v12 = vld [vmem:[%s10135_s14 + $0x498] sm:$0xff] }
 0x87e   :  { %4172 = vrot.lane.b32.xlu0 %v9511_v5, %s7516_s3 }
 0x87f   :  { %4174 = vrot.lane.b32.xlu1 %v4125_v46, %s7516_s3  ;;  %v6281_v46 = vld [vmem:[%s10135_s14 + $0x388] sm:$0xff] }
 0x8d8   :  { %v4153_v52 = vpop.permute.xlu0 %4152 }
 0x8d9   :  { %v4155_v55 = vpop.permute.xlu1 %4154 }
 0x8da   :  { %v4176_v58 = vsel %vm1407_vm5, %v4153_v52, %v4155_v55 }
 0x8db   :  { %v4188_v1 = vmax.f32 %v9456_v60, %v4176_v58  ;;  %v6267_v60 = vld [vmem:[%s10135_s14 + $0x318] sm:$0xff] }
 0x8dc   :  { %v4157_v56 = vpop.permute.xlu0 %4156  ;;  %v7210_v6 = vpack.c.bf16 %v6269_v61, %v6267_v60  ;;  %v6283_v58 = vld [vmem:[%s10135_s14 + $0x398] sm:$0xff]  ;;  %v6308_v60 = vld [vmem:[%s10135_s14 + $0x428] sm:$0xff] }
 0x8dd   :  { %v4159_v57 = vpop.permute.xlu1 %4158  ;;  %v6310_v61 = vld [vmem:[%s10135_s14 + $0x438] sm:$0xff] }
 0x8de   :  { %v4177_v4 = vsel %vm1407_vm5, %v4157_v56, %v4159_v57  ;;  %v6278_v56 = vld [vmem:[%s10135_s14 + $0x370] sm:$0xff]  ;;  %v6280_v57 = vld [vmem:[%s10135_s14 + $0x380] sm:$0xff] }
 0x8df   :  { %v4189_v25 = vmax.f32 %v4099_v11, %v4177_v4 }
 0x8e4   :  { %v4165_v59 = vpop.permute.xlu0 %4164 }
 0x8e5   :  { %v4167_v51 = vpop.permute.xlu1 %4166 }
 0x8e6   :  { %v4179_v53 = vsel %vm1407_vm5, %v4165_v59, %v4167_v51  ;;  %v6285_v59 = vld [vmem:[%s10135_s14 + $0x3a8] sm:$0xff]  ;;  %v7224_v51 = vpack.c.bf16 %v6280_v57, %v6278_v56 }
 0x8e7   :  { %v4191_v3 = vmax.f32 %v4111_v45, %v4179_v53  ;;  %v7226_v53 = vpack.c.bf16 %v6285_v59, %v6283_v58 }
 0x8e8   :  { %v4169_v15 = vpop.permute.xlu0 %4168 }
 0x8e9   :  { %v4194_v16 = vmax.f32 %v4188_v1, %v4191_v3  ;;  %v4171_v34 = vpop.permute.xlu1 %4170  ;;  %v6282_v1 = vld [vmem:[%s10135_s14 + $0x390] sm:$0xff]  ;;  %v6284_v3 = vld [vmem:[%s10135_s14 + $0x3a0] sm:$0xff] }
 0x8ea   :  { %v4180_v23 = vsel %vm1407_vm5, %v4169_v15, %v4171_v34  ;;  %v7228_v4 = vpack.c.bf16 %v6284_v3, %v6282_v1  ;;  %v6296_v15 = vld [vmem:[%s10135_s14 + $0x3c8] sm:$0xff]  ;;  %v6295_v34 = vld [vmem:[%s10135_s14 + $0x3c0] sm:$0xff] }
 0x8eb   :  { %v4204_v28 = vadd.f32 %v6176_v13, %v4194_v16  ;;  %v4192_v29 = vmax.f32 %v4117_v48, %v4180_v23  ;;  %v6274_v48 = vld [vmem:[%s10135_s14 + $0x350] sm:$0xff]  ;;  %v6298_v16 = vld [vmem:[%s10135_s14 + $0x3d8] sm:$0xff] }
 0x8ec   :  { %v4161_v31 = vpop.permute.xlu0 %4160  ;;  %v7220_v52 = vpack.c.bf16 %v6276_v49, %v6274_v48  ;;  %v6302_v23 = vld [vmem:[%s10135_s14 + $0x3f8] sm:$0xff]  ;;  %v7234_v27 = vpack.c.bf16 %v6298_v16, %v6296_v15  ;;  %v6324_v48 = vld [vmem:[%s10135_s14 + $0x4a8] sm:$0xff]  ;;  %v6323_v49 = vld [vmem:[%s10135_s14 + $0x4a0] sm:$0xff] }
 0x8ed   :  { %v9539_v33 = vmax.f32 %v4204_v28, 0.0  ;;  %v4195_v35 = vmax.f32 %v4189_v25, %v4192_v29  ;;  %v4163_v36 = vpop.permute.xlu1 %4162  ;;  %v7236_v25 = vpack.c.bf16 %v6297_v21, %v6295_v34  ;;  %v7238_v28 = vpack.c.bf16 %v6302_v23, %v6300_v22  ;;  %v6299_v29 = vld [vmem:[%s10135_s14 + $0x3e0] sm:$0xff]  ;;  %v6180_v34 = vld [vmem:[%s10134_s13 + $0x10] sm:$0xff]  ;;  %v6222_v21 = vld [vmem:[%s10135_s14 + $0x1e8] sm:$0xff] }
 0x8ee   :  { %v4178_v26 = vsel %vm1407_vm5, %v4161_v31, %v4163_v36  ;;  %v6301_v31 = vld [vmem:[%s10135_s14 + $0x3f0] sm:$0xff]  ;;  %v6224_v22 = vld [vmem:[%s10135_s14 + $0x1f8] sm:$0xff] }
 0x8ef   :  { %v4205_v63 = vadd.f32 %v6176_v13, %v4195_v35  ;;  %6177 = vmatmul.mubr.msk.f32.vlgmr.msra.gmra.mrb[118].mxu1 %vm1474_vm6, %v9539_v33  ;;  %6212 = vmatmul.mubr.msk.f32.vlgmr.msra.gmra.mrb[82].mxu0 %vm1474_vm6, %v9539_v33  ;;  %v4190_v11 = vmax.f32 %v9502_v42, %v4178_v26  ;;  %v6277_v42 = vld [vmem:[%s10135_s14 + $0x368] sm:$0xff]  ;;  %v6306_v35 = vld [vmem:[%s10135_s14 + $0x418] sm:$0xff]  ;;  %v7240_v36 = vpack.c.bf16 %v6301_v31, %v6299_v29  ;;  %v4210_v31 = vld [vmem:[%s10134_s13] sm:$0xff] }
 0x8f0   :  { %7205 = vmatpush1.bf16.msra.mxu0 %v7204_v32  ;;  %v4173_v2 = vpop.permute.xlu0 %4172  ;;  %4321 = vmatprep.mubr.f32.mxu1 %v7515_v7  ;;  %v7218_v47 = vpack.c.bf16 %v6277_v42, %v6275_v41  ;;  %v6304_v32 = vld [vmem:[%s10135_s14 + $0x408] sm:$0xff]  ;;  %v7246_v26 = vpack.c.bf16 %v6310_v61, %v6308_v60  ;;  %v7258_v42 = vpack.c.bf16 %v6322_v12, %v6320_v40  ;;  %v6181_v23 = vld [vmem:[%s10134_s13 + $0x18] sm:$0xff]  ;;  %v6237_v40 = vld [vmem:[%s10135_s14 + $0x260] sm:$0xff] }
 0x8f1   :  { %v9559_v10 = vmax.f32 %v4205_v63, 0.0  ;;  %v4175_v0 = vpop.permute.xlu1 %4174  ;;  %4438 = vmatprep.mubr.f32.mxu0 %v7515_v7  ;;  %7207 = vmatprep.subr.bf16.mxu0 %v7206_v50  ;;  %v7242_v50 = vpack.c.bf16 %v6306_v35, %v6304_v32  ;;  %v7244_v63 = vpack.c.bf16 %v6305_v39, %v6303_v62  ;;  %v6228_v29 = vld [vmem:[%s10135_s14 + $0x218] sm:$0xff]  ;;  %v6230_v62 = vld [vmem:[%s10135_s14 + $0x228] sm:$0xff]  ;;  %v6239_v12 = vld [vmem:[%s10135_s14 + $0x270] sm:$0xff] }
 0x8f2   :  { %v4181_v19 = vsel %vm1407_vm5, %v4173_v2, %v4175_v0  ;;  %v6307_v2 = vld [vmem:[%s10135_s14 + $0x420] sm:$0xff]  ;;  %v6312_v0 = vld [vmem:[%s10135_s14 + $0x448] sm:$0xff]  ;;  %v6232_v39 = vld [vmem:[%s10135_s14 + $0x238] sm:$0xff] }
 0x8f3   :  { %v4193_v17 = vmax.f32 %v9511_v5, %v4181_v19  ;;  %6178 = vmatmul.mubr.msk.f32.gmra.mrb[120].mxu1 %vm1474_vm6, %v9559_v10  ;;  %6213 = vmatmul.mubr.msk.f32.gmra.mrb[84].mxu0 %vm1474_vm6, %v9559_v10  ;;  %v6279_v5 = vld [vmem:[%s10135_s14 + $0x378] sm:$0xff]  ;;  %v6311_v19 = vld [vmem:[%s10135_s14 + $0x440] sm:$0xff]  ;;  %v4211_v61 = vld [vmem:[%s10134_s13 + $0x8] sm:$0xff] }
 0x8f4   :  { %7209 = vmatpush1.bf16.msra.mxu0 %v7208_v9  ;;  %4327 = vmatprep.mubr.f32.mxu1 %v7515_v7  ;;  %v7222_v55 = vpack.c.bf16 %v6281_v46, %v6279_v5  ;;  %v6309_v9 = vld [vmem:[%s10135_s14 + $0x430] sm:$0xff] }
 0x8f5   :  { %v4196_v54 = vmax.f32 %v4190_v11, %v4193_v17  ;;  %7211 = vmatprep.subr.bf16.mxu0 %v7210_v6  ;;  %4444 = vmatprep.mubr.f32.mxu0 %v7515_v7  ;;  %v6314_v6 = vld [vmem:[%s10135_s14 + $0x458] sm:$0xff]  ;;  %v7248_v8 = vpack.c.bf16 %v6309_v9, %v6307_v2  ;;  %v7252_v17 = vpack.c.bf16 %v6313_v20, %v6311_v19  ;;  %v6231_v2 = vld [vmem:[%s10135_s14 + $0x230] sm:$0xff]  ;;  %v6234_v9 = vld [vmem:[%s10135_s14 + $0x248] sm:$0xff] }
 0x8f6   :  { %v7250_v14 = vpack.c.bf16 %v6314_v6, %v6312_v0  ;;  %v6318_v11 = vld [vmem:[%s10135_s14 + $0x478] sm:$0xff]  ;;  %v6233_v19 = vld [vmem:[%s10135_s14 + $0x240] sm:$0xff]  ;;  %v6235_v20 = vld [vmem:[%s10135_s14 + $0x250] sm:$0xff] }
 0x8f7   :  { %v4206_v43 = vadd.f32 %v6176_v13, %v4196_v54  ;;  %v6287_v13 = vld [vmem:[%s10135_s14 + $0x3b8] sm:$0xff]  ;;  %v6315_v54 = vld [vmem:[%s10135_s14 + $0x460] sm:$0xff] }
 0x8f8   :  { %7213 = vmatpush1.bf16.msra.mxu0 %v7212_v18  ;;  %v7254_v18 = vpack.c.bf16 %v6318_v11, %v6316_v37  ;;  %v6236_v0 = vld [vmem:[%s10135_s14 + $0x258] sm:$0xff]  ;;  %v6238_v11 = vld [vmem:[%s10135_s14 + $0x268] sm:$0xff] }
 0x8f9   :  { %v9595_v45 = vmax.f32 %v4206_v43, 0.0  ;;  %7215 = vmatprep.subr.bf16.mxu0 %v7214_v38  ;;  %v6317_v38 = vld [vmem:[%s10135_s14 + $0x470] sm:$0xff]  ;;  %v6319_v43 = vld [vmem:[%s10135_s14 + $0x480] sm:$0xff] }
 0x8fa   :  { %v7256_v41 = vpack.c.bf16 %v6317_v38, %v6315_v54 }
 0x8fb   :  { %6179 = vmatmul.mubr.msk.f32.gmra.mrb[122].mxu1 %vm1474_vm6, %v9595_v45  ;;  %6214 = vmatmul.mubr.msk.f32.gmra.mrb[86].mxu0 %vm1474_vm6, %v9595_v45 }
 0x8fc   :  { %7217 = vmatpush1.bf16.msra.mxu0 %v7216_v44  ;;  %4919 = vmatprep.mubr.f32.mxu0 %v7515_v7  ;;  %v6321_v44 = vld [vmem:[%s10135_s14 + $0x490] sm:$0xff] }
 0x8fd   :  { %7219 = vmatprep.subr.bf16.mxu0 %v7218_v47  ;;  %4521 = vmatprep.mubr.f32.mxu1 %v7515_v7  ;;  %v7260_v47 = vpack.c.bf16 %v6321_v44, %v6319_v43  ;;  %v6242_v43 = vld [vmem:[%s10135_s14 + $0x288] sm:$0xff]  ;;  %v6244_v44 = vld [vmem:[%s10135_s14 + $0x298] sm:$0xff] }
 0x900   :  { %7221 = vmatpush1.bf16.msra.mxu0 %v7220_v52 }
 0x901   :  { %7223 = vmatprep.subr.bf16.mxu0 %v7222_v55 }
 0x904   :  { %7225 = vmatpush1.bf16.msra.mxu0 %v7224_v51 }
 0x905   :  { %7227 = vmatprep.subr.bf16.mxu0 %v7226_v53 }
 0x908   :  { %7229 = vmatpush1.bf16.msra.mxu0 %v7228_v4 }
 0x909   :  { %4883 = vmatprep.subr.mxu0 %v6287_v13 }
 0x90c   :  { %4884 = vmatpush1.msra.mxu0 %v6286_v24  ;;  %v7170_v24 = vpack.c.bf16 %v6224_v22, %v6222_v21 }
 0x90d   :  { %6288 = vmatmul.mubr.msk.f32.vlgmr.msra.gmra.mrb[88].mxu0 %vm1474_vm6, %v9539_v33  ;;  %7235 = vmatprep.subr.bf16.mxu0 %v7234_v27  ;;  %v6221_v27 = vld [vmem:[%s10135_s14 + $0x1e0] sm:$0xff] }
 0x90e   :  { %7237 = vmatpush1.bf16.msra.mxu0 %v7236_v25  ;;  %4925 = vmatprep.mubr.f32.mxu0 %v7515_v7  ;;  %v6223_v25 = vld [vmem:[%s10135_s14 + $0x1f0] sm:$0xff] }
 0x90f   :  { %7239 = vmatprep.subr.bf16.mxu0 %v7238_v28  ;;  %v6226_v28 = vld [vmem:[%s10135_s14 + $0x208] sm:$0xff]  ;;  %v7172_v32 = vpack.c.bf16 %v6223_v25, %v6221_v27 }
 0x910   :  { %v7174_v35 = vpack.c.bf16 %v6228_v29, %v6226_v28 }
 0x911   :  { %6289 = vmatmul.mubr.msk.f32.gmra.mrb[90].mxu0 %vm1474_vm6, %v9559_v10 }
 0x912   :  { %7241 = vmatpush1.bf16.msra.mxu0 %v7240_v36  ;;  %4931 = vmatprep.mubr.f32.mxu0 %v7515_v7  ;;  %v6225_v36 = vld [vmem:[%s10135_s14 + $0x200] sm:$0xff] }
 0x913   :  { %7243 = vmatprep.subr.bf16.mxu0 %v7242_v50  ;;  %v6227_v50 = vld [vmem:[%s10135_s14 + $0x210] sm:$0xff] }
 0x914   :  { %v7176_v60 = vpack.c.bf16 %v6227_v50, %v6225_v36  ;;  %v6256_v36 = vld [vmem:[%s10134_s13 + $0x30] sm:$0xff]  ;;  %v6257_v50 = vld [vmem:[%s10134_s13 + $0x38] sm:$0xff] }
 0x915   :  { %6290 = vmatmul.mubr.msk.f32.gmra.mrb[92].mxu0 %vm1474_vm6, %v9595_v45 }
 0x916   :  { %7245 = vmatpush1.bf16.msra.mxu0 %v7244_v63  ;;  %5123 = vmatprep.mubr.f32.mxu0 %v7515_v7  ;;  %v7178_v63 = vpack.c.bf16 %v6232_v39, %v6230_v62  ;;  %v6293_v62 = vld [vmem:[%s10134_s13 + $0x40] sm:$0xff]  ;;  %v6294_v39 = vld [vmem:[%s10134_s13 + $0x48] sm:$0xff] }
 0x917   :  { %7247 = vmatprep.subr.bf16.mxu0 %v7246_v26  ;;  %v6229_v26 = vld [vmem:[%s10135_s14 + $0x220] sm:$0xff] }
 0x918   :  { %v7180_v6 = vpack.c.bf16 %v6231_v2, %v6229_v26  ;;  %v6333_v26 = vld [vmem:[%s10137_s16 + $0x60] sm:$0xff]  ;;  %v6334_v2 = vld [vmem:[%s10137_s16 + $0x68] sm:$0xff] }
 0x91a   :  { %7249 = vmatpush1.bf16.msra.mxu0 %v7248_v8 }
 0x91b   :  { %7251 = vmatprep.subr.bf16.mxu0 %v7250_v14  ;;  %v7182_v14 = vpack.c.bf16 %v6236_v0, %v6234_v9  ;;  %v7270_v9 = vpack.c.bf16 %v6334_v2, %v6333_v26  ;;  %v6335_v0 = vld [vmem:[%s10137_s16 + $0x70] sm:$0xff]  ;;  %v6351_v26 = vld [vmem:[%s10137_s16 + $0xe0] sm:$0xff]  ;;  %v6352_v2 = vld [vmem:[%s10137_s16 + $0xe8] sm:$0xff] }
 0x91e   :  { %7253 = vmatpush1.bf16.msra.mxu0 %v7252_v17  ;;  %v6240_v17 = vld [vmem:[%s10135_s14 + $0x278] sm:$0xff] }
 0x91f   :  { %7255 = vmatprep.subr.bf16.mxu0 %v7254_v18  ;;  %v7184_v18 = vpack.c.bf16 %v6235_v20, %v6233_v19  ;;  %v7186_v38 = vpack.c.bf16 %v6240_v17, %v6238_v11  ;;  %v6338_v19 = vld [vmem:[%s10137_s16 + $0x88] sm:$0xff]  ;;  %v6340_v11 = vld [vmem:[%s10137_s16 + $0x98] sm:$0xff] }
 0x922   :  { %7257 = vmatpush1.bf16.msra.mxu0 %v7256_v41 }
 0x923   :  { %7259 = vmatprep.subr.bf16.mxu0 %v7258_v42 }
 0x926   :  { %7261 = vmatpush1.bf16.msra.mxu0 %v7260_v47 }
 0x927   :  { %5087 = vmatprep.subr.mxu0 %v6324_v48  ;;  %v7188_v48 = vpack.c.bf16 %v6239_v12, %v6237_v40  ;;  %v5604_v12 = vld [vmem:[%s10139_s18] sm:$0xff] }
 0x92a   :  { %5088 = vmatpush1.msra.mxu0 %v6323_v49 }
 0x92b   :  { %6325 = vmatmul.mubr.msk.f32.vlgmr.msra.gmra.mrb[94].mxu0 %vm1474_vm6, %v9539_v33  ;;  %7326 = vmatprep.subr.bf16.mxu0 %v7517_v30 }
 0x92c   :  { %5129 = vmatprep.mubr.f32.mxu0 %v7515_v7 }
 0x92f   :  { %6326 = vmatmul.mubr.msk.f32.gmra.mrb[96].mxu0 %vm1474_vm6, %v9559_v10 }
 0x930   :  { %5135 = vmatprep.mubr.f32.mxu0 %v7515_v7 }
 0x933   :  { %6327 = vmatmul.mubr.msk.f32.gmra.mrb[98].mxu0 %vm1474_vm6, %v9595_v45 }
 0x934   :  { %6663 = vmatprep.mubr.msk.f32.mxu0 %vm7519_vm8, %v7515_v7 }
 0x9c2   :  { %v4317_v5 = vpop.f32.mrb[118].mxu1  ;;  %v4434_v46 = vpop.f32.mrb[82].mxu0 }
 0x9c3   :  { %v4319_v52 = vpop.f32.mrb[119].mxu1  ;;  %v4436_v55 = vpop.f32.mrb[83].mxu0 }
 0x9c6   :  { %v4323_v56 = vpop.f32.mrb[120].mxu1  ;;  %v4440_v57 = vpop.f32.mrb[84].mxu0 }
 0x9c7   :  { %v7168_v58 = vpack.c.bf16 %v4323_v56, %v4317_v5  ;;  %v7164_v59 = vpack.c.bf16 %v4440_v57, %v4434_v46  ;;  %v4325_v51 = vpop.f32.mrb[121].mxu1  ;;  %v4442_v53 = vpop.f32.mrb[85].mxu0  ;;  %v7190_v5 = vpack.c.bf16 %v6244_v44, %v6242_v43  ;;  %v6241_v46 = vld [vmem:[%s10135_s14 + $0x280] sm:$0xff]  ;;  %v6246_v56 = vld [vmem:[%s10135_s14 + $0x2a8] sm:$0xff]  ;;  %v6248_v57 = vld [vmem:[%s10135_s14 + $0x2b8] sm:$0xff] }
 0x9c8   :  { %v7166_v1 = vpack.c.bf16 %v4325_v51, %v4319_v52  ;;  %v7162_v3 = vpack.c.bf16 %v4442_v53, %v4436_v55  ;;  %v6243_v52 = vld [vmem:[%s10135_s14 + $0x290] sm:$0xff]  ;;  %v6245_v51 = vld [vmem:[%s10135_s14 + $0x2a0] sm:$0xff]  ;;  %v5607_v44 = vld [vmem:[%s10139_s18 + $0x18] sm:$0xff] }
 0x9c9   :  { %v6247_v53 = vld [vmem:[%s10135_s14 + $0x2b0] sm:$0xff] }
 0x9ca   :  { %7163 = vmatprep.subr.bf16.mxu1 %v7162_v3  ;;  %v6250_v3 = vld [vmem:[%s10135_s14 + $0x2c8] sm:$0xff] }
 0x9cb   :  { %7165 = vmatpush1.bf16.msra.mxu1 %v7164_v59  ;;  %v7194_v59 = vpack.c.bf16 %v6248_v57, %v6246_v56 }
 0x9ce   :  { %v4329_v4 = vpop.f32.mrb[122].mxu1  ;;  %v4446_v13 = vpop.f32.mrb[86].mxu0 }
 0x9cf   :  { %v4331_v15 = vpop.f32.mrb[123].mxu1  ;;  %v4448_v16 = vpop.f32.mrb[87].mxu0 }
 0x9d0   :  { %4461 = vmatprep.subr.mxu1 %v4448_v16 }
 0x9d1   :  { %4462 = vmatpush1.msra.mxu1 %v4446_v13 }
 0x9d2   :  { %6215 = vmatmul.mubr.msk.f32.vlgmr.msra.gmra.mrb[124].mxu1 %vm1684_vm7, %v6180_v34  ;;  %7167 = vmatprep.subr.bf16.mxu1 %v7166_v1  ;;  %v7196_v1 = vpack.c.bf16 %v6247_v53, %v6245_v51  ;;  %v5257_v53 = vld [vmem:[%s10137_s16] sm:$0xff] }
 0x9d3   :  { %7169 = vmatpush1.bf16.msra.mxu1 %v7168_v58  ;;  %4527 = vmatprep.mubr.f32.mxu1 %v7515_v7  ;;  %v7192_v58 = vpack.c.bf16 %v6243_v52, %v6241_v46 }
 0x9d4   :  { %4544 = vmatprep.subr.mxu1 %v4331_v15 }
 0x9d6   :  { %6216 = vmatmul.mubr.msk.f32.gmra.mrb[126].mxu1 %vm1684_vm7, %v6181_v23 }
 0x9d7   :  { %4545 = vmatpush1.msra.mxu1 %v4329_v4  ;;  %4604 = vmatprep.mubr.f32.mxu1 %v7515_v7  ;;  %v6249_v4 = vld [vmem:[%s10135_s14 + $0x2c0] sm:$0xff] }
 0x9d8   :  { %7171 = vmatprep.subr.bf16.mxu1 %v7170_v24 }
 0x9da   :  { %6217 = vmatmul.mubr.msk.f32.vlgmr.msra.gmra.mrb[124].mxu1 %vm1684_vm7, %v4210_v31 }
 0x9db   :  { %7173 = vmatpush1.bf16.msra.mxu1 %v7172_v32  ;;  %4610 = vmatprep.mubr.f32.mxu1 %v7515_v7 }
 0x9dc   :  { %7175 = vmatprep.subr.bf16.mxu1 %v7174_v35  ;;  %v6220_v35 = vld [vmem:[%s10134_s13 + $0x28] sm:$0xff] }
 0x9de   :  { %6218 = vmatmul.mubr.msk.f32.gmra.mrb[126].mxu1 %vm1684_vm7, %v4211_v61  ;;  %v6332_v61 = vld [vmem:[%s10137_s16 + $0x58] sm:$0xff] }
 0x9df   :  { %7177 = vmatpush1.bf16.msra.mxu1 %v7176_v60  ;;  %4715 = vmatprep.mubr.f32.mxu1 %v7515_v7  ;;  %v6331_v60 = vld [vmem:[%s10137_s16 + $0x50] sm:$0xff] }
 0x9e0   :  { %v9811_v8 = vpop.f32.mrb[88].mxu0  ;;  %7179 = vmatprep.subr.bf16.mxu1 %v7178_v63  ;;  %v7267_v63 = vpack.c.bf16 %v6332_v61, %v6331_v60  ;;  %v6349_v60 = vld [vmem:[%s10137_s16 + $0xd0] sm:$0xff]  ;;  %v6350_v61 = vld [vmem:[%s10137_s16 + $0xd8] sm:$0xff] }
 0x9e1   :  { %v9819_v37 = vpop.f32.mrb[89].mxu0 }
 0x9e3   :  { %7181 = vmatpush1.bf16.msra.mxu1 %v7180_v6  ;;  %v6336_v6 = vld [vmem:[%s10137_s16 + $0x78] sm:$0xff] }
 0x9e4   :  { %v9827_v54 = vpop.f32.mrb[90].mxu0  ;;  %7183 = vmatprep.subr.bf16.mxu1 %v7182_v14  ;;  %v6337_v14 = vld [vmem:[%s10137_s16 + $0x80] sm:$0xff] }
 0x9e5   :  { %v7232_v41 = vpack.c.bf16 %v9827_v54, %v9811_v8  ;;  %v4929_v42 = vpop.f32.mrb[91].mxu0  ;;  %v7273_v8 = vpack.c.bf16 %v6336_v6, %v6335_v0  ;;  %v7276_v20 = vpack.c.bf16 %v6338_v19, %v6337_v14  ;;  %v6354_v0 = vld [vmem:[%s10137_s16 + $0xf0] sm:$0xff]  ;;  %v6355_v6 = vld [vmem:[%s10137_s16 + $0xf8] sm:$0xff]  ;;  %v6356_v19 = vld [vmem:[%s10137_s16 + $0x100] sm:$0xff] }
 0x9e6   :  { %v7230_v47 = vpack.c.bf16 %v4929_v42, %v9819_v37  ;;  %v6339_v37 = vld [vmem:[%s10137_s16 + $0x90] sm:$0xff] }
 0x9e7   :  { %7185 = vmatpush1.bf16.msra.mxu1 %v7184_v18  ;;  %v7279_v17 = vpack.c.bf16 %v6340_v11, %v6339_v37  ;;  %v5606_v42 = vld [vmem:[%s10139_s18 + $0x10] sm:$0xff] }
 0x9e8   :  { %v4933_v49 = vpop.f32.mrb[92].mxu0  ;;  %7187 = vmatprep.subr.bf16.mxu1 %v7186_v38  ;;  %v6358_v11 = vld [vmem:[%s10137_s16 + $0x110] sm:$0xff] }
 0x9e9   :  { %v4935_v55 = vpop.f32.mrb[93].mxu0 }
 0x9eb   :  { %7189 = vmatpush1.bf16.msra.mxu1 %v7188_v48 }
 0x9ec   :  { %7191 = vmatprep.subr.bf16.mxu1 %v7190_v5 }
 0x9ef   :  { %7193 = vmatpush1.bf16.msra.mxu1 %v7192_v58  ;;  %v6330_v58 = vld [vmem:[%s10136_s15] ss:$0 sm:$0xff] }
 0x9f0   :  { %7195 = vmatprep.subr.bf16.mxu1 %v7194_v59 }
 0x9f3   :  { %7197 = vmatpush1.bf16.msra.mxu1 %v7196_v1  ;;  %v5258_v1 = vld [vmem:[%s10137_s16 + $0x8] sm:$0xff] }
 0x9f4   :  { %4679 = vmatprep.subr.mxu1 %v6250_v3 }
 0x9f7   :  { %4680 = vmatpush1.msra.mxu1 %v6249_v4  ;;  %v7282_v4 = vpack.c.bf16 %v5258_v1, %v5257_v53 }
 0x9f8   :  { %6251 = vmatmul.mubr.msk.f32.vlgmr.msra.gmra.mrb[128].mxu1 %vm1474_vm6, %v9539_v33 }
 0x9f9   :  { %4721 = vmatprep.mubr.f32.mxu1 %v7515_v7 }
 0x9fc   :  { %6252 = vmatmul.mubr.msk.f32.gmra.mrb[130].mxu1 %vm1474_vm6, %v9559_v10 }
 0x9fd   :  { %4727 = vmatprep.mubr.f32.mxu1 %v7515_v7 }
 0x9fe   :  { %v5125_v13 = vpop.f32.mrb[94].mxu0 }
 0x9ff   :  { %v5127_v15 = vpop.f32.mrb[95].mxu0 }
 0xa00   :  { %6253 = vmatmul.mubr.msk.f32.gmra.mrb[132].mxu1 %vm1474_vm6, %v9595_v45  ;;  %v6219_v45 = vld [vmem:[%s10134_s13 + $0x20] sm:$0xff] }
 0xa01   :  { %4804 = vmatprep.mubr.f32.mxu1 %v7515_v7 }
 0xa02   :  { %v5131_v16 = vpop.f32.mrb[96].mxu0 }
 0xa03   :  { %v7264_v34 = vpack.c.bf16 %v5131_v16, %v5125_v13  ;;  %v5133_v21 = vpop.f32.mrb[97].mxu0  ;;  %v5260_v16 = vld [vmem:[%s10137_s16 + $0x18] sm:$0xff] }
 0xa04   :  { %v7262_v22 = vpack.c.bf16 %v5133_v21, %v5127_v15  ;;  %v5259_v15 = vld [vmem:[%s10137_s16 + $0x10] sm:$0xff]  ;;  %v5261_v21 = vld [vmem:[%s10137_s16 + $0x20] sm:$0xff] }
 0xa06   :  { %v5137_v23 = vpop.f32.mrb[98].mxu0 }
 0xa07   :  { %v5139_v33 = vpop.f32.mrb[99].mxu0 }
 0xacb   :  { %v4717_v24 = vpop.f32.mrb[128].mxu1 }
 0xacc   :  { %v4719_v27 = vpop.f32.mrb[129].mxu1 }
 0xacf   :  { %v4723_v25 = vpop.f32.mrb[130].mxu1 }
 0xad0   :  { %v7200_v28 = vpack.c.bf16 %v4723_v25, %v4717_v24  ;;  %v4725_v10 = vpop.f32.mrb[131].mxu1  ;;  %v5264_v24 = vld [vmem:[%s10137_s16 + $0x38] sm:$0xff]  ;;  %v5265_v25 = vld [vmem:[%s10137_s16 + $0x40] sm:$0xff] }
 0xad1   :  { %v7198_v29 = vpack.c.bf16 %v4725_v10, %v4719_v27 }
 0xad3   :  { %v4729_v31 = vpop.f32.mrb[132].mxu1  ;;  %7199 = vmatprep.subr.bf16.mxu1 %v7198_v29  ;;  %v6343_v29 = vld [vmem:[%s10137_s16 + $0xa0] sm:$0xff] }
 0xad4   :  { %v4731_v32 = vpop.f32.mrb[133].mxu1  ;;  %7201 = vmatpush1.bf16.msra.mxu1 %v7200_v28  ;;  %v5266_v28 = vld [vmem:[%s10137_s16 + $0x48] sm:$0xff] }
 0xad5   :  { %4744 = vmatprep.subr.mxu1 %v4731_v32  ;;  %v7294_v10 = vpack.c.bf16 %v5266_v28, %v5265_v25 }
 0xad8   :  { %4745 = vmatpush1.msra.mxu1 %v4729_v31  ;;  %v6344_v31 = vld [vmem:[%s10137_s16 + $0xa8] sm:$0xff] }
 0xad9   :  { %6254 = vmatmul.mubr.msk.f32.vlgmr.msra.gmra.mrb[124].mxu1 %vm1684_vm7, %v6219_v45  ;;  %7231 = vmatprep.subr.bf16.mxu1 %v7230_v47  ;;  %v7330_v47 = vpack.c.bf16 %v5607_v44, %v5606_v42  ;;  %v7297_v32 = vpack.c.bf16 %v6344_v31, %v6343_v29  ;;  %v6345_v45 = vld [vmem:[%s10137_s16 + $0xb0] sm:$0xff]  ;;  %v5608_v44 = vld [vmem:[%s10139_s18 + $0x20] sm:$0xff] }
 0xada   :  { %7233 = vmatpush1.bf16.msra.mxu1 %v7232_v41  ;;  %4810 = vmatprep.mubr.f32.mxu1 %v7515_v7  ;;  %v5605_v41 = vld [vmem:[%s10139_s18 + $0x8] sm:$0xff] }
 0xadb   :  { %4948 = vmatprep.subr.mxu1 %v4935_v55  ;;  %v7327_v43 = vpack.c.bf16 %v5605_v41, %v5604_v12  ;;  %v6362_v12 = vld [vmem:[%s10137_s16 + $0x130] sm:$0xff]  ;;  %v6363_v41 = vld [vmem:[%s10137_s16 + $0x138] sm:$0xff] }
 0xadc   :  { %v7324_v42 = vpack.c.bf16 %v6363_v41, %v6362_v12 }
 0xadd   :  { %6255 = vmatmul.mubr.msk.f32.gmra.mrb[126].mxu1 %vm1684_vm7, %v6220_v35  ;;  %7328 = vmatpush3.bf16.msra.mxu0 %v7327_v43  ;;  %v6346_v35 = vld [vmem:[%s10137_s16 + $0xb8] sm:$0xff] }
 0xade   :  { %4949 = vmatpush1.msra.mxu1 %v4933_v49  ;;  %5008 = vmatprep.mubr.f32.mxu1 %v7515_v7 }
 0xadf   :  { %7263 = vmatprep.subr.bf16.mxu1 %v7262_v22  ;;  %7329 = vmatprep.subr.bf16.mxu0 %v7517_v30  ;;  %v5262_v22 = vld [vmem:[%s10137_s16 + $0x28] sm:$0xff] }
 0xae1   :  { %6291 = vmatmul.mubr.msk.f32.vlgmr.msra.gmra.mrb[124].mxu1 %vm1684_vm7, %v6256_v36  ;;  %7331 = vmatpush3.bf16.msra.mxu0 %v7330_v47  ;;  %v7300_v36 = vpack.c.bf16 %v6346_v35, %v6345_v45  ;;  %v5609_v47 = vld [vmem:[%s10139_s18 + $0x28] sm:$0xff] }
 0xae2   :  { %7265 = vmatpush1.bf16.msra.mxu1 %v7264_v34  ;;  %5014 = vmatprep.mubr.f32.mxu1 %v7515_v7  ;;  %v7285_v34 = vpack.c.bf16 %v5260_v16, %v5259_v15 }
 0xae3   :  { %5152 = vmatprep.subr.mxu1 %v5139_v33  ;;  %7332 = vmatprep.subr.bf16.mxu0 %v7517_v30  ;;  %v5263_v33 = vld [vmem:[%s10137_s16 + $0x30] sm:$0xff] }
 0xae4   :  { %v7291_v27 = vpack.c.bf16 %v5264_v24, %v5263_v33 }
 0xae5   :  { %6292 = vmatmul.mubr.msk.f32.gmra.mrb[126].mxu1 %vm1684_vm7, %v6257_v50  ;;  %v6347_v50 = vld [vmem:[%s10137_s16 + $0xc0] sm:$0xff] }
 0xae6   :  { %5153 = vmatpush1.msra.mxu1 %v5137_v23  ;;  %5212 = vmatprep.mubr.f32.mxu1 %v7515_v7  ;;  %v7288_v23 = vpack.c.bf16 %v5262_v22, %v5261_v21 }
 0xae7   :  { %7266 = vmatprep.subr.bf16.mxu1 %v7517_v30 }
 0xae9   :  { %6328 = vmatmul.mubr.msk.f32.vlgmr.msra.gmra.mrb[124].mxu1 %vm1684_vm7, %v6293_v62  ;;  %v6348_v62 = vld [vmem:[%s10137_s16 + $0xc8] sm:$0xff] }
 0xaea   :  { %5218 = vmatprep.mubr.f32.mxu1 %v7515_v7  ;;  %7268 = vmatpush3.bf16.msra.mxu1 %v7267_v63  ;;  %v7306_v63 = vpack.c.bf16 %v6350_v61, %v6349_v60 }
 0xaeb   :  { %7269 = vmatprep.subr.bf16.mxu1 %v7517_v30 }
 0xaed   :  { %6329 = vmatmul.mubr.msk.f32.gmra.mrb[126].mxu1 %vm1684_vm7, %v6294_v39  ;;  %v7303_v39 = vpack.c.bf16 %v6348_v62, %v6347_v50 }
 0xaee   :  { %6577 = vmatprep.mubr.msk.f32.mxu1 %vm7519_vm8, %v7515_v7  ;;  %7271 = vmatpush3.bf16.msra.mxu1 %v7270_v9  ;;  %v7309_v9 = vpack.c.bf16 %v6352_v2, %v6351_v26 }
 0xaef   :  { %7272 = vmatprep.subr.bf16.mxu1 %v7517_v30 }
 0xaf2   :  { %7274 = vmatpush3.bf16.msra.mxu1 %v7273_v8  ;;  %v7312_v8 = vpack.c.bf16 %v6355_v6, %v6354_v0 }
 0xaf3   :  { %7275 = vmatprep.subr.bf16.mxu1 %v7517_v30 }
 0xaf6   :  { %7277 = vmatpush3.bf16.msra.mxu1 %v7276_v20  ;;  %v6357_v20 = vld [vmem:[%s10137_s16 + $0x108] sm:$0xff] }
 0xaf7   :  { %7278 = vmatprep.subr.bf16.mxu1 %v7517_v30  ;;  %v7315_v37 = vpack.c.bf16 %v6357_v20, %v6356_v19 }
 0xafa   :  { %7280 = vmatpush3.bf16.msra.mxu1 %v7279_v17  ;;  %v6359_v17 = vld [vmem:[%s10137_s16 + $0x118] sm:$0xff] }
 0xafb   :  { %7281 = vmatprep.subr.bf16.mxu1 %v7517_v30 }
 0xbbc   :  { %v5214_v18 = vpop.f32.mrb[124].mxu1 }
 0xbbd   :  { %5233 = vrot.lane.b32.xlu0 %v5214_v18, %s7518_s30  ;;  %v5216_v54 = vpop.f32.mrb[125].mxu1 }
 0xbbe   :  { %5235 = vrot.lane.b32.xlu1 %v5216_v54, %s7518_s30  ;;  %v6360_v54 = vld [vmem:[%s10137_s16 + $0x120] sm:$0xff] }
 0xbc0   :  { %v5220_v38 = vpop.f32.mrb[126].mxu1 }
 0xbc1   :  { %5237 = vrot.lane.b32.xlu0 %v5220_v38, %s7518_s30  ;;  %v5222_v40 = vpop.f32.mrb[127].mxu1 }
 0xbc2   :  { %5239 = vrot.lane.b32.xlu1 %v5222_v40, %s7518_s30 }
 0xc2f   :  { %v5234_v48 = vpop.permute.xlu0 %5233 }
 0xc30   :  { %v5236_v49 = vpop.permute.xlu1 %5235 }
 0xc31   :  { %v5241_v5 = vsel %vm2475_vm9, %v5234_v48, %v5236_v49  ;;  %v7333_v48 = vpack.c.bf16 %v5609_v47, %v5608_v44  ;;  %v6044_v49 = vld [vmem:[%s10130_s9] ss:$0 sm:$0xff]  ;;  %s7520_s9 = smov [#allocation2]  }
 0xc32   :  { %v5245_v56 = vmax.f32 %v5214_v18, %v5241_v5  ;;  %v7318_v18 = vpack.c.bf16 %v6359_v17, %v6358_v11 }
 0xc33   :  { %v5238_v46 = vpop.permute.xlu0 %5237  ;;  %7334 = vmatpush3.bf16.msra.mxu0 %v7333_v48 }
 0xc34   :  { %v5240_v52 = vpop.permute.xlu1 %5239  ;;  %6661 = vmatprep.subr.mxu0 %v7515_v7 }
 0xc35   :  { %v5242_v55 = vsel %vm2475_vm9, %v5238_v46, %v5240_v52  ;;  %v6365_v46 = vld [vmem:[%s10138_s17] ss:$0 sm:$0xff]  ;;  %s5716_s17 = sshll.u32 %s7520_s9, 4  ;;  %s5717_s17 = int_to_ptr.vmem [resolvable:$true] %s5716_s17 }
 0xc36   :  { %v5246_v57 = vmax.f32 %v5220_v38, %v5242_v55  ;;  %v6361_v38 = vld [vmem:[%s10137_s16 + $0x128] sm:$0xff]  ;;  %p7495_p1 = scmp.lt.s32.totalorder %s5717_s17, %s5717_s17 }
 0xc37   :  { %v7321_v40 = vpack.c.bf16 %v6361_v38, %v6360_v54 }
 0xc38   :  { %v5247_v59 = vmax.f32 %v5245_v56, %v5246_v57  ;;  %v6366_v57 = vld [vmem:[%s10140_s19] ss:$0 sm:$0xff] }
 0xc3a   :  { %v5255_v51 = vadd.f32 %v6330_v58, %v5247_v59 }
 0xc3c   :  { %v9973_v3 = vmax.f32 %v5255_v51, 0.0 }
 0xc3e   :  { %v5279_v13 = vrot.slane %v9973_v3, 2  ;;  %v5435_v14 = vrot.slane %v9973_v3, 4  ;;  %v5520_v43 = vrot.slane %v9973_v3, 6 }
 0xc40   :  { %6578 = vmatmul.mubr.msk.f32.vlgmr.msra.gmra.mrb[74].mxu1 %vm2515_vm10, %v5279_v13 }
 0xc41   :  { %7283 = vmatpush3.bf16.msra.mxu1 %v7282_v4  ;;  %6600 = vmatprep.mubr.msk.f32.mxu1 %vm7519_vm8, %v7515_v7 }
 0xc42   :  { %7284 = vmatprep.subr.bf16.mxu1 %v7517_v30 }
 0xc45   :  { %7286 = vmatpush3.bf16.msra.mxu1 %v7285_v34 }
 0xc46   :  { %7287 = vmatprep.subr.bf16.mxu1 %v7517_v30 }
 0xc49   :  { %7289 = vmatpush3.bf16.msra.mxu1 %v7288_v23 }
 0xc4a   :  { %7290 = vmatprep.subr.bf16.mxu1 %v7517_v30 }
 0xc4d   :  { %7292 = vmatpush3.bf16.msra.mxu1 %v7291_v27 }
 0xc4e   :  { %7293 = vmatprep.subr.bf16.mxu1 %v7517_v30 }
 0xc51   :  { %7295 = vmatpush3.bf16.msra.mxu1 %v7294_v10 }
 0xc52   :  { %7296 = vmatprep.subr.bf16.mxu1 %v7517_v30 }
 0xc54   :  { %6601 = vmatmul.mubr.msk.f32.vlgmr.msra.gmra.mrb[74].mxu1 %vm2515_vm10, %v9973_v3 }
 0xc55   :  { %7298 = vmatpush3.bf16.msra.mxu1 %v7297_v32  ;;  %6623 = vmatprep.mubr.msk.f32.mxu1 %vm7519_vm8, %v7515_v7 }
 0xc56   :  { %7299 = vmatprep.subr.bf16.mxu1 %v7517_v30 }
 0xc59   :  { %7301 = vmatpush3.bf16.msra.mxu1 %v7300_v36 }
 0xc5a   :  { %7302 = vmatprep.subr.bf16.mxu1 %v7517_v30 }
 0xc5d   :  { %7304 = vmatpush3.bf16.msra.mxu1 %v7303_v39 }
 0xc5e   :  { %7305 = vmatprep.subr.bf16.mxu1 %v7517_v30 }
 0xc61   :  { %7307 = vmatpush3.bf16.msra.mxu1 %v7306_v63 }
 0xc62   :  { %7308 = vmatprep.subr.bf16.mxu1 %v7517_v30 }
 0xc65   :  { %7310 = vmatpush3.bf16.msra.mxu1 %v7309_v9 }
 0xc66   :  { %7311 = vmatprep.subr.bf16.mxu1 %v7517_v30 }
 0xc68   :  { %6624 = vmatmul.mubr.msk.f32.vlgmr.msra.gmra.mrb[74].mxu1 %vm2515_vm10, %v5435_v14 }
 0xc69   :  { %7313 = vmatpush3.bf16.msra.mxu1 %v7312_v8  ;;  %6646 = vmatprep.mubr.msk.f32.mxu1 %vm7519_vm8, %v7515_v7 }
 0xc6a   :  { %7314 = vmatprep.subr.bf16.mxu1 %v7517_v30 }
 0xc6d   :  { %7316 = vmatpush3.bf16.msra.mxu1 %v7315_v37 }
 0xc6e   :  { %7317 = vmatprep.subr.bf16.mxu1 %v7517_v30 }
 0xc71   :  { %7319 = vmatpush3.bf16.msra.mxu1 %v7318_v18 }
 0xc72   :  { %7320 = vmatprep.subr.bf16.mxu1 %v7517_v30 }
 0xc75   :  { %7322 = vmatpush3.bf16.msra.mxu1 %v7321_v40 }
 0xc76   :  { %7323 = vmatprep.subr.bf16.mxu1 %v7517_v30  ;;  %v5610_v30 = vld [vmem:[%s10139_s18 + $0x30] sm:$0x3]  ;;  %s7490_s18 = scalar_lea.vmem %s5717_s17, 32 }
 0xc77   :  { %6662 = vmatpush3.msk.msra.mxu0 %vm5622_vm11, %v5610_v30  ;;  %p7491_p0 = scmp.ne.s32.totalorder %s5717_s17, %s7490_s18  ;;  %p7496_p2 = scmp.lt.s32.totalorder %s7490_s18, %s7490_s18 }
 0xc79   :  { %7325 = vmatpush3.bf16.msra.mxu1 %v7324_v42  ;;  %p7497_p3 = por %p7496_p2, %p7495_p1 }
 0xc7b   :  { %p7498_p4 = pnand %p7497_p3, %p7491_p0 }
 0xc7c   :  { %6647 = vmatmul.mubr.msk.f32.vlgmr.msra.gmra.mrb[74].mxu1 %vm2515_vm10, %v5520_v43 }
 0xd4f   :  { %v5589_v5 = vpop.f32.mrb[74].mxu1 }
 0xd50   :  { %v7335_v52 = vadd.f32 %v6044_v49, %v5589_v5  ;;  %v6648_v55 = vpop.f32.mrb[75].mxu1 }
 0xd52   :  { %v7336_v56 = vadd.f32 %v7335_v52, %v6365_v46 }
 0xd54   :  { %v5603_v7 = vmul.f32 0.5, %v7336_v56 }
 0xd56   :  { %6664 = vmatmul.mubr.msk.f32.vlgmr.msra.gmra.mrb[100].mxu0 %vm5618_vm12, %v5603_v7 }
 0xe29   :  { %v5692_v58 = vpop.f32.mrb[100].mxu0 }
 0xe2a   :  { %v5693_v59 = vadd.f32 %v6366_v57, %v5692_v58  ;;  %v6665_v51 = vpop.f32.mrb[101].mxu0 }
 0xe2c   :  { %v5697_v53 = vsel %vm5696_vm13, %v5693_v59, -inf }
 0xe2d   :  { %5698 = vmax.xlane.f32.xlu0 %v5697_v53 }
 0xeba   :  { %v5699_v1 = vpop.xlane.xlu0 %5698 }
 0xebb   :  { %v5700_v3 = vsub.f32 %v5693_v59, %v5699_v1 }
 0xebd   :  { %v5701_v4 = vmul.f32 1.442695, %v5700_v3 }
 0xebf   :  { %7486 = vpow2.f32 %v5701_v4 }
 0xec9   :  { %v7487_v13 = vpop.eup %7486 }
 0xeca   :  { %v5703_v15 = vsel %vm5696_vm13, %v7487_v13, 0.0 }
 0xecb   :  { %5704 = vadd.xlane.f32.xlu1 %v5703_v15 }
 0xf58   :  { %v5705_v16 = vpop.xlane.xlu1 %5704 }
 0xf59   :  { %7488 = vlog2.f32 %v5705_v16 }
 0xf63   :  { %v7489_v34 = vpop.eup %7488 }
 0xf64   :  { %v5707_v21 = vmul.f32 0.6931472, %v7489_v34 }
 0xf66   :  { %v5708_v22 = vsub.f32 %v5700_v3, %v5707_v21 }
 0xf68   :  { %5709 = vst.msk [vmem:[#allocation2] sm:$0x3] %vm5696_vm13, %v5708_v22 }
 0xf69   :  { %7501 = shalt.err (!%p7498_p4)
}
 0xf6a   :  { %s7502_s2 = scalar_lea.hbm %s10141_s20, 32 }
 0xf6b   :  { %p7503_p5 = scmp.ne.s32.totalorder %s10141_s20, %s7502_s2  ;;  %p7506_p6 = scmp.lt.u32.totalorder %s7502_s2, %s10141_s20 }
 0xf6d   :  { %p7508_p7 = pnand %p7506_p6, %p7503_p5 }
 0xf6f   :  { %7511 = shalt.err (!%p7508_p7)
}
 0xf70   :  { %5719 = dma.vmem_to_hbm [thread:$0]  %s5717_s17, 32, %s10141_s20, [#allocation3]  }
 0xf71   :  { %7512 = dma.done.wait [#allocation3], 32  }
 0xf72   :  { %7513 = vsyncadd [#allocation3], 4294967264 }
 0xf73   :  { %5723 = vsyncpa [#allocation3], 1 }

</bundles_post_ra>
